<compile_context>
chip_gen: v7x
topology: tpu7x:2x2x1
jax: 0.10.0
libtpu: 0.0.40
codegen_flags: <defaults>
</compile_context>

<pallas_src>
import functools

import numpy as np
import jax
import jax.numpy as jnp
from jax import lax
from jax.experimental import pallas as pl
from jax.experimental.pallas import tpu as pltpu


def _prod(xs):
    r = 1
    for v in xs:
        r *= int(v)
    return r


def _tree_sum(terms):
    """Pairwise reduction -> short dependency chains keep the 4 VALU slots fed."""
    terms = list(terms)
    while len(terms) > 1:
        nxt = [a + b for a, b in zip(terms[0::2], terms[1::2])]
        if len(terms) % 2:
            nxt.append(terms[-1])
        terms = nxt
    return terms[0]


# ----------------------------------------------------------------------------
# Fused kernel: conv + full TT chain for `bt` batch elements per grid step.
# ----------------------------------------------------------------------------
def _ttcl_fused_kernel(x_ref, convw_ref, convb_ref, *refs,
                       inp_modes, out_modes, rank, kernel_size,
                       oh, ow, w_in, bt):
    """Refs:
       x_ref     : (bt, c_in, H*W)              VMEM   (flat spatial, lane-dense)
       convw_ref : (r0, K*K)                    SMEM
       convb_ref : (1, r0)                      SMEM
       core i    : (r_i*inp_i, out_i*r_{i+1})   SMEM   (d of them)
       o_ref     : (bt, prod(out_modes), H*W)   VMEM
       ping/pong : (max_rows_parity, L)         VMEM scratch (1 or 2 of them)
    """
    d = len(inp_modes)
    core_refs = refs[:d]
    o_ref = refs[d]
    stage_bufs = refs[d + 1:]
    c_in = _prod(inp_modes)
    r0 = rank[0]
    kh = kw = kernel_size
    L = (oh - 1) * w_in + ow          # flat extent covering all valid outputs

    # ---- Hoist every SMEM scalar read out of the batch / spectator loops ----
    w_sc = [[convw_ref[oc, ki * kw + kj] for ki in range(kh) for kj in range(kw)]
            for oc in range(r0)]
    b_sc = [convb_ref[0, oc] for oc in range(r0)]
    core_sc = []
    for i in range(d):
        K = rank[i] * inp_modes[i]
        cols = out_modes[i] * rank[i + 1]
        core_sc.append([[core_refs[i][k, c] for c in range(cols)] for k in range(K)])

    tap_off = [ki * w_in + kj for ki in range(kh) for kj in range(kw)]

    for b in range(bt):
        # ---- Conv2d(1 -> r0), stride 1: each tap is a static lane-offset slice
        # ---- of the flat (c_in, H*W) slab; the 9 taps are shared by all oc. --
        taps = [x_ref[b, :, t:t + L] for t in tap_off]            # (c_in, L) each
        y0 = stage_bufs[0]                                         # stage-0 buffer
        for oc in range(r0):
            acc = _tree_sum([taps[t] * w_sc[oc][t] for t in range(kh * kw)])
            y0[oc * c_in:(oc + 1) * c_in, :] = acc + b_sc[oc]      # rows (oc, c)

        # ---- TT contraction chain (VPU broadcast-FMAs, VMEM-resident). ------
        # Stage-i rows are indexed (r_i, inp_i..inp_{d-1}, out_0..out_{i-1})
        # row-major; this is exactly the module's reshape/permute chain.
        # TODO(synk): for large Q/K configs bound the unroll with lax.fori_loop.
        src = stage_bufs[0]
        for i in range(d):
            K = rank[i] * inp_modes[i]
            r_out, oo = rank[i + 1], out_modes[i]
            Q = _prod(inp_modes[i + 1:]) * _prod(out_modes[:i])    # spectator rows
            last = (i == d - 1)
            dst = None if last else stage_bufs[(i + 1) % 2]        # ping-pong
            for q in range(Q):
                rows_in = [src[k * Q + q, :] for k in range(K)]
                for r_new in range(r_out):
                    for o in range(oo):
                        col = r_new * oo + o
                        acc = _tree_sum([rows_in[k] * core_sc[i][k][col]
                                         for k in range(K)])
                        out_row = (r_new * Q + q) * oo + o
                        if last:                    # rank[-1]==1: rows == prod(out)
                            o_ref[b, out_row, :L] = acc
                        else:
                            dst[out_row, :] = acc
            if not last:
                src = dst


# ----------------------------------------------------------------------------
# Wrapper: one pallas_call for the whole TTCL forward (eval mode).
# ----------------------------------------------------------------------------
def ttcl_forward(x, params, *, inp_modes, out_modes, rank, kernel_size,
                 stride=1, padding=0, batch_tile=None):
    conv_w, conv_b, cores = params
    inp_modes = tuple(int(v) for v in inp_modes)
    out_modes = tuple(int(v) for v in out_modes)
    rank = tuple(int(v) for v in rank)
    d = len(inp_modes)
    assert len(out_modes) == d and len(rank) == d + 1
    assert rank[-1] == 1, "module's final reshape requires rank[-1] == 1"
    assert stride == 1, "stride > 1 not implemented"  # TODO(synk): stride > 1

    batch, c_in, h, w = x.shape
    assert c_in == _prod(inp_modes)
    if padding:
        # TODO(synk): fold padding into the kernel via boundary masks instead of jnp.pad.
        x = jnp.pad(x, ((0, 0), (0, 0), (padding, padding), (padding, padding)))
        h += 2 * padding
        w += 2 * padding
    oh = (h - kernel_size) // stride + 1
    ow = (w - kernel_size) // stride + 1
    S = h * w                               # flat lane extent per batch element
    L = (oh - 1) * w + ow                   # valid flat extent written by kernel
    prod_out = _prod(out_modes)

    # Batch tile: amortize per-grid-step overhead while keeping grid >= 2 so
    # the "parallel" batch axis occupies both TensorCores on v7x.
    bt = batch_tile
    if bt is None:
        bt = 1
        for cand in range(1, min(batch, 8) + 1):
            if batch % cand == 0 and batch // cand >= 2:
                bt = cand
    assert batch % bt == 0

    # Per-stage row counts; two ping-pong buffers sized to the per-parity max.
    rows = [rank[i] * _prod(inp_modes[i:]) * _prod(out_modes[:i]) for i in range(d)]
    buf_rows = [max(rows[0::2])]
    if d > 1:
        buf_rows.append(max(rows[1::2]))

    x_flat = x.reshape(batch, c_in, S)      # free metadata reshape in HBM

    kern = functools.partial(
        _ttcl_fused_kernel,
        inp_modes=inp_modes, out_modes=out_modes, rank=rank,
        kernel_size=kernel_size, oh=oh, ow=ow, w_in=w, bt=bt)

    smem_specs = [pl.BlockSpec(memory_space=pltpu.MemorySpace.SMEM)
                  for _ in range(2 + d)]

    out_flat = pl.pallas_call(
        kern,
        out_shape=jax.ShapeDtypeStruct((batch, prod_out, S), jnp.float32),
        grid=(batch // bt,),
        in_specs=[pl.BlockSpec((bt, c_in, S), lambda g: (g, 0, 0))] + smem_specs,
        out_specs=pl.BlockSpec((bt, prod_out, S), lambda g: (g, 0, 0)),
        scratch_shapes=[pltpu.VMEM((r, L), jnp.float32) for r in buf_rows],
        compiler_params=pltpu.CompilerParams(
            dimension_semantics=("parallel",)),
    )(x_flat, conv_w, conv_b, *cores)

    # Back to (batch, prod_out, OH, OW); garbage lanes beyond the valid window
    # are sliced away here (cheap HBM-side slice of a tiny tensor).
    return out_flat.reshape(batch, prod_out, h, w)[:, :, :oh, :ow]


# ----------------------------------------------------------------------------
# Pure-JAX reference (mirrors the PyTorch forward exactly), for correctness.
# ----------------------------------------------------------------------------
def ttcl_reference(x, params, *, inp_modes, out_modes, rank, kernel_size,
                   stride=1, padding=0):
    conv_w, conv_b, cores = params
    batch, c_in, h, w = x.shape
    r0 = rank[0]
    x4 = x.reshape(batch * c_in, 1, h, w)
    w4 = conv_w.reshape(r0, 1, kernel_size, kernel_size)
    y = lax.conv_general_dilated(
        x4, w4, (stride, stride), [(padding, padding), (padding, padding)],
        dimension_numbers=("NCHW", "OIHW", "NCHW"))
    y = y + conv_b.reshape(1, r0, 1, 1)
    new_h, new_w = y.shape[-2], y.shape[-1]
    t = y.reshape(batch, c_in, r0, new_h, new_w)
    t = jnp.transpose(t, (2, 1, 0, 3, 4))
    for i in range(len(out_modes)):
        t = t.reshape(rank[i] * inp_modes[i], -1)
        t = jnp.matmul(cores[i].T, t)
        t = t.reshape(rank[i + 1], out_modes[i], -1)
        t = jnp.transpose(t, (0, 2, 1))
    t = t.reshape(batch, new_h, new_w, int(np.prod(out_modes)))
    return jnp.transpose(t, (0, 3, 1, 2))


# ----------------------------------------------------------------------------
# Deterministic parameter init (shapes match the PyTorch module __init__).
# ----------------------------------------------------------------------------
def init_params(key, inp_modes, out_modes, rank, kernel_size):
    kw_key, kb_key, *core_keys = jax.random.split(key, 2 + len(inp_modes))
    r0 = rank[0]
    fan_in = kernel_size * kernel_size  # conv has 1 input channel
    bound = 1.0 / np.sqrt(fan_in)
    conv_w = jax.random.uniform(kw_key, (r0, kernel_size * kernel_size),
                                jnp.float32, -bound, bound)
    conv_b = jax.random.uniform(kb_key, (1, r0), jnp.float32, -bound, bound)
    cores = []
    for i, ck in enumerate(core_keys):
        shape = (rank[i] * inp_modes[i], out_modes[i] * rank[i + 1])
        std = np.sqrt(2.0 / (shape[0] + shape[1]))  # xavier normal
        cores.append(std * jax.random.normal(ck, shape, jnp.float32))
    return conv_w, conv_b, cores


if __name__ == "__main__":
    def _check(name, inp_modes, out_modes, rank, kernel_size, stride, padding,
               batch, h, w, seed):
        c_in = int(np.prod(inp_modes))
        key = jax.random.PRNGKey(seed)
        pkey, xkey = jax.random.split(key)
        params = init_params(pkey, inp_modes, out_modes, rank, kernel_size)
        x = jax.random.normal(xkey, (batch, c_in, h, w), jnp.float32)
        fwd = jax.jit(functools.partial(
            ttcl_forward, inp_modes=inp_modes, out_modes=out_modes, rank=rank,
            kernel_size=kernel_size, stride=stride, padding=padding))
        out = jax.block_until_ready(fwd(x, params))
        nh = (h + 2 * padding - kernel_size) // stride + 1
        nw = (w + 2 * padding - kernel_size) // stride + 1
        assert out.shape == (batch, int(np.prod(out_modes)), nh, nw), (name, out.shape)
        ref = ttcl_reference(x, params, inp_modes=inp_modes, out_modes=out_modes,
                             rank=rank, kernel_size=kernel_size,
                             stride=stride, padding=padding)
        np.testing.assert_allclose(np.asarray(out), np.asarray(ref),
                                   rtol=1e-4, atol=1e-4)

    # Primary config (module defaults, small shapes): batch=2 -> bt=1, grid=2.
    _check("base", (2, 2), (3, 2), (4, 3, 1), kernel_size=3, stride=1, padding=0,
           batch=2, h=16, w=16, seed=0)
    # Generalization check: d=3, unequal modes, padding>0, batch tile bt=2.
    _check("d3_pad", (2, 2, 2), (2, 3, 2), (3, 2, 2, 1), kernel_size=3, stride=1,
           padding=1, batch=4, h=10, w=10, seed=1)

    print("KERNEL_OK")
</pallas_src>

<mosaic_0001>
module attributes {stable_mosaic.version = 11 : i64} {
  func.func @_ttcl_fused_kernel(%arg0: i32, %arg1: memref<1x4x256xf32, #tpu.memory_space<vmem>>, %arg2: memref<4x9xf32, #tpu.memory_space<smem>>, %arg3: memref<1x4xf32, #tpu.memory_space<smem>>, %arg4: memref<8x9xf32, #tpu.memory_space<smem>>, %arg5: memref<6x2xf32, #tpu.memory_space<smem>>, %arg6: memref<1x6x256xf32, #tpu.memory_space<vmem>>, %arg7: memref<16x222xf32, #tpu.memory_space<vmem>>, %arg8: memref<18x222xf32, #tpu.memory_space<vmem>>) attributes {dimension_semantics = [#tpu.dimension_semantics<parallel>], iteration_bounds = array<i64: 2>, scalar_prefetch = 0 : i64, scratch_operands = 2 : i64, tpu.core_type = #tpu.core_type<tc>, window_params = [{transform_indices = @transform_0, window_bounds = array<i64: 1, 4, 256>}, {transform_indices = @transform_1, window_bounds = array<i64: 4, 9>}, {transform_indices = @transform_2, window_bounds = array<i64: 1, 4>}, {transform_indices = @transform_3, window_bounds = array<i64: 8, 9>}, {transform_indices = @transform_4, window_bounds = array<i64: 6, 2>}, {transform_indices = @transform_5, window_bounds = array<i64: 1, 6, 256>}]} {
    %c0 = arith.constant 0 : index
    %c0_0 = arith.constant 0 : index
    %0 = memref.load %arg2[%c0, %c0_0] : memref<4x9xf32, #tpu.memory_space<smem>>
    %c0_1 = arith.constant 0 : index
    %c1 = arith.constant 1 : index
    %1 = memref.load %arg2[%c0_1, %c1] : memref<4x9xf32, #tpu.memory_space<smem>>
    %c0_2 = arith.constant 0 : index
    %c2 = arith.constant 2 : index
    %2 = memref.load %arg2[%c0_2, %c2] : memref<4x9xf32, #tpu.memory_space<smem>>
    %c0_3 = arith.constant 0 : index
    %c3 = arith.constant 3 : index
    %3 = memref.load %arg2[%c0_3, %c3] : memref<4x9xf32, #tpu.memory_space<smem>>
    %c0_4 = arith.constant 0 : index
    %c4 = arith.constant 4 : index
    %4 = memref.load %arg2[%c0_4, %c4] : memref<4x9xf32, #tpu.memory_space<smem>>
    %c0_5 = arith.constant 0 : index
    %c5 = arith.constant 5 : index
    %5 = memref.load %arg2[%c0_5, %c5] : memref<4x9xf32, #tpu.memory_space<smem>>
    %c0_6 = arith.constant 0 : index
    %c6 = arith.constant 6 : index
    %6 = memref.load %arg2[%c0_6, %c6] : memref<4x9xf32, #tpu.memory_space<smem>>
    %c0_7 = arith.constant 0 : index
    %c7 = arith.constant 7 : index
    %7 = memref.load %arg2[%c0_7, %c7] : memref<4x9xf32, #tpu.memory_space<smem>>
    %c0_8 = arith.constant 0 : index
    %c8 = arith.constant 8 : index
    %8 = memref.load %arg2[%c0_8, %c8] : memref<4x9xf32, #tpu.memory_space<smem>>
    %c1_9 = arith.constant 1 : index
    %c0_10 = arith.constant 0 : index
    %9 = memref.load %arg2[%c1_9, %c0_10] : memref<4x9xf32, #tpu.memory_space<smem>>
    %c1_11 = arith.constant 1 : index
    %c1_12 = arith.constant 1 : index
    %10 = memref.load %arg2[%c1_11, %c1_12] : memref<4x9xf32, #tpu.memory_space<smem>>
    %c1_13 = arith.constant 1 : index
    %c2_14 = arith.constant 2 : index
    %11 = memref.load %arg2[%c1_13, %c2_14] : memref<4x9xf32, #tpu.memory_space<smem>>
    %c1_15 = arith.constant 1 : index
    %c3_16 = arith.constant 3 : index
    %12 = memref.load %arg2[%c1_15, %c3_16] : memref<4x9xf32, #tpu.memory_space<smem>>
    %c1_17 = arith.constant 1 : index
    %c4_18 = arith.constant 4 : index
    %13 = memref.load %arg2[%c1_17, %c4_18] : memref<4x9xf32, #tpu.memory_space<smem>>
    %c1_19 = arith.constant 1 : index
    %c5_20 = arith.constant 5 : index
    %14 = memref.load %arg2[%c1_19, %c5_20] : memref<4x9xf32, #tpu.memory_space<smem>>
    %c1_21 = arith.constant 1 : index
    %c6_22 = arith.constant 6 : index
    %15 = memref.load %arg2[%c1_21, %c6_22] : memref<4x9xf32, #tpu.memory_space<smem>>
    %c1_23 = arith.constant 1 : index
    %c7_24 = arith.constant 7 : index
    %16 = memref.load %arg2[%c1_23, %c7_24] : memref<4x9xf32, #tpu.memory_space<smem>>
    %c1_25 = arith.constant 1 : index
    %c8_26 = arith.constant 8 : index
    %17 = memref.load %arg2[%c1_25, %c8_26] : memref<4x9xf32, #tpu.memory_space<smem>>
    %c2_27 = arith.constant 2 : index
    %c0_28 = arith.constant 0 : index
    %18 = memref.load %arg2[%c2_27, %c0_28] : memref<4x9xf32, #tpu.memory_space<smem>>
    %c2_29 = arith.constant 2 : index
    %c1_30 = arith.constant 1 : index
    %19 = memref.load %arg2[%c2_29, %c1_30] : memref<4x9xf32, #tpu.memory_space<smem>>
    %c2_31 = arith.constant 2 : index
    %c2_32 = arith.constant 2 : index
    %20 = memref.load %arg2[%c2_31, %c2_32] : memref<4x9xf32, #tpu.memory_space<smem>>
    %c2_33 = arith.constant 2 : index
    %c3_34 = arith.constant 3 : index
    %21 = memref.load %arg2[%c2_33, %c3_34] : memref<4x9xf32, #tpu.memory_space<smem>>
    %c2_35 = arith.constant 2 : index
    %c4_36 = arith.constant 4 : index
    %22 = memref.load %arg2[%c2_35, %c4_36] : memref<4x9xf32, #tpu.memory_space<smem>>
    %c2_37 = arith.constant 2 : index
    %c5_38 = arith.constant 5 : index
    %23 = memref.load %arg2[%c2_37, %c5_38] : memref<4x9xf32, #tpu.memory_space<smem>>
    %c2_39 = arith.constant 2 : index
    %c6_40 = arith.constant 6 : index
    %24 = memref.load %arg2[%c2_39, %c6_40] : memref<4x9xf32, #tpu.memory_space<smem>>
    %c2_41 = arith.constant 2 : index
    %c7_42 = arith.constant 7 : index
    %25 = memref.load %arg2[%c2_41, %c7_42] : memref<4x9xf32, #tpu.memory_space<smem>>
    %c2_43 = arith.constant 2 : index
    %c8_44 = arith.constant 8 : index
    %26 = memref.load %arg2[%c2_43, %c8_44] : memref<4x9xf32, #tpu.memory_space<smem>>
    %c3_45 = arith.constant 3 : index
    %c0_46 = arith.constant 0 : index
    %27 = memref.load %arg2[%c3_45, %c0_46] : memref<4x9xf32, #tpu.memory_space<smem>>
    %c3_47 = arith.constant 3 : index
    %c1_48 = arith.constant 1 : index
    %28 = memref.load %arg2[%c3_47, %c1_48] : memref<4x9xf32, #tpu.memory_space<smem>>
    %c3_49 = arith.constant 3 : index
    %c2_50 = arith.constant 2 : index
    %29 = memref.load %arg2[%c3_49, %c2_50] : memref<4x9xf32, #tpu.memory_space<smem>>
    %c3_51 = arith.constant 3 : index
    %c3_52 = arith.constant 3 : index
    %30 = memref.load %arg2[%c3_51, %c3_52] : memref<4x9xf32, #tpu.memory_space<smem>>
    %c3_53 = arith.constant 3 : index
    %c4_54 = arith.constant 4 : index
    %31 = memref.load %arg2[%c3_53, %c4_54] : memref<4x9xf32, #tpu.memory_space<smem>>
    %c3_55 = arith.constant 3 : index
    %c5_56 = arith.constant 5 : index
    %32 = memref.load %arg2[%c3_55, %c5_56] : memref<4x9xf32, #tpu.memory_space<smem>>
    %c3_57 = arith.constant 3 : index
    %c6_58 = arith.constant 6 : index
    %33 = memref.load %arg2[%c3_57, %c6_58] : memref<4x9xf32, #tpu.memory_space<smem>>
    %c3_59 = arith.constant 3 : index
    %c7_60 = arith.constant 7 : index
    %34 = memref.load %arg2[%c3_59, %c7_60] : memref<4x9xf32, #tpu.memory_space<smem>>
    %c3_61 = arith.constant 3 : index
    %c8_62 = arith.constant 8 : index
    %35 = memref.load %arg2[%c3_61, %c8_62] : memref<4x9xf32, #tpu.memory_space<smem>>
    %c0_63 = arith.constant 0 : index
    %c0_64 = arith.constant 0 : index
    %36 = memref.load %arg3[%c0_63, %c0_64] : memref<1x4xf32, #tpu.memory_space<smem>>
    %c0_65 = arith.constant 0 : index
    %c1_66 = arith.constant 1 : index
    %37 = memref.load %arg3[%c0_65, %c1_66] : memref<1x4xf32, #tpu.memory_space<smem>>
    %c0_67 = arith.constant 0 : index
    %c2_68 = arith.constant 2 : index
    %38 = memref.load %arg3[%c0_67, %c2_68] : memref<1x4xf32, #tpu.memory_space<smem>>
    %c0_69 = arith.constant 0 : index
    %c3_70 = arith.constant 3 : index
    %39 = memref.load %arg3[%c0_69, %c3_70] : memref<1x4xf32, #tpu.memory_space<smem>>
    %c0_71 = arith.constant 0 : index
    %c0_72 = arith.constant 0 : index
    %40 = memref.load %arg4[%c0_71, %c0_72] : memref<8x9xf32, #tpu.memory_space<smem>>
    %c0_73 = arith.constant 0 : index
    %c1_74 = arith.constant 1 : index
    %41 = memref.load %arg4[%c0_73, %c1_74] : memref<8x9xf32, #tpu.memory_space<smem>>
    %c0_75 = arith.constant 0 : index
    %c2_76 = arith.constant 2 : index
    %42 = memref.load %arg4[%c0_75, %c2_76] : memref<8x9xf32, #tpu.memory_space<smem>>
    %c0_77 = arith.constant 0 : index
    %c3_78 = arith.constant 3 : index
    %43 = memref.load %arg4[%c0_77, %c3_78] : memref<8x9xf32, #tpu.memory_space<smem>>
    %c0_79 = arith.constant 0 : index
    %c4_80 = arith.constant 4 : index
    %44 = memref.load %arg4[%c0_79, %c4_80] : memref<8x9xf32, #tpu.memory_space<smem>>
    %c0_81 = arith.constant 0 : index
    %c5_82 = arith.constant 5 : index
    %45 = memref.load %arg4[%c0_81, %c5_82] : memref<8x9xf32, #tpu.memory_space<smem>>
    %c0_83 = arith.constant 0 : index
    %c6_84 = arith.constant 6 : index
    %46 = memref.load %arg4[%c0_83, %c6_84] : memref<8x9xf32, #tpu.memory_space<smem>>
    %c0_85 = arith.constant 0 : index
    %c7_86 = arith.constant 7 : index
    %47 = memref.load %arg4[%c0_85, %c7_86] : memref<8x9xf32, #tpu.memory_space<smem>>
    %c0_87 = arith.constant 0 : index
    %c8_88 = arith.constant 8 : index
    %48 = memref.load %arg4[%c0_87, %c8_88] : memref<8x9xf32, #tpu.memory_space<smem>>
    %c1_89 = arith.constant 1 : index
    %c0_90 = arith.constant 0 : index
    %49 = memref.load %arg4[%c1_89, %c0_90] : memref<8x9xf32, #tpu.memory_space<smem>>
    %c1_91 = arith.constant 1 : index
    %c1_92 = arith.constant 1 : index
    %50 = memref.load %arg4[%c1_91, %c1_92] : memref<8x9xf32, #tpu.memory_space<smem>>
    %c1_93 = arith.constant 1 : index
    %c2_94 = arith.constant 2 : index
    %51 = memref.load %arg4[%c1_93, %c2_94] : memref<8x9xf32, #tpu.memory_space<smem>>
    %c1_95 = arith.constant 1 : index
    %c3_96 = arith.constant 3 : index
    %52 = memref.load %arg4[%c1_95, %c3_96] : memref<8x9xf32, #tpu.memory_space<smem>>
    %c1_97 = arith.constant 1 : index
    %c4_98 = arith.constant 4 : index
    %53 = memref.load %arg4[%c1_97, %c4_98] : memref<8x9xf32, #tpu.memory_space<smem>>
    %c1_99 = arith.constant 1 : index
    %c5_100 = arith.constant 5 : index
    %54 = memref.load %arg4[%c1_99, %c5_100] : memref<8x9xf32, #tpu.memory_space<smem>>
    %c1_101 = arith.constant 1 : index
    %c6_102 = arith.constant 6 : index
    %55 = memref.load %arg4[%c1_101, %c6_102] : memref<8x9xf32, #tpu.memory_space<smem>>
    %c1_103 = arith.constant 1 : index
    %c7_104 = arith.constant 7 : index
    %56 = memref.load %arg4[%c1_103, %c7_104] : memref<8x9xf32, #tpu.memory_space<smem>>
    %c1_105 = arith.constant 1 : index
    %c8_106 = arith.constant 8 : index
    %57 = memref.load %arg4[%c1_105, %c8_106] : memref<8x9xf32, #tpu.memory_space<smem>>
    %c2_107 = arith.constant 2 : index
    %c0_108 = arith.constant 0 : index
    %58 = memref.load %arg4[%c2_107, %c0_108] : memref<8x9xf32, #tpu.memory_space<smem>>
    %c2_109 = arith.constant 2 : index
    %c1_110 = arith.constant 1 : index
    %59 = memref.load %arg4[%c2_109, %c1_110] : memref<8x9xf32, #tpu.memory_space<smem>>
    %c2_111 = arith.constant 2 : index
    %c2_112 = arith.constant 2 : index
    %60 = memref.load %arg4[%c2_111, %c2_112] : memref<8x9xf32, #tpu.memory_space<smem>>
    %c2_113 = arith.constant 2 : index
    %c3_114 = arith.constant 3 : index
    %61 = memref.load %arg4[%c2_113, %c3_114] : memref<8x9xf32, #tpu.memory_space<smem>>
    %c2_115 = arith.constant 2 : index
    %c4_116 = arith.constant 4 : index
    %62 = memref.load %arg4[%c2_115, %c4_116] : memref<8x9xf32, #tpu.memory_space<smem>>
    %c2_117 = arith.constant 2 : index
    %c5_118 = arith.constant 5 : index
    %63 = memref.load %arg4[%c2_117, %c5_118] : memref<8x9xf32, #tpu.memory_space<smem>>
    %c2_119 = arith.constant 2 : index
    %c6_120 = arith.constant 6 : index
    %64 = memref.load %arg4[%c2_119, %c6_120] : memref<8x9xf32, #tpu.memory_space<smem>>
    %c2_121 = arith.constant 2 : index
    %c7_122 = arith.constant 7 : index
    %65 = memref.load %arg4[%c2_121, %c7_122] : memref<8x9xf32, #tpu.memory_space<smem>>
    %c2_123 = arith.constant 2 : index
    %c8_124 = arith.constant 8 : index
    %66 = memref.load %arg4[%c2_123, %c8_124] : memref<8x9xf32, #tpu.memory_space<smem>>
    %c3_125 = arith.constant 3 : index
    %c0_126 = arith.constant 0 : index
    %67 = memref.load %arg4[%c3_125, %c0_126] : memref<8x9xf32, #tpu.memory_space<smem>>
    %c3_127 = arith.constant 3 : index
    %c1_128 = arith.constant 1 : index
    %68 = memref.load %arg4[%c3_127, %c1_128] : memref<8x9xf32, #tpu.memory_space<smem>>
    %c3_129 = arith.constant 3 : index
    %c2_130 = arith.constant 2 : index
    %69 = memref.load %arg4[%c3_129, %c2_130] : memref<8x9xf32, #tpu.memory_space<smem>>
    %c3_131 = arith.constant 3 : index
    %c3_132 = arith.constant 3 : index
    %70 = memref.load %arg4[%c3_131, %c3_132] : memref<8x9xf32, #tpu.memory_space<smem>>
    %c3_133 = arith.constant 3 : index
    %c4_134 = arith.constant 4 : index
    %71 = memref.load %arg4[%c3_133, %c4_134] : memref<8x9xf32, #tpu.memory_space<smem>>
    %c3_135 = arith.constant 3 : index
    %c5_136 = arith.constant 5 : index
    %72 = memref.load %arg4[%c3_135, %c5_136] : memref<8x9xf32, #tpu.memory_space<smem>>
    %c3_137 = arith.constant 3 : index
    %c6_138 = arith.constant 6 : index
    %73 = memref.load %arg4[%c3_137, %c6_138] : memref<8x9xf32, #tpu.memory_space<smem>>
    %c3_139 = arith.constant 3 : index
    %c7_140 = arith.constant 7 : index
    %74 = memref.load %arg4[%c3_139, %c7_140] : memref<8x9xf32, #tpu.memory_space<smem>>
    %c3_141 = arith.constant 3 : index
    %c8_142 = arith.constant 8 : index
    %75 = memref.load %arg4[%c3_141, %c8_142] : memref<8x9xf32, #tpu.memory_space<smem>>
    %c4_143 = arith.constant 4 : index
    %c0_144 = arith.constant 0 : index
    %76 = memref.load %arg4[%c4_143, %c0_144] : memref<8x9xf32, #tpu.memory_space<smem>>
    %c4_145 = arith.constant 4 : index
    %c1_146 = arith.constant 1 : index
    %77 = memref.load %arg4[%c4_145, %c1_146] : memref<8x9xf32, #tpu.memory_space<smem>>
    %c4_147 = arith.constant 4 : index
    %c2_148 = arith.constant 2 : index
    %78 = memref.load %arg4[%c4_147, %c2_148] : memref<8x9xf32, #tpu.memory_space<smem>>
    %c4_149 = arith.constant 4 : index
    %c3_150 = arith.constant 3 : index
    %79 = memref.load %arg4[%c4_149, %c3_150] : memref<8x9xf32, #tpu.memory_space<smem>>
    %c4_151 = arith.constant 4 : index
    %c4_152 = arith.constant 4 : index
    %80 = memref.load %arg4[%c4_151, %c4_152] : memref<8x9xf32, #tpu.memory_space<smem>>
    %c4_153 = arith.constant 4 : index
    %c5_154 = arith.constant 5 : index
    %81 = memref.load %arg4[%c4_153, %c5_154] : memref<8x9xf32, #tpu.memory_space<smem>>
    %c4_155 = arith.constant 4 : index
    %c6_156 = arith.constant 6 : index
    %82 = memref.load %arg4[%c4_155, %c6_156] : memref<8x9xf32, #tpu.memory_space<smem>>
    %c4_157 = arith.constant 4 : index
    %c7_158 = arith.constant 7 : index
    %83 = memref.load %arg4[%c4_157, %c7_158] : memref<8x9xf32, #tpu.memory_space<smem>>
    %c4_159 = arith.constant 4 : index
    %c8_160 = arith.constant 8 : index
    %84 = memref.load %arg4[%c4_159, %c8_160] : memref<8x9xf32, #tpu.memory_space<smem>>
    %c5_161 = arith.constant 5 : index
    %c0_162 = arith.constant 0 : index
    %85 = memref.load %arg4[%c5_161, %c0_162] : memref<8x9xf32, #tpu.memory_space<smem>>
    %c5_163 = arith.constant 5 : index
    %c1_164 = arith.constant 1 : index
    %86 = memref.load %arg4[%c5_163, %c1_164] : memref<8x9xf32, #tpu.memory_space<smem>>
    %c5_165 = arith.constant 5 : index
    %c2_166 = arith.constant 2 : index
    %87 = memref.load %arg4[%c5_165, %c2_166] : memref<8x9xf32, #tpu.memory_space<smem>>
    %c5_167 = arith.constant 5 : index
    %c3_168 = arith.constant 3 : index
    %88 = memref.load %arg4[%c5_167, %c3_168] : memref<8x9xf32, #tpu.memory_space<smem>>
    %c5_169 = arith.constant 5 : index
    %c4_170 = arith.constant 4 : index
    %89 = memref.load %arg4[%c5_169, %c4_170] : memref<8x9xf32, #tpu.memory_space<smem>>
    %c5_171 = arith.constant 5 : index
    %c5_172 = arith.constant 5 : index
    %90 = memref.load %arg4[%c5_171, %c5_172] : memref<8x9xf32, #tpu.memory_space<smem>>
    %c5_173 = arith.constant 5 : index
    %c6_174 = arith.constant 6 : index
    %91 = memref.load %arg4[%c5_173, %c6_174] : memref<8x9xf32, #tpu.memory_space<smem>>
    %c5_175 = arith.constant 5 : index
    %c7_176 = arith.constant 7 : index
    %92 = memref.load %arg4[%c5_175, %c7_176] : memref<8x9xf32, #tpu.memory_space<smem>>
    %c5_177 = arith.constant 5 : index
    %c8_178 = arith.constant 8 : index
    %93 = memref.load %arg4[%c5_177, %c8_178] : memref<8x9xf32, #tpu.memory_space<smem>>
    %c6_179 = arith.constant 6 : index
    %c0_180 = arith.constant 0 : index
    %94 = memref.load %arg4[%c6_179, %c0_180] : memref<8x9xf32, #tpu.memory_space<smem>>
    %c6_181 = arith.constant 6 : index
    %c1_182 = arith.constant 1 : index
    %95 = memref.load %arg4[%c6_181, %c1_182] : memref<8x9xf32, #tpu.memory_space<smem>>
    %c6_183 = arith.constant 6 : index
    %c2_184 = arith.constant 2 : index
    %96 = memref.load %arg4[%c6_183, %c2_184] : memref<8x9xf32, #tpu.memory_space<smem>>
    %c6_185 = arith.constant 6 : index
    %c3_186 = arith.constant 3 : index
    %97 = memref.load %arg4[%c6_185, %c3_186] : memref<8x9xf32, #tpu.memory_space<smem>>
    %c6_187 = arith.constant 6 : index
    %c4_188 = arith.constant 4 : index
    %98 = memref.load %arg4[%c6_187, %c4_188] : memref<8x9xf32, #tpu.memory_space<smem>>
    %c6_189 = arith.constant 6 : index
    %c5_190 = arith.constant 5 : index
    %99 = memref.load %arg4[%c6_189, %c5_190] : memref<8x9xf32, #tpu.memory_space<smem>>
    %c6_191 = arith.constant 6 : index
    %c6_192 = arith.constant 6 : index
    %100 = memref.load %arg4[%c6_191, %c6_192] : memref<8x9xf32, #tpu.memory_space<smem>>
    %c6_193 = arith.constant 6 : index
    %c7_194 = arith.constant 7 : index
    %101 = memref.load %arg4[%c6_193, %c7_194] : memref<8x9xf32, #tpu.memory_space<smem>>
    %c6_195 = arith.constant 6 : index
    %c8_196 = arith.constant 8 : index
    %102 = memref.load %arg4[%c6_195, %c8_196] : memref<8x9xf32, #tpu.memory_space<smem>>
    %c7_197 = arith.constant 7 : index
    %c0_198 = arith.constant 0 : index
    %103 = memref.load %arg4[%c7_197, %c0_198] : memref<8x9xf32, #tpu.memory_space<smem>>
    %c7_199 = arith.constant 7 : index
    %c1_200 = arith.constant 1 : index
    %104 = memref.load %arg4[%c7_199, %c1_200] : memref<8x9xf32, #tpu.memory_space<smem>>
    %c7_201 = arith.constant 7 : index
    %c2_202 = arith.constant 2 : index
    %105 = memref.load %arg4[%c7_201, %c2_202] : memref<8x9xf32, #tpu.memory_space<smem>>
    %c7_203 = arith.constant 7 : index
    %c3_204 = arith.constant 3 : index
    %106 = memref.load %arg4[%c7_203, %c3_204] : memref<8x9xf32, #tpu.memory_space<smem>>
    %c7_205 = arith.constant 7 : index
    %c4_206 = arith.constant 4 : index
    %107 = memref.load %arg4[%c7_205, %c4_206] : memref<8x9xf32, #tpu.memory_space<smem>>
    %c7_207 = arith.constant 7 : index
    %c5_208 = arith.constant 5 : index
    %108 = memref.load %arg4[%c7_207, %c5_208] : memref<8x9xf32, #tpu.memory_space<smem>>
    %c7_209 = arith.constant 7 : index
    %c6_210 = arith.constant 6 : index
    %109 = memref.load %arg4[%c7_209, %c6_210] : memref<8x9xf32, #tpu.memory_space<smem>>
    %c7_211 = arith.constant 7 : index
    %c7_212 = arith.constant 7 : index
    %110 = memref.load %arg4[%c7_211, %c7_212] : memref<8x9xf32, #tpu.memory_space<smem>>
    %c7_213 = arith.constant 7 : index
    %c8_214 = arith.constant 8 : index
    %111 = memref.load %arg4[%c7_213, %c8_214] : memref<8x9xf32, #tpu.memory_space<smem>>
    %c0_215 = arith.constant 0 : index
    %c0_216 = arith.constant 0 : index
    %112 = memref.load %arg5[%c0_215, %c0_216] : memref<6x2xf32, #tpu.memory_space<smem>>
    %c0_217 = arith.constant 0 : index
    %c1_218 = arith.constant 1 : index
    %113 = memref.load %arg5[%c0_217, %c1_218] : memref<6x2xf32, #tpu.memory_space<smem>>
    %c1_219 = arith.constant 1 : index
    %c0_220 = arith.constant 0 : index
    %114 = memref.load %arg5[%c1_219, %c0_220] : memref<6x2xf32, #tpu.memory_space<smem>>
    %c1_221 = arith.constant 1 : index
    %c1_222 = arith.constant 1 : index
    %115 = memref.load %arg5[%c1_221, %c1_222] : memref<6x2xf32, #tpu.memory_space<smem>>
    %c2_223 = arith.constant 2 : index
    %c0_224 = arith.constant 0 : index
    %116 = memref.load %arg5[%c2_223, %c0_224] : memref<6x2xf32, #tpu.memory_space<smem>>
    %c2_225 = arith.constant 2 : index
    %c1_226 = arith.constant 1 : index
    %117 = memref.load %arg5[%c2_225, %c1_226] : memref<6x2xf32, #tpu.memory_space<smem>>
    %c3_227 = arith.constant 3 : index
    %c0_228 = arith.constant 0 : index
    %118 = memref.load %arg5[%c3_227, %c0_228] : memref<6x2xf32, #tpu.memory_space<smem>>
    %c3_229 = arith.constant 3 : index
    %c1_230 = arith.constant 1 : index
    %119 = memref.load %arg5[%c3_229, %c1_230] : memref<6x2xf32, #tpu.memory_space<smem>>
    %c4_231 = arith.constant 4 : index
    %c0_232 = arith.constant 0 : index
    %120 = memref.load %arg5[%c4_231, %c0_232] : memref<6x2xf32, #tpu.memory_space<smem>>
    %c4_233 = arith.constant 4 : index
    %c1_234 = arith.constant 1 : index
    %121 = memref.load %arg5[%c4_233, %c1_234] : memref<6x2xf32, #tpu.memory_space<smem>>
    %c5_235 = arith.constant 5 : index
    %c0_236 = arith.constant 0 : index
    %122 = memref.load %arg5[%c5_235, %c0_236] : memref<6x2xf32, #tpu.memory_space<smem>>
    %c5_237 = arith.constant 5 : index
    %c1_238 = arith.constant 1 : index
    %123 = memref.load %arg5[%c5_237, %c1_238] : memref<6x2xf32, #tpu.memory_space<smem>>
    %c0_239 = arith.constant 0 : index
    %c0_240 = arith.constant 0 : index
    %c0_241 = arith.constant 0 : index
    %124 = vector.load %arg1[%c0_239, %c0_240, %c0_241] : memref<1x4x256xf32, #tpu.memory_space<vmem>>, vector<1x4x222xf32>
    %125 = vector.shape_cast %124 : vector<1x4x222xf32> to vector<4x222xf32>
    %c0_242 = arith.constant 0 : index
    %c0_243 = arith.constant 0 : index
    %c1_244 = arith.constant 1 : index
    %126 = vector.load %arg1[%c0_242, %c0_243, %c1_244] : memref<1x4x256xf32, #tpu.memory_space<vmem>>, vector<1x4x222xf32>
    %127 = vector.shape_cast %126 : vector<1x4x222xf32> to vector<4x222xf32>
    %c0_245 = arith.constant 0 : index
    %c0_246 = arith.constant 0 : index
    %c2_247 = arith.constant 2 : index
    %128 = vector.load %arg1[%c0_245, %c0_246, %c2_247] : memref<1x4x256xf32, #tpu.memory_space<vmem>>, vector<1x4x222xf32>
    %129 = vector.shape_cast %128 : vector<1x4x222xf32> to vector<4x222xf32>
    %c0_248 = arith.constant 0 : index
    %c0_249 = arith.constant 0 : index
    %c16 = arith.constant 16 : index
    %130 = vector.load %arg1[%c0_248, %c0_249, %c16] : memref<1x4x256xf32, #tpu.memory_space<vmem>>, vector<1x4x222xf32>
    %131 = vector.shape_cast %130 : vector<1x4x222xf32> to vector<4x222xf32>
    %c0_250 = arith.constant 0 : index
    %c0_251 = arith.constant 0 : index
    %c17 = arith.constant 17 : index
    %132 = vector.load %arg1[%c0_250, %c0_251, %c17] : memref<1x4x256xf32, #tpu.memory_space<vmem>>, vector<1x4x222xf32>
    %133 = vector.shape_cast %132 : vector<1x4x222xf32> to vector<4x222xf32>
    %c0_252 = arith.constant 0 : index
    %c0_253 = arith.constant 0 : index
    %c18 = arith.constant 18 : index
    %134 = vector.load %arg1[%c0_252, %c0_253, %c18] : memref<1x4x256xf32, #tpu.memory_space<vmem>>, vector<1x4x222xf32>
    %135 = vector.shape_cast %134 : vector<1x4x222xf32> to vector<4x222xf32>
    %c0_254 = arith.constant 0 : index
    %c0_255 = arith.constant 0 : index
    %c32 = arith.constant 32 : index
    %136 = vector.load %arg1[%c0_254, %c0_255, %c32] : memref<1x4x256xf32, #tpu.memory_space<vmem>>, vector<1x4x222xf32>
    %137 = vector.shape_cast %136 : vector<1x4x222xf32> to vector<4x222xf32>
    %c0_256 = arith.constant 0 : index
    %c0_257 = arith.constant 0 : index
    %c33 = arith.constant 33 : index
    %138 = vector.load %arg1[%c0_256, %c0_257, %c33] : memref<1x4x256xf32, #tpu.memory_space<vmem>>, vector<1x4x222xf32>
    %139 = vector.shape_cast %138 : vector<1x4x222xf32> to vector<4x222xf32>
    %c0_258 = arith.constant 0 : index
    %c0_259 = arith.constant 0 : index
    %c34 = arith.constant 34 : index
    %140 = vector.load %arg1[%c0_258, %c0_259, %c34] : memref<1x4x256xf32, #tpu.memory_space<vmem>>, vector<1x4x222xf32>
    %141 = vector.shape_cast %140 : vector<1x4x222xf32> to vector<4x222xf32>
    %142 = vector.broadcast %0 : f32 to vector<4x222xf32>
    %143 = arith.mulf %125, %142 : vector<4x222xf32>
    %144 = vector.broadcast %1 : f32 to vector<4x222xf32>
    %145 = arith.mulf %127, %144 : vector<4x222xf32>
    %146 = vector.broadcast %2 : f32 to vector<4x222xf32>
    %147 = arith.mulf %129, %146 : vector<4x222xf32>
    %148 = vector.broadcast %3 : f32 to vector<4x222xf32>
    %149 = arith.mulf %131, %148 : vector<4x222xf32>
    %150 = vector.broadcast %4 : f32 to vector<4x222xf32>
    %151 = arith.mulf %133, %150 : vector<4x222xf32>
    %152 = vector.broadcast %5 : f32 to vector<4x222xf32>
    %153 = arith.mulf %135, %152 : vector<4x222xf32>
    %154 = vector.broadcast %6 : f32 to vector<4x222xf32>
    %155 = arith.mulf %137, %154 : vector<4x222xf32>
    %156 = vector.broadcast %7 : f32 to vector<4x222xf32>
    %157 = arith.mulf %139, %156 : vector<4x222xf32>
    %158 = vector.broadcast %8 : f32 to vector<4x222xf32>
    %159 = arith.mulf %141, %158 : vector<4x222xf32>
    %160 = arith.addf %143, %145 : vector<4x222xf32>
    %161 = arith.addf %147, %149 : vector<4x222xf32>
    %162 = arith.addf %151, %153 : vector<4x222xf32>
    %163 = arith.addf %155, %157 : vector<4x222xf32>
    %164 = arith.addf %160, %161 : vector<4x222xf32>
    %165 = arith.addf %162, %163 : vector<4x222xf32>
    %166 = arith.addf %164, %165 : vector<4x222xf32>
    %167 = arith.addf %166, %159 : vector<4x222xf32>
    %168 = vector.broadcast %36 : f32 to vector<4x222xf32>
    %169 = arith.addf %167, %168 : vector<4x222xf32>
    %c0_260 = arith.constant 0 : index
    %c0_261 = arith.constant 0 : index
    %170 = vector.load %arg7[%c0_260, %c0_261] : memref<16x222xf32, #tpu.memory_space<vmem>>, vector<4x222xf32>
    tpu.vector_store %arg7[%c0_260, %c0_261], %169 {strides = array<i32>} : memref<16x222xf32, #tpu.memory_space<vmem>>, vector<4x222xf32>,
    %171 = vector.broadcast %9 : f32 to vector<4x222xf32>
    %172 = arith.mulf %125, %171 : vector<4x222xf32>
    %173 = vector.broadcast %10 : f32 to vector<4x222xf32>
    %174 = arith.mulf %127, %173 : vector<4x222xf32>
    %175 = vector.broadcast %11 : f32 to vector<4x222xf32>
    %176 = arith.mulf %129, %175 : vector<4x222xf32>
    %177 = vector.broadcast %12 : f32 to vector<4x222xf32>
    %178 = arith.mulf %131, %177 : vector<4x222xf32>
    %179 = vector.broadcast %13 : f32 to vector<4x222xf32>
    %180 = arith.mulf %133, %179 : vector<4x222xf32>
    %181 = vector.broadcast %14 : f32 to vector<4x222xf32>
    %182 = arith.mulf %135, %181 : vector<4x222xf32>
    %183 = vector.broadcast %15 : f32 to vector<4x222xf32>
    %184 = arith.mulf %137, %183 : vector<4x222xf32>
    %185 = vector.broadcast %16 : f32 to vector<4x222xf32>
    %186 = arith.mulf %139, %185 : vector<4x222xf32>
    %187 = vector.broadcast %17 : f32 to vector<4x222xf32>
    %188 = arith.mulf %141, %187 : vector<4x222xf32>
    %189 = arith.addf %172, %174 : vector<4x222xf32>
    %190 = arith.addf %176, %178 : vector<4x222xf32>
    %191 = arith.addf %180, %182 : vector<4x222xf32>
    %192 = arith.addf %184, %186 : vector<4x222xf32>
    %193 = arith.addf %189, %190 : vector<4x222xf32>
    %194 = arith.addf %191, %192 : vector<4x222xf32>
    %195 = arith.addf %193, %194 : vector<4x222xf32>
    %196 = arith.addf %195, %188 : vector<4x222xf32>
    %197 = vector.broadcast %37 : f32 to vector<4x222xf32>
    %198 = arith.addf %196, %197 : vector<4x222xf32>
    %c4_262 = arith.constant 4 : index
    %c0_263 = arith.constant 0 : index
    %199 = vector.load %arg7[%c4_262, %c0_263] : memref<16x222xf32, #tpu.memory_space<vmem>>, vector<4x222xf32>
    tpu.vector_store %arg7[%c4_262, %c0_263], %198 {strides = array<i32>} : memref<16x222xf32, #tpu.memory_space<vmem>>, vector<4x222xf32>,
    %200 = vector.broadcast %18 : f32 to vector<4x222xf32>
    %201 = arith.mulf %125, %200 : vector<4x222xf32>
    %202 = vector.broadcast %19 : f32 to vector<4x222xf32>
    %203 = arith.mulf %127, %202 : vector<4x222xf32>
    %204 = vector.broadcast %20 : f32 to vector<4x222xf32>
    %205 = arith.mulf %129, %204 : vector<4x222xf32>
    %206 = vector.broadcast %21 : f32 to vector<4x222xf32>
    %207 = arith.mulf %131, %206 : vector<4x222xf32>
    %208 = vector.broadcast %22 : f32 to vector<4x222xf32>
    %209 = arith.mulf %133, %208 : vector<4x222xf32>
    %210 = vector.broadcast %23 : f32 to vector<4x222xf32>
    %211 = arith.mulf %135, %210 : vector<4x222xf32>
    %212 = vector.broadcast %24 : f32 to vector<4x222xf32>
    %213 = arith.mulf %137, %212 : vector<4x222xf32>
    %214 = vector.broadcast %25 : f32 to vector<4x222xf32>
    %215 = arith.mulf %139, %214 : vector<4x222xf32>
    %216 = vector.broadcast %26 : f32 to vector<4x222xf32>
    %217 = arith.mulf %141, %216 : vector<4x222xf32>
    %218 = arith.addf %201, %203 : vector<4x222xf32>
    %219 = arith.addf %205, %207 : vector<4x222xf32>
    %220 = arith.addf %209, %211 : vector<4x222xf32>
    %221 = arith.addf %213, %215 : vector<4x222xf32>
    %222 = arith.addf %218, %219 : vector<4x222xf32>
    %223 = arith.addf %220, %221 : vector<4x222xf32>
    %224 = arith.addf %222, %223 : vector<4x222xf32>
    %225 = arith.addf %224, %217 : vector<4x222xf32>
    %226 = vector.broadcast %38 : f32 to vector<4x222xf32>
    %227 = arith.addf %225, %226 : vector<4x222xf32>
    %c8_264 = arith.constant 8 : index
    %c0_265 = arith.constant 0 : index
    %228 = vector.load %arg7[%c8_264, %c0_265] : memref<16x222xf32, #tpu.memory_space<vmem>>, vector<4x222xf32>
    tpu.vector_store %arg7[%c8_264, %c0_265], %227 {strides = array<i32>} : memref<16x222xf32, #tpu.memory_space<vmem>>, vector<4x222xf32>,
    %229 = vector.broadcast %27 : f32 to vector<4x222xf32>
    %230 = arith.mulf %125, %229 : vector<4x222xf32>
    %231 = vector.broadcast %28 : f32 to vector<4x222xf32>
    %232 = arith.mulf %127, %231 : vector<4x222xf32>
    %233 = vector.broadcast %29 : f32 to vector<4x222xf32>
    %234 = arith.mulf %129, %233 : vector<4x222xf32>
    %235 = vector.broadcast %30 : f32 to vector<4x222xf32>
    %236 = arith.mulf %131, %235 : vector<4x222xf32>
    %237 = vector.broadcast %31 : f32 to vector<4x222xf32>
    %238 = arith.mulf %133, %237 : vector<4x222xf32>
    %239 = vector.broadcast %32 : f32 to vector<4x222xf32>
    %240 = arith.mulf %135, %239 : vector<4x222xf32>
    %241 = vector.broadcast %33 : f32 to vector<4x222xf32>
    %242 = arith.mulf %137, %241 : vector<4x222xf32>
    %243 = vector.broadcast %34 : f32 to vector<4x222xf32>
    %244 = arith.mulf %139, %243 : vector<4x222xf32>
    %245 = vector.broadcast %35 : f32 to vector<4x222xf32>
    %246 = arith.mulf %141, %245 : vector<4x222xf32>
    %247 = arith.addf %230, %232 : vector<4x222xf32>
    %248 = arith.addf %234, %236 : vector<4x222xf32>
    %249 = arith.addf %238, %240 : vector<4x222xf32>
    %250 = arith.addf %242, %244 : vector<4x222xf32>
    %251 = arith.addf %247, %248 : vector<4x222xf32>
    %252 = arith.addf %249, %250 : vector<4x222xf32>
    %253 = arith.addf %251, %252 : vector<4x222xf32>
    %254 = arith.addf %253, %246 : vector<4x222xf32>
    %255 = vector.broadcast %39 : f32 to vector<4x222xf32>
    %256 = arith.addf %254, %255 : vector<4x222xf32>
    %c12 = arith.constant 12 : index
    %c0_266 = arith.constant 0 : index
    %257 = vector.load %arg7[%c12, %c0_266] : memref<16x222xf32, #tpu.memory_space<vmem>>, vector<4x222xf32>
    tpu.vector_store %arg7[%c12, %c0_266], %256 {strides = array<i32>} : memref<16x222xf32, #tpu.memory_space<vmem>>, vector<4x222xf32>,
    %c0_267 = arith.constant 0 : index
    %c0_268 = arith.constant 0 : index
    %258 = vector.load %arg7[%c0_267, %c0_268] : memref<16x222xf32, #tpu.memory_space<vmem>>, vector<1x222xf32>
    %259 = vector.shape_cast %258 : vector<1x222xf32> to vector<222xf32>
    %c2_269 = arith.constant 2 : index
    %c0_270 = arith.constant 0 : index
    %260 = vector.load %arg7[%c2_269, %c0_270] : memref<16x222xf32, #tpu.memory_space<vmem>>, vector<1x222xf32>
    %261 = vector.shape_cast %260 : vector<1x222xf32> to vector<222xf32>
    %c4_271 = arith.constant 4 : index
    %c0_272 = arith.constant 0 : index
    %262 = vector.load %arg7[%c4_271, %c0_272] : memref<16x222xf32, #tpu.memory_space<vmem>>, vector<1x222xf32>
    %263 = vector.shape_cast %262 : vector<1x222xf32> to vector<222xf32>
    %c6_273 = arith.constant 6 : index
    %c0_274 = arith.constant 0 : index
    %264 = vector.load %arg7[%c6_273, %c0_274] : memref<16x222xf32, #tpu.memory_space<vmem>>, vector<1x222xf32>
    %265 = vector.shape_cast %264 : vector<1x222xf32> to vector<222xf32>
    %c8_275 = arith.constant 8 : index
    %c0_276 = arith.constant 0 : index
    %266 = vector.load %arg7[%c8_275, %c0_276] : memref<16x222xf32, #tpu.memory_space<vmem>>, vector<1x222xf32>
    %267 = vector.shape_cast %266 : vector<1x222xf32> to vector<222xf32>
    %c10 = arith.constant 10 : index
    %c0_277 = arith.constant 0 : index
    %268 = vector.load %arg7[%c10, %c0_277] : memref<16x222xf32, #tpu.memory_space<vmem>>, vector<1x222xf32>
    %269 = vector.shape_cast %268 : vector<1x222xf32> to vector<222xf32>
    %c12_278 = arith.constant 12 : index
    %c0_279 = arith.constant 0 : index
    %270 = vector.load %arg7[%c12_278, %c0_279] : memref<16x222xf32, #tpu.memory_space<vmem>>, vector<1x222xf32>
    %271 = vector.shape_cast %270 : vector<1x222xf32> to vector<222xf32>
    %c14 = arith.constant 14 : index
    %c0_280 = arith.constant 0 : index
    %272 = vector.load %arg7[%c14, %c0_280] : memref<16x222xf32, #tpu.memory_space<vmem>>, vector<1x222xf32>
    %273 = vector.shape_cast %272 : vector<1x222xf32> to vector<222xf32>
    %274 = vector.broadcast %40 : f32 to vector<222xf32>
    %275 = arith.mulf %259, %274 : vector<222xf32>
    %276 = vector.broadcast %49 : f32 to vector<222xf32>
    %277 = arith.mulf %261, %276 : vector<222xf32>
    %278 = vector.broadcast %58 : f32 to vector<222xf32>
    %279 = arith.mulf %263, %278 : vector<222xf32>
    %280 = vector.broadcast %67 : f32 to vector<222xf32>
    %281 = arith.mulf %265, %280 : vector<222xf32>
    %282 = vector.broadcast %76 : f32 to vector<222xf32>
    %283 = arith.mulf %267, %282 : vector<222xf32>
    %284 = vector.broadcast %85 : f32 to vector<222xf32>
    %285 = arith.mulf %269, %284 : vector<222xf32>
    %286 = vector.broadcast %94 : f32 to vector<222xf32>
    %287 = arith.mulf %271, %286 : vector<222xf32>
    %288 = vector.broadcast %103 : f32 to vector<222xf32>
    %289 = arith.mulf %273, %288 : vector<222xf32>
    %290 = arith.addf %275, %277 : vector<222xf32>
    %291 = arith.addf %279, %281 : vector<222xf32>
    %292 = arith.addf %283, %285 : vector<222xf32>
    %293 = arith.addf %287, %289 : vector<222xf32>
    %294 = arith.addf %290, %291 : vector<222xf32>
    %295 = arith.addf %292, %293 : vector<222xf32>
    %296 = arith.addf %294, %295 : vector<222xf32>
    %c0_281 = arith.constant 0 : index
    %c0_282 = arith.constant 0 : index
    %297 = vector.load %arg8[%c0_281, %c0_282] : memref<18x222xf32, #tpu.memory_space<vmem>>, vector<1x222xf32>
    %298 = vector.shape_cast %297 : vector<1x222xf32> to vector<222xf32>
    %299 = vector.shape_cast %296 : vector<222xf32> to vector<1x222xf32>
    tpu.vector_store %arg8[%c0_281, %c0_282], %299 {strides = array<i32>} : memref<18x222xf32, #tpu.memory_space<vmem>>, vector<1x222xf32>,
    %300 = vector.broadcast %41 : f32 to vector<222xf32>
    %301 = arith.mulf %259, %300 : vector<222xf32>
    %302 = vector.broadcast %50 : f32 to vector<222xf32>
    %303 = arith.mulf %261, %302 : vector<222xf32>
    %304 = vector.broadcast %59 : f32 to vector<222xf32>
    %305 = arith.mulf %263, %304 : vector<222xf32>
    %306 = vector.broadcast %68 : f32 to vector<222xf32>
    %307 = arith.mulf %265, %306 : vector<222xf32>
    %308 = vector.broadcast %77 : f32 to vector<222xf32>
    %309 = arith.mulf %267, %308 : vector<222xf32>
    %310 = vector.broadcast %86 : f32 to vector<222xf32>
    %311 = arith.mulf %269, %310 : vector<222xf32>
    %312 = vector.broadcast %95 : f32 to vector<222xf32>
    %313 = arith.mulf %271, %312 : vector<222xf32>
    %314 = vector.broadcast %104 : f32 to vector<222xf32>
    %315 = arith.mulf %273, %314 : vector<222xf32>
    %316 = arith.addf %301, %303 : vector<222xf32>
    %317 = arith.addf %305, %307 : vector<222xf32>
    %318 = arith.addf %309, %311 : vector<222xf32>
    %319 = arith.addf %313, %315 : vector<222xf32>
    %320 = arith.addf %316, %317 : vector<222xf32>
    %321 = arith.addf %318, %319 : vector<222xf32>
    %322 = arith.addf %320, %321 : vector<222xf32>
    %c1_283 = arith.constant 1 : index
    %c0_284 = arith.constant 0 : index
    %323 = vector.load %arg8[%c1_283, %c0_284] : memref<18x222xf32, #tpu.memory_space<vmem>>, vector<1x222xf32>
    %324 = vector.shape_cast %323 : vector<1x222xf32> to vector<222xf32>
    %325 = vector.shape_cast %322 : vector<222xf32> to vector<1x222xf32>
    tpu.vector_store %arg8[%c1_283, %c0_284], %325 {strides = array<i32>} : memref<18x222xf32, #tpu.memory_space<vmem>>, vector<1x222xf32>,
    %326 = vector.broadcast %42 : f32 to vector<222xf32>
    %327 = arith.mulf %259, %326 : vector<222xf32>
    %328 = vector.broadcast %51 : f32 to vector<222xf32>
    %329 = arith.mulf %261, %328 : vector<222xf32>
    %330 = vector.broadcast %60 : f32 to vector<222xf32>
    %331 = arith.mulf %263, %330 : vector<222xf32>
    %332 = vector.broadcast %69 : f32 to vector<222xf32>
    %333 = arith.mulf %265, %332 : vector<222xf32>
    %334 = vector.broadcast %78 : f32 to vector<222xf32>
    %335 = arith.mulf %267, %334 : vector<222xf32>
    %336 = vector.broadcast %87 : f32 to vector<222xf32>
    %337 = arith.mulf %269, %336 : vector<222xf32>
    %338 = vector.broadcast %96 : f32 to vector<222xf32>
    %339 = arith.mulf %271, %338 : vector<222xf32>
    %340 = vector.broadcast %105 : f32 to vector<222xf32>
    %341 = arith.mulf %273, %340 : vector<222xf32>
    %342 = arith.addf %327, %329 : vector<222xf32>
    %343 = arith.addf %331, %333 : vector<222xf32>
    %344 = arith.addf %335, %337 : vector<222xf32>
    %345 = arith.addf %339, %341 : vector<222xf32>
    %346 = arith.addf %342, %343 : vector<222xf32>
    %347 = arith.addf %344, %345 : vector<222xf32>
    %348 = arith.addf %346, %347 : vector<222xf32>
    %c2_285 = arith.constant 2 : index
    %c0_286 = arith.constant 0 : index
    %349 = vector.load %arg8[%c2_285, %c0_286] : memref<18x222xf32, #tpu.memory_space<vmem>>, vector<1x222xf32>
    %350 = vector.shape_cast %349 : vector<1x222xf32> to vector<222xf32>
    %351 = vector.shape_cast %348 : vector<222xf32> to vector<1x222xf32>
    tpu.vector_store %arg8[%c2_285, %c0_286], %351 {strides = array<i32>} : memref<18x222xf32, #tpu.memory_space<vmem>>, vector<1x222xf32>,
    %352 = vector.broadcast %43 : f32 to vector<222xf32>
    %353 = arith.mulf %259, %352 : vector<222xf32>
    %354 = vector.broadcast %52 : f32 to vector<222xf32>
    %355 = arith.mulf %261, %354 : vector<222xf32>
    %356 = vector.broadcast %61 : f32 to vector<222xf32>
    %357 = arith.mulf %263, %356 : vector<222xf32>
    %358 = vector.broadcast %70 : f32 to vector<222xf32>
    %359 = arith.mulf %265, %358 : vector<222xf32>
    %360 = vector.broadcast %79 : f32 to vector<222xf32>
    %361 = arith.mulf %267, %360 : vector<222xf32>
    %362 = vector.broadcast %88 : f32 to vector<222xf32>
    %363 = arith.mulf %269, %362 : vector<222xf32>
    %364 = vector.broadcast %97 : f32 to vector<222xf32>
    %365 = arith.mulf %271, %364 : vector<222xf32>
    %366 = vector.broadcast %106 : f32 to vector<222xf32>
    %367 = arith.mulf %273, %366 : vector<222xf32>
    %368 = arith.addf %353, %355 : vector<222xf32>
    %369 = arith.addf %357, %359 : vector<222xf32>
    %370 = arith.addf %361, %363 : vector<222xf32>
    %371 = arith.addf %365, %367 : vector<222xf32>
    %372 = arith.addf %368, %369 : vector<222xf32>
    %373 = arith.addf %370, %371 : vector<222xf32>
    %374 = arith.addf %372, %373 : vector<222xf32>
    %c6_287 = arith.constant 6 : index
    %c0_288 = arith.constant 0 : index
    %375 = vector.load %arg8[%c6_287, %c0_288] : memref<18x222xf32, #tpu.memory_space<vmem>>, vector<1x222xf32>
    %376 = vector.shape_cast %375 : vector<1x222xf32> to vector<222xf32>
    %377 = vector.shape_cast %374 : vector<222xf32> to vector<1x222xf32>
    tpu.vector_store %arg8[%c6_287, %c0_288], %377 {strides = array<i32>} : memref<18x222xf32, #tpu.memory_space<vmem>>, vector<1x222xf32>,
    %378 = vector.broadcast %44 : f32 to vector<222xf32>
    %379 = arith.mulf %259, %378 : vector<222xf32>
    %380 = vector.broadcast %53 : f32 to vector<222xf32>
    %381 = arith.mulf %261, %380 : vector<222xf32>
    %382 = vector.broadcast %62 : f32 to vector<222xf32>
    %383 = arith.mulf %263, %382 : vector<222xf32>
    %384 = vector.broadcast %71 : f32 to vector<222xf32>
    %385 = arith.mulf %265, %384 : vector<222xf32>
    %386 = vector.broadcast %80 : f32 to vector<222xf32>
    %387 = arith.mulf %267, %386 : vector<222xf32>
    %388 = vector.broadcast %89 : f32 to vector<222xf32>
    %389 = arith.mulf %269, %388 : vector<222xf32>
    %390 = vector.broadcast %98 : f32 to vector<222xf32>
    %391 = arith.mulf %271, %390 : vector<222xf32>
    %392 = vector.broadcast %107 : f32 to vector<222xf32>
    %393 = arith.mulf %273, %392 : vector<222xf32>
    %394 = arith.addf %379, %381 : vector<222xf32>
    %395 = arith.addf %383, %385 : vector<222xf32>
    %396 = arith.addf %387, %389 : vector<222xf32>
    %397 = arith.addf %391, %393 : vector<222xf32>
    %398 = arith.addf %394, %395 : vector<222xf32>
    %399 = arith.addf %396, %397 : vector<222xf32>
    %400 = arith.addf %398, %399 : vector<222xf32>
    %c7_289 = arith.constant 7 : index
    %c0_290 = arith.constant 0 : index
    %401 = vector.load %arg8[%c7_289, %c0_290] : memref<18x222xf32, #tpu.memory_space<vmem>>, vector<1x222xf32>
    %402 = vector.shape_cast %401 : vector<1x222xf32> to vector<222xf32>
    %403 = vector.shape_cast %400 : vector<222xf32> to vector<1x222xf32>
    tpu.vector_store %arg8[%c7_289, %c0_290], %403 {strides = array<i32>} : memref<18x222xf32, #tpu.memory_space<vmem>>, vector<1x222xf32>,
    %404 = vector.broadcast %45 : f32 to vector<222xf32>
    %405 = arith.mulf %259, %404 : vector<222xf32>
    %406 = vector.broadcast %54 : f32 to vector<222xf32>
    %407 = arith.mulf %261, %406 : vector<222xf32>
    %408 = vector.broadcast %63 : f32 to vector<222xf32>
    %409 = arith.mulf %263, %408 : vector<222xf32>
    %410 = vector.broadcast %72 : f32 to vector<222xf32>
    %411 = arith.mulf %265, %410 : vector<222xf32>
    %412 = vector.broadcast %81 : f32 to vector<222xf32>
    %413 = arith.mulf %267, %412 : vector<222xf32>
    %414 = vector.broadcast %90 : f32 to vector<222xf32>
    %415 = arith.mulf %269, %414 : vector<222xf32>
    %416 = vector.broadcast %99 : f32 to vector<222xf32>
    %417 = arith.mulf %271, %416 : vector<222xf32>
    %418 = vector.broadcast %108 : f32 to vector<222xf32>
    %419 = arith.mulf %273, %418 : vector<222xf32>
    %420 = arith.addf %405, %407 : vector<222xf32>
    %421 = arith.addf %409, %411 : vector<222xf32>
    %422 = arith.addf %413, %415 : vector<222xf32>
    %423 = arith.addf %417, %419 : vector<222xf32>
    %424 = arith.addf %420, %421 : vector<222xf32>
    %425 = arith.addf %422, %423 : vector<222xf32>
    %426 = arith.addf %424, %425 : vector<222xf32>
    %c8_291 = arith.constant 8 : index
    %c0_292 = arith.constant 0 : index
    %427 = vector.load %arg8[%c8_291, %c0_292] : memref<18x222xf32, #tpu.memory_space<vmem>>, vector<1x222xf32>
    %428 = vector.shape_cast %427 : vector<1x222xf32> to vector<222xf32>
    %429 = vector.shape_cast %426 : vector<222xf32> to vector<1x222xf32>
    tpu.vector_store %arg8[%c8_291, %c0_292], %429 {strides = array<i32>} : memref<18x222xf32, #tpu.memory_space<vmem>>, vector<1x222xf32>,
    %430 = vector.broadcast %46 : f32 to vector<222xf32>
    %431 = arith.mulf %259, %430 : vector<222xf32>
    %432 = vector.broadcast %55 : f32 to vector<222xf32>
    %433 = arith.mulf %261, %432 : vector<222xf32>
    %434 = vector.broadcast %64 : f32 to vector<222xf32>
    %435 = arith.mulf %263, %434 : vector<222xf32>
    %436 = vector.broadcast %73 : f32 to vector<222xf32>
    %437 = arith.mulf %265, %436 : vector<222xf32>
    %438 = vector.broadcast %82 : f32 to vector<222xf32>
    %439 = arith.mulf %267, %438 : vector<222xf32>
    %440 = vector.broadcast %91 : f32 to vector<222xf32>
    %441 = arith.mulf %269, %440 : vector<222xf32>
    %442 = vector.broadcast %100 : f32 to vector<222xf32>
    %443 = arith.mulf %271, %442 : vector<222xf32>
    %444 = vector.broadcast %109 : f32 to vector<222xf32>
    %445 = arith.mulf %273, %444 : vector<222xf32>
    %446 = arith.addf %431, %433 : vector<222xf32>
    %447 = arith.addf %435, %437 : vector<222xf32>
    %448 = arith.addf %439, %441 : vector<222xf32>
    %449 = arith.addf %443, %445 : vector<222xf32>
    %450 = arith.addf %446, %447 : vector<222xf32>
    %451 = arith.addf %448, %449 : vector<222xf32>
    %452 = arith.addf %450, %451 : vector<222xf32>
    %c12_293 = arith.constant 12 : index
    %c0_294 = arith.constant 0 : index
    %453 = vector.load %arg8[%c12_293, %c0_294] : memref<18x222xf32, #tpu.memory_space<vmem>>, vector<1x222xf32>
    %454 = vector.shape_cast %453 : vector<1x222xf32> to vector<222xf32>
    %455 = vector.shape_cast %452 : vector<222xf32> to vector<1x222xf32>
    tpu.vector_store %arg8[%c12_293, %c0_294], %455 {strides = array<i32>} : memref<18x222xf32, #tpu.memory_space<vmem>>, vector<1x222xf32>,
    %456 = vector.broadcast %47 : f32 to vector<222xf32>
    %457 = arith.mulf %259, %456 : vector<222xf32>
    %458 = vector.broadcast %56 : f32 to vector<222xf32>
    %459 = arith.mulf %261, %458 : vector<222xf32>
    %460 = vector.broadcast %65 : f32 to vector<222xf32>
    %461 = arith.mulf %263, %460 : vector<222xf32>
    %462 = vector.broadcast %74 : f32 to vector<222xf32>
    %463 = arith.mulf %265, %462 : vector<222xf32>
    %464 = vector.broadcast %83 : f32 to vector<222xf32>
    %465 = arith.mulf %267, %464 : vector<222xf32>
    %466 = vector.broadcast %92 : f32 to vector<222xf32>
    %467 = arith.mulf %269, %466 : vector<222xf32>
    %468 = vector.broadcast %101 : f32 to vector<222xf32>
    %469 = arith.mulf %271, %468 : vector<222xf32>
    %470 = vector.broadcast %110 : f32 to vector<222xf32>
    %471 = arith.mulf %273, %470 : vector<222xf32>
    %472 = arith.addf %457, %459 : vector<222xf32>
    %473 = arith.addf %461, %463 : vector<222xf32>
    %474 = arith.addf %465, %467 : vector<222xf32>
    %475 = arith.addf %469, %471 : vector<222xf32>
    %476 = arith.addf %472, %473 : vector<222xf32>
    %477 = arith.addf %474, %475 : vector<222xf32>
    %478 = arith.addf %476, %477 : vector<222xf32>
    %c13 = arith.constant 13 : index
    %c0_295 = arith.constant 0 : index
    %479 = vector.load %arg8[%c13, %c0_295] : memref<18x222xf32, #tpu.memory_space<vmem>>, vector<1x222xf32>
    %480 = vector.shape_cast %479 : vector<1x222xf32> to vector<222xf32>
    %481 = vector.shape_cast %478 : vector<222xf32> to vector<1x222xf32>
    tpu.vector_store %arg8[%c13, %c0_295], %481 {strides = array<i32>} : memref<18x222xf32, #tpu.memory_space<vmem>>, vector<1x222xf32>,
    %482 = vector.broadcast %48 : f32 to vector<222xf32>
    %483 = arith.mulf %259, %482 : vector<222xf32>
    %484 = vector.broadcast %57 : f32 to vector<222xf32>
    %485 = arith.mulf %261, %484 : vector<222xf32>
    %486 = vector.broadcast %66 : f32 to vector<222xf32>
    %487 = arith.mulf %263, %486 : vector<222xf32>
    %488 = vector.broadcast %75 : f32 to vector<222xf32>
    %489 = arith.mulf %265, %488 : vector<222xf32>
    %490 = vector.broadcast %84 : f32 to vector<222xf32>
    %491 = arith.mulf %267, %490 : vector<222xf32>
    %492 = vector.broadcast %93 : f32 to vector<222xf32>
    %493 = arith.mulf %269, %492 : vector<222xf32>
    %494 = vector.broadcast %102 : f32 to vector<222xf32>
    %495 = arith.mulf %271, %494 : vector<222xf32>
    %496 = vector.broadcast %111 : f32 to vector<222xf32>
    %497 = arith.mulf %273, %496 : vector<222xf32>
    %498 = arith.addf %483, %485 : vector<222xf32>
    %499 = arith.addf %487, %489 : vector<222xf32>
    %500 = arith.addf %491, %493 : vector<222xf32>
    %501 = arith.addf %495, %497 : vector<222xf32>
    %502 = arith.addf %498, %499 : vector<222xf32>
    %503 = arith.addf %500, %501 : vector<222xf32>
    %504 = arith.addf %502, %503 : vector<222xf32>
    %c14_296 = arith.constant 14 : index
    %c0_297 = arith.constant 0 : index
    %505 = vector.load %arg8[%c14_296, %c0_297] : memref<18x222xf32, #tpu.memory_space<vmem>>, vector<1x222xf32>
    %506 = vector.shape_cast %505 : vector<1x222xf32> to vector<222xf32>
    %507 = vector.shape_cast %504 : vector<222xf32> to vector<1x222xf32>
    tpu.vector_store %arg8[%c14_296, %c0_297], %507 {strides = array<i32>} : memref<18x222xf32, #tpu.memory_space<vmem>>, vector<1x222xf32>,
    %c1_298 = arith.constant 1 : index
    %c0_299 = arith.constant 0 : index
    %508 = vector.load %arg7[%c1_298, %c0_299] : memref<16x222xf32, #tpu.memory_space<vmem>>, vector<1x222xf32>
    %509 = vector.shape_cast %508 : vector<1x222xf32> to vector<222xf32>
    %c3_300 = arith.constant 3 : index
    %c0_301 = arith.constant 0 : index
    %510 = vector.load %arg7[%c3_300, %c0_301] : memref<16x222xf32, #tpu.memory_space<vmem>>, vector<1x222xf32>
    %511 = vector.shape_cast %510 : vector<1x222xf32> to vector<222xf32>
    %c5_302 = arith.constant 5 : index
    %c0_303 = arith.constant 0 : index
    %512 = vector.load %arg7[%c5_302, %c0_303] : memref<16x222xf32, #tpu.memory_space<vmem>>, vector<1x222xf32>
    %513 = vector.shape_cast %512 : vector<1x222xf32> to vector<222xf32>
    %c7_304 = arith.constant 7 : index
    %c0_305 = arith.constant 0 : index
    %514 = vector.load %arg7[%c7_304, %c0_305] : memref<16x222xf32, #tpu.memory_space<vmem>>, vector<1x222xf32>
    %515 = vector.shape_cast %514 : vector<1x222xf32> to vector<222xf32>
    %c9 = arith.constant 9 : index
    %c0_306 = arith.constant 0 : index
    %516 = vector.load %arg7[%c9, %c0_306] : memref<16x222xf32, #tpu.memory_space<vmem>>, vector<1x222xf32>
    %517 = vector.shape_cast %516 : vector<1x222xf32> to vector<222xf32>
    %c11 = arith.constant 11 : index
    %c0_307 = arith.constant 0 : index
    %518 = vector.load %arg7[%c11, %c0_307] : memref<16x222xf32, #tpu.memory_space<vmem>>, vector<1x222xf32>
    %519 = vector.shape_cast %518 : vector<1x222xf32> to vector<222xf32>
    %c13_308 = arith.constant 13 : index
    %c0_309 = arith.constant 0 : index
    %520 = vector.load %arg7[%c13_308, %c0_309] : memref<16x222xf32, #tpu.memory_space<vmem>>, vector<1x222xf32>
    %521 = vector.shape_cast %520 : vector<1x222xf32> to vector<222xf32>
    %c15 = arith.constant 15 : index
    %c0_310 = arith.constant 0 : index
    %522 = vector.load %arg7[%c15, %c0_310] : memref<16x222xf32, #tpu.memory_space<vmem>>, vector<1x222xf32>
    %523 = vector.shape_cast %522 : vector<1x222xf32> to vector<222xf32>
    %524 = vector.broadcast %40 : f32 to vector<222xf32>
    %525 = arith.mulf %509, %524 : vector<222xf32>
    %526 = vector.broadcast %49 : f32 to vector<222xf32>
    %527 = arith.mulf %511, %526 : vector<222xf32>
    %528 = vector.broadcast %58 : f32 to vector<222xf32>
    %529 = arith.mulf %513, %528 : vector<222xf32>
    %530 = vector.broadcast %67 : f32 to vector<222xf32>
    %531 = arith.mulf %515, %530 : vector<222xf32>
    %532 = vector.broadcast %76 : f32 to vector<222xf32>
    %533 = arith.mulf %517, %532 : vector<222xf32>
    %534 = vector.broadcast %85 : f32 to vector<222xf32>
    %535 = arith.mulf %519, %534 : vector<222xf32>
    %536 = vector.broadcast %94 : f32 to vector<222xf32>
    %537 = arith.mulf %521, %536 : vector<222xf32>
    %538 = vector.broadcast %103 : f32 to vector<222xf32>
    %539 = arith.mulf %523, %538 : vector<222xf32>
    %540 = arith.addf %525, %527 : vector<222xf32>
    %541 = arith.addf %529, %531 : vector<222xf32>
    %542 = arith.addf %533, %535 : vector<222xf32>
    %543 = arith.addf %537, %539 : vector<222xf32>
    %544 = arith.addf %540, %541 : vector<222xf32>
    %545 = arith.addf %542, %543 : vector<222xf32>
    %546 = arith.addf %544, %545 : vector<222xf32>
    %c3_311 = arith.constant 3 : index
    %c0_312 = arith.constant 0 : index
    %547 = vector.load %arg8[%c3_311, %c0_312] : memref<18x222xf32, #tpu.memory_space<vmem>>, vector<1x222xf32>
    %548 = vector.shape_cast %547 : vector<1x222xf32> to vector<222xf32>
    %549 = vector.shape_cast %546 : vector<222xf32> to vector<1x222xf32>
    tpu.vector_store %arg8[%c3_311, %c0_312], %549 {strides = array<i32>} : memref<18x222xf32, #tpu.memory_space<vmem>>, vector<1x222xf32>,
    %550 = vector.broadcast %41 : f32 to vector<222xf32>
    %551 = arith.mulf %509, %550 : vector<222xf32>
    %552 = vector.broadcast %50 : f32 to vector<222xf32>
    %553 = arith.mulf %511, %552 : vector<222xf32>
    %554 = vector.broadcast %59 : f32 to vector<222xf32>
    %555 = arith.mulf %513, %554 : vector<222xf32>
    %556 = vector.broadcast %68 : f32 to vector<222xf32>
    %557 = arith.mulf %515, %556 : vector<222xf32>
    %558 = vector.broadcast %77 : f32 to vector<222xf32>
    %559 = arith.mulf %517, %558 : vector<222xf32>
    %560 = vector.broadcast %86 : f32 to vector<222xf32>
    %561 = arith.mulf %519, %560 : vector<222xf32>
    %562 = vector.broadcast %95 : f32 to vector<222xf32>
    %563 = arith.mulf %521, %562 : vector<222xf32>
    %564 = vector.broadcast %104 : f32 to vector<222xf32>
    %565 = arith.mulf %523, %564 : vector<222xf32>
    %566 = arith.addf %551, %553 : vector<222xf32>
    %567 = arith.addf %555, %557 : vector<222xf32>
    %568 = arith.addf %559, %561 : vector<222xf32>
    %569 = arith.addf %563, %565 : vector<222xf32>
    %570 = arith.addf %566, %567 : vector<222xf32>
    %571 = arith.addf %568, %569 : vector<222xf32>
    %572 = arith.addf %570, %571 : vector<222xf32>
    %c4_313 = arith.constant 4 : index
    %c0_314 = arith.constant 0 : index
    %573 = vector.load %arg8[%c4_313, %c0_314] : memref<18x222xf32, #tpu.memory_space<vmem>>, vector<1x222xf32>
    %574 = vector.shape_cast %573 : vector<1x222xf32> to vector<222xf32>
    %575 = vector.shape_cast %572 : vector<222xf32> to vector<1x222xf32>
    tpu.vector_store %arg8[%c4_313, %c0_314], %575 {strides = array<i32>} : memref<18x222xf32, #tpu.memory_space<vmem>>, vector<1x222xf32>,
    %576 = vector.broadcast %42 : f32 to vector<222xf32>
    %577 = arith.mulf %509, %576 : vector<222xf32>
    %578 = vector.broadcast %51 : f32 to vector<222xf32>
    %579 = arith.mulf %511, %578 : vector<222xf32>
    %580 = vector.broadcast %60 : f32 to vector<222xf32>
    %581 = arith.mulf %513, %580 : vector<222xf32>
    %582 = vector.broadcast %69 : f32 to vector<222xf32>
    %583 = arith.mulf %515, %582 : vector<222xf32>
    %584 = vector.broadcast %78 : f32 to vector<222xf32>
    %585 = arith.mulf %517, %584 : vector<222xf32>
    %586 = vector.broadcast %87 : f32 to vector<222xf32>
    %587 = arith.mulf %519, %586 : vector<222xf32>
    %588 = vector.broadcast %96 : f32 to vector<222xf32>
    %589 = arith.mulf %521, %588 : vector<222xf32>
    %590 = vector.broadcast %105 : f32 to vector<222xf32>
    %591 = arith.mulf %523, %590 : vector<222xf32>
    %592 = arith.addf %577, %579 : vector<222xf32>
    %593 = arith.addf %581, %583 : vector<222xf32>
    %594 = arith.addf %585, %587 : vector<222xf32>
    %595 = arith.addf %589, %591 : vector<222xf32>
    %596 = arith.addf %592, %593 : vector<222xf32>
    %597 = arith.addf %594, %595 : vector<222xf32>
    %598 = arith.addf %596, %597 : vector<222xf32>
    %c5_315 = arith.constant 5 : index
    %c0_316 = arith.constant 0 : index
    %599 = vector.load %arg8[%c5_315, %c0_316] : memref<18x222xf32, #tpu.memory_space<vmem>>, vector<1x222xf32>
    %600 = vector.shape_cast %599 : vector<1x222xf32> to vector<222xf32>
    %601 = vector.shape_cast %598 : vector<222xf32> to vector<1x222xf32>
    tpu.vector_store %arg8[%c5_315, %c0_316], %601 {strides = array<i32>} : memref<18x222xf32, #tpu.memory_space<vmem>>, vector<1x222xf32>,
    %602 = vector.broadcast %43 : f32 to vector<222xf32>
    %603 = arith.mulf %509, %602 : vector<222xf32>
    %604 = vector.broadcast %52 : f32 to vector<222xf32>
    %605 = arith.mulf %511, %604 : vector<222xf32>
    %606 = vector.broadcast %61 : f32 to vector<222xf32>
    %607 = arith.mulf %513, %606 : vector<222xf32>
    %608 = vector.broadcast %70 : f32 to vector<222xf32>
    %609 = arith.mulf %515, %608 : vector<222xf32>
    %610 = vector.broadcast %79 : f32 to vector<222xf32>
    %611 = arith.mulf %517, %610 : vector<222xf32>
    %612 = vector.broadcast %88 : f32 to vector<222xf32>
    %613 = arith.mulf %519, %612 : vector<222xf32>
    %614 = vector.broadcast %97 : f32 to vector<222xf32>
    %615 = arith.mulf %521, %614 : vector<222xf32>
    %616 = vector.broadcast %106 : f32 to vector<222xf32>
    %617 = arith.mulf %523, %616 : vector<222xf32>
    %618 = arith.addf %603, %605 : vector<222xf32>
    %619 = arith.addf %607, %609 : vector<222xf32>
    %620 = arith.addf %611, %613 : vector<222xf32>
    %621 = arith.addf %615, %617 : vector<222xf32>
    %622 = arith.addf %618, %619 : vector<222xf32>
    %623 = arith.addf %620, %621 : vector<222xf32>
    %624 = arith.addf %622, %623 : vector<222xf32>
    %c9_317 = arith.constant 9 : index
    %c0_318 = arith.constant 0 : index
    %625 = vector.load %arg8[%c9_317, %c0_318] : memref<18x222xf32, #tpu.memory_space<vmem>>, vector<1x222xf32>
    %626 = vector.shape_cast %625 : vector<1x222xf32> to vector<222xf32>
    %627 = vector.shape_cast %624 : vector<222xf32> to vector<1x222xf32>
    tpu.vector_store %arg8[%c9_317, %c0_318], %627 {strides = array<i32>} : memref<18x222xf32, #tpu.memory_space<vmem>>, vector<1x222xf32>,
    %628 = vector.broadcast %44 : f32 to vector<222xf32>
    %629 = arith.mulf %509, %628 : vector<222xf32>
    %630 = vector.broadcast %53 : f32 to vector<222xf32>
    %631 = arith.mulf %511, %630 : vector<222xf32>
    %632 = vector.broadcast %62 : f32 to vector<222xf32>
    %633 = arith.mulf %513, %632 : vector<222xf32>
    %634 = vector.broadcast %71 : f32 to vector<222xf32>
    %635 = arith.mulf %515, %634 : vector<222xf32>
    %636 = vector.broadcast %80 : f32 to vector<222xf32>
    %637 = arith.mulf %517, %636 : vector<222xf32>
    %638 = vector.broadcast %89 : f32 to vector<222xf32>
    %639 = arith.mulf %519, %638 : vector<222xf32>
    %640 = vector.broadcast %98 : f32 to vector<222xf32>
    %641 = arith.mulf %521, %640 : vector<222xf32>
    %642 = vector.broadcast %107 : f32 to vector<222xf32>
    %643 = arith.mulf %523, %642 : vector<222xf32>
    %644 = arith.addf %629, %631 : vector<222xf32>
    %645 = arith.addf %633, %635 : vector<222xf32>
    %646 = arith.addf %637, %639 : vector<222xf32>
    %647 = arith.addf %641, %643 : vector<222xf32>
    %648 = arith.addf %644, %645 : vector<222xf32>
    %649 = arith.addf %646, %647 : vector<222xf32>
    %650 = arith.addf %648, %649 : vector<222xf32>
    %c10_319 = arith.constant 10 : index
    %c0_320 = arith.constant 0 : index
    %651 = vector.load %arg8[%c10_319, %c0_320] : memref<18x222xf32, #tpu.memory_space<vmem>>, vector<1x222xf32>
    %652 = vector.shape_cast %651 : vector<1x222xf32> to vector<222xf32>
    %653 = vector.shape_cast %650 : vector<222xf32> to vector<1x222xf32>
    tpu.vector_store %arg8[%c10_319, %c0_320], %653 {strides = array<i32>} : memref<18x222xf32, #tpu.memory_space<vmem>>, vector<1x222xf32>,
    %654 = vector.broadcast %45 : f32 to vector<222xf32>
    %655 = arith.mulf %509, %654 : vector<222xf32>
    %656 = vector.broadcast %54 : f32 to vector<222xf32>
    %657 = arith.mulf %511, %656 : vector<222xf32>
    %658 = vector.broadcast %63 : f32 to vector<222xf32>
    %659 = arith.mulf %513, %658 : vector<222xf32>
    %660 = vector.broadcast %72 : f32 to vector<222xf32>
    %661 = arith.mulf %515, %660 : vector<222xf32>
    %662 = vector.broadcast %81 : f32 to vector<222xf32>
    %663 = arith.mulf %517, %662 : vector<222xf32>
    %664 = vector.broadcast %90 : f32 to vector<222xf32>
    %665 = arith.mulf %519, %664 : vector<222xf32>
    %666 = vector.broadcast %99 : f32 to vector<222xf32>
    %667 = arith.mulf %521, %666 : vector<222xf32>
    %668 = vector.broadcast %108 : f32 to vector<222xf32>
    %669 = arith.mulf %523, %668 : vector<222xf32>
    %670 = arith.addf %655, %657 : vector<222xf32>
    %671 = arith.addf %659, %661 : vector<222xf32>
    %672 = arith.addf %663, %665 : vector<222xf32>
    %673 = arith.addf %667, %669 : vector<222xf32>
    %674 = arith.addf %670, %671 : vector<222xf32>
    %675 = arith.addf %672, %673 : vector<222xf32>
    %676 = arith.addf %674, %675 : vector<222xf32>
    %c11_321 = arith.constant 11 : index
    %c0_322 = arith.constant 0 : index
    %677 = vector.load %arg8[%c11_321, %c0_322] : memref<18x222xf32, #tpu.memory_space<vmem>>, vector<1x222xf32>
    %678 = vector.shape_cast %677 : vector<1x222xf32> to vector<222xf32>
    %679 = vector.shape_cast %676 : vector<222xf32> to vector<1x222xf32>
    tpu.vector_store %arg8[%c11_321, %c0_322], %679 {strides = array<i32>} : memref<18x222xf32, #tpu.memory_space<vmem>>, vector<1x222xf32>,
    %680 = vector.broadcast %46 : f32 to vector<222xf32>
    %681 = arith.mulf %509, %680 : vector<222xf32>
    %682 = vector.broadcast %55 : f32 to vector<222xf32>
    %683 = arith.mulf %511, %682 : vector<222xf32>
    %684 = vector.broadcast %64 : f32 to vector<222xf32>
    %685 = arith.mulf %513, %684 : vector<222xf32>
    %686 = vector.broadcast %73 : f32 to vector<222xf32>
    %687 = arith.mulf %515, %686 : vector<222xf32>
    %688 = vector.broadcast %82 : f32 to vector<222xf32>
    %689 = arith.mulf %517, %688 : vector<222xf32>
    %690 = vector.broadcast %91 : f32 to vector<222xf32>
    %691 = arith.mulf %519, %690 : vector<222xf32>
    %692 = vector.broadcast %100 : f32 to vector<222xf32>
    %693 = arith.mulf %521, %692 : vector<222xf32>
    %694 = vector.broadcast %109 : f32 to vector<222xf32>
    %695 = arith.mulf %523, %694 : vector<222xf32>
    %696 = arith.addf %681, %683 : vector<222xf32>
    %697 = arith.addf %685, %687 : vector<222xf32>
    %698 = arith.addf %689, %691 : vector<222xf32>
    %699 = arith.addf %693, %695 : vector<222xf32>
    %700 = arith.addf %696, %697 : vector<222xf32>
    %701 = arith.addf %698, %699 : vector<222xf32>
    %702 = arith.addf %700, %701 : vector<222xf32>
    %c15_323 = arith.constant 15 : index
    %c0_324 = arith.constant 0 : index
    %703 = vector.load %arg8[%c15_323, %c0_324] : memref<18x222xf32, #tpu.memory_space<vmem>>, vector<1x222xf32>
    %704 = vector.shape_cast %703 : vector<1x222xf32> to vector<222xf32>
    %705 = vector.shape_cast %702 : vector<222xf32> to vector<1x222xf32>
    tpu.vector_store %arg8[%c15_323, %c0_324], %705 {strides = array<i32>} : memref<18x222xf32, #tpu.memory_space<vmem>>, vector<1x222xf32>,
    %706 = vector.broadcast %47 : f32 to vector<222xf32>
    %707 = arith.mulf %509, %706 : vector<222xf32>
    %708 = vector.broadcast %56 : f32 to vector<222xf32>
    %709 = arith.mulf %511, %708 : vector<222xf32>
    %710 = vector.broadcast %65 : f32 to vector<222xf32>
    %711 = arith.mulf %513, %710 : vector<222xf32>
    %712 = vector.broadcast %74 : f32 to vector<222xf32>
    %713 = arith.mulf %515, %712 : vector<222xf32>
    %714 = vector.broadcast %83 : f32 to vector<222xf32>
    %715 = arith.mulf %517, %714 : vector<222xf32>
    %716 = vector.broadcast %92 : f32 to vector<222xf32>
    %717 = arith.mulf %519, %716 : vector<222xf32>
    %718 = vector.broadcast %101 : f32 to vector<222xf32>
    %719 = arith.mulf %521, %718 : vector<222xf32>
    %720 = vector.broadcast %110 : f32 to vector<222xf32>
    %721 = arith.mulf %523, %720 : vector<222xf32>
    %722 = arith.addf %707, %709 : vector<222xf32>
    %723 = arith.addf %711, %713 : vector<222xf32>
    %724 = arith.addf %715, %717 : vector<222xf32>
    %725 = arith.addf %719, %721 : vector<222xf32>
    %726 = arith.addf %722, %723 : vector<222xf32>
    %727 = arith.addf %724, %725 : vector<222xf32>
    %728 = arith.addf %726, %727 : vector<222xf32>
    %c16_325 = arith.constant 16 : index
    %c0_326 = arith.constant 0 : index
    %729 = vector.load %arg8[%c16_325, %c0_326] : memref<18x222xf32, #tpu.memory_space<vmem>>, vector<1x222xf32>
    %730 = vector.shape_cast %729 : vector<1x222xf32> to vector<222xf32>
    %731 = vector.shape_cast %728 : vector<222xf32> to vector<1x222xf32>
    tpu.vector_store %arg8[%c16_325, %c0_326], %731 {strides = array<i32>} : memref<18x222xf32, #tpu.memory_space<vmem>>, vector<1x222xf32>,
    %732 = vector.broadcast %48 : f32 to vector<222xf32>
    %733 = arith.mulf %509, %732 : vector<222xf32>
    %734 = vector.broadcast %57 : f32 to vector<222xf32>
    %735 = arith.mulf %511, %734 : vector<222xf32>
    %736 = vector.broadcast %66 : f32 to vector<222xf32>
    %737 = arith.mulf %513, %736 : vector<222xf32>
    %738 = vector.broadcast %75 : f32 to vector<222xf32>
    %739 = arith.mulf %515, %738 : vector<222xf32>
    %740 = vector.broadcast %84 : f32 to vector<222xf32>
    %741 = arith.mulf %517, %740 : vector<222xf32>
    %742 = vector.broadcast %93 : f32 to vector<222xf32>
    %743 = arith.mulf %519, %742 : vector<222xf32>
    %744 = vector.broadcast %102 : f32 to vector<222xf32>
    %745 = arith.mulf %521, %744 : vector<222xf32>
    %746 = vector.broadcast %111 : f32 to vector<222xf32>
    %747 = arith.mulf %523, %746 : vector<222xf32>
    %748 = arith.addf %733, %735 : vector<222xf32>
    %749 = arith.addf %737, %739 : vector<222xf32>
    %750 = arith.addf %741, %743 : vector<222xf32>
    %751 = arith.addf %745, %747 : vector<222xf32>
    %752 = arith.addf %748, %749 : vector<222xf32>
    %753 = arith.addf %750, %751 : vector<222xf32>
    %754 = arith.addf %752, %753 : vector<222xf32>
    %c17_327 = arith.constant 17 : index
    %c0_328 = arith.constant 0 : index
    %755 = vector.load %arg8[%c17_327, %c0_328] : memref<18x222xf32, #tpu.memory_space<vmem>>, vector<1x222xf32>
    %756 = vector.shape_cast %755 : vector<1x222xf32> to vector<222xf32>
    %757 = vector.shape_cast %754 : vector<222xf32> to vector<1x222xf32>
    tpu.vector_store %arg8[%c17_327, %c0_328], %757 {strides = array<i32>} : memref<18x222xf32, #tpu.memory_space<vmem>>, vector<1x222xf32>,
    %c0_329 = arith.constant 0 : index
    %c0_330 = arith.constant 0 : index
    %758 = vector.load %arg8[%c0_329, %c0_330] : memref<18x222xf32, #tpu.memory_space<vmem>>, vector<1x222xf32>
    %759 = vector.shape_cast %758 : vector<1x222xf32> to vector<222xf32>
    %c3_331 = arith.constant 3 : index
    %c0_332 = arith.constant 0 : index
    %760 = vector.load %arg8[%c3_331, %c0_332] : memref<18x222xf32, #tpu.memory_space<vmem>>, vector<1x222xf32>
    %761 = vector.shape_cast %760 : vector<1x222xf32> to vector<222xf32>
    %c6_333 = arith.constant 6 : index
    %c0_334 = arith.constant 0 : index
    %762 = vector.load %arg8[%c6_333, %c0_334] : memref<18x222xf32, #tpu.memory_space<vmem>>, vector<1x222xf32>
    %763 = vector.shape_cast %762 : vector<1x222xf32> to vector<222xf32>
    %c9_335 = arith.constant 9 : index
    %c0_336 = arith.constant 0 : index
    %764 = vector.load %arg8[%c9_335, %c0_336] : memref<18x222xf32, #tpu.memory_space<vmem>>, vector<1x222xf32>
    %765 = vector.shape_cast %764 : vector<1x222xf32> to vector<222xf32>
    %c12_337 = arith.constant 12 : index
    %c0_338 = arith.constant 0 : index
    %766 = vector.load %arg8[%c12_337, %c0_338] : memref<18x222xf32, #tpu.memory_space<vmem>>, vector<1x222xf32>
    %767 = vector.shape_cast %766 : vector<1x222xf32> to vector<222xf32>
    %c15_339 = arith.constant 15 : index
    %c0_340 = arith.constant 0 : index
    %768 = vector.load %arg8[%c15_339, %c0_340] : memref<18x222xf32, #tpu.memory_space<vmem>>, vector<1x222xf32>
    %769 = vector.shape_cast %768 : vector<1x222xf32> to vector<222xf32>
    %770 = vector.broadcast %112 : f32 to vector<222xf32>
    %771 = arith.mulf %759, %770 : vector<222xf32>
    %772 = vector.broadcast %114 : f32 to vector<222xf32>
    %773 = arith.mulf %761, %772 : vector<222xf32>
    %774 = vector.broadcast %116 : f32 to vector<222xf32>
    %775 = arith.mulf %763, %774 : vector<222xf32>
    %776 = vector.broadcast %118 : f32 to vector<222xf32>
    %777 = arith.mulf %765, %776 : vector<222xf32>
    %778 = vector.broadcast %120 : f32 to vector<222xf32>
    %779 = arith.mulf %767, %778 : vector<222xf32>
    %780 = vector.broadcast %122 : f32 to vector<222xf32>
    %781 = arith.mulf %769, %780 : vector<222xf32>
    %782 = arith.addf %771, %773 : vector<222xf32>
    %783 = arith.addf %775, %777 : vector<222xf32>
    %784 = arith.addf %779, %781 : vector<222xf32>
    %785 = arith.addf %782, %783 : vector<222xf32>
    %786 = arith.addf %785, %784 : vector<222xf32>
    %c0_341 = arith.constant 0 : index
    %c0_342 = arith.constant 0 : index
    %c0_343 = arith.constant 0 : index
    %787 = vector.load %arg6[%c0_341, %c0_342, %c0_343] : memref<1x6x256xf32, #tpu.memory_space<vmem>>, vector<1x1x222xf32>
    %788 = vector.shape_cast %787 : vector<1x1x222xf32> to vector<222xf32>
    %789 = vector.shape_cast %786 : vector<222xf32> to vector<1x1x222xf32>
    tpu.vector_store %arg6[%c0_341, %c0_342, %c0_343], %789 {strides = array<i32>} : memref<1x6x256xf32, #tpu.memory_space<vmem>>, vector<1x1x222xf32>,
    %790 = vector.broadcast %113 : f32 to vector<222xf32>
    %791 = arith.mulf %759, %790 : vector<222xf32>
    %792 = vector.broadcast %115 : f32 to vector<222xf32>
    %793 = arith.mulf %761, %792 : vector<222xf32>
    %794 = vector.broadcast %117 : f32 to vector<222xf32>
    %795 = arith.mulf %763, %794 : vector<222xf32>
    %796 = vector.broadcast %119 : f32 to vector<222xf32>
    %797 = arith.mulf %765, %796 : vector<222xf32>
    %798 = vector.broadcast %121 : f32 to vector<222xf32>
    %799 = arith.mulf %767, %798 : vector<222xf32>
    %800 = vector.broadcast %123 : f32 to vector<222xf32>
    %801 = arith.mulf %769, %800 : vector<222xf32>
    %802 = arith.addf %791, %793 : vector<222xf32>
    %803 = arith.addf %795, %797 : vector<222xf32>
    %804 = arith.addf %799, %801 : vector<222xf32>
    %805 = arith.addf %802, %803 : vector<222xf32>
    %806 = arith.addf %805, %804 : vector<222xf32>
    %c0_344 = arith.constant 0 : index
    %c1_345 = arith.constant 1 : index
    %c0_346 = arith.constant 0 : index
    %807 = vector.load %arg6[%c0_344, %c1_345, %c0_346] : memref<1x6x256xf32, #tpu.memory_space<vmem>>, vector<1x1x222xf32>
    %808 = vector.shape_cast %807 : vector<1x1x222xf32> to vector<222xf32>
    %809 = vector.shape_cast %806 : vector<222xf32> to vector<1x1x222xf32>
    tpu.vector_store %arg6[%c0_344, %c1_345, %c0_346], %809 {strides = array<i32>} : memref<1x6x256xf32, #tpu.memory_space<vmem>>, vector<1x1x222xf32>,
    %c1_347 = arith.constant 1 : index
    %c0_348 = arith.constant 0 : index
    %810 = vector.load %arg8[%c1_347, %c0_348] : memref<18x222xf32, #tpu.memory_space<vmem>>, vector<1x222xf32>
    %811 = vector.shape_cast %810 : vector<1x222xf32> to vector<222xf32>
    %c4_349 = arith.constant 4 : index
    %c0_350 = arith.constant 0 : index
    %812 = vector.load %arg8[%c4_349, %c0_350] : memref<18x222xf32, #tpu.memory_space<vmem>>, vector<1x222xf32>
    %813 = vector.shape_cast %812 : vector<1x222xf32> to vector<222xf32>
    %c7_351 = arith.constant 7 : index
    %c0_352 = arith.constant 0 : index
    %814 = vector.load %arg8[%c7_351, %c0_352] : memref<18x222xf32, #tpu.memory_space<vmem>>, vector<1x222xf32>
    %815 = vector.shape_cast %814 : vector<1x222xf32> to vector<222xf32>
    %c10_353 = arith.constant 10 : index
    %c0_354 = arith.constant 0 : index
    %816 = vector.load %arg8[%c10_353, %c0_354] : memref<18x222xf32, #tpu.memory_space<vmem>>, vector<1x222xf32>
    %817 = vector.shape_cast %816 : vector<1x222xf32> to vector<222xf32>
    %c13_355 = arith.constant 13 : index
    %c0_356 = arith.constant 0 : index
    %818 = vector.load %arg8[%c13_355, %c0_356] : memref<18x222xf32, #tpu.memory_space<vmem>>, vector<1x222xf32>
    %819 = vector.shape_cast %818 : vector<1x222xf32> to vector<222xf32>
    %c16_357 = arith.constant 16 : index
    %c0_358 = arith.constant 0 : index
    %820 = vector.load %arg8[%c16_357, %c0_358] : memref<18x222xf32, #tpu.memory_space<vmem>>, vector<1x222xf32>
    %821 = vector.shape_cast %820 : vector<1x222xf32> to vector<222xf32>
    %822 = vector.broadcast %112 : f32 to vector<222xf32>
    %823 = arith.mulf %811, %822 : vector<222xf32>
    %824 = vector.broadcast %114 : f32 to vector<222xf32>
    %825 = arith.mulf %813, %824 : vector<222xf32>
    %826 = vector.broadcast %116 : f32 to vector<222xf32>
    %827 = arith.mulf %815, %826 : vector<222xf32>
    %828 = vector.broadcast %118 : f32 to vector<222xf32>
    %829 = arith.mulf %817, %828 : vector<222xf32>
    %830 = vector.broadcast %120 : f32 to vector<222xf32>
    %831 = arith.mulf %819, %830 : vector<222xf32>
    %832 = vector.broadcast %122 : f32 to vector<222xf32>
    %833 = arith.mulf %821, %832 : vector<222xf32>
    %834 = arith.addf %823, %825 : vector<222xf32>
    %835 = arith.addf %827, %829 : vector<222xf32>
    %836 = arith.addf %831, %833 : vector<222xf32>
    %837 = arith.addf %834, %835 : vector<222xf32>
    %838 = arith.addf %837, %836 : vector<222xf32>
    %c0_359 = arith.constant 0 : index
    %c2_360 = arith.constant 2 : index
    %c0_361 = arith.constant 0 : index
    %839 = vector.load %arg6[%c0_359, %c2_360, %c0_361] : memref<1x6x256xf32, #tpu.memory_space<vmem>>, vector<1x1x222xf32>
    %840 = vector.shape_cast %839 : vector<1x1x222xf32> to vector<222xf32>
    %841 = vector.shape_cast %838 : vector<222xf32> to vector<1x1x222xf32>
    tpu.vector_store %arg6[%c0_359, %c2_360, %c0_361], %841 {strides = array<i32>} : memref<1x6x256xf32, #tpu.memory_space<vmem>>, vector<1x1x222xf32>,
    %842 = vector.broadcast %113 : f32 to vector<222xf32>
    %843 = arith.mulf %811, %842 : vector<222xf32>
    %844 = vector.broadcast %115 : f32 to vector<222xf32>
    %845 = arith.mulf %813, %844 : vector<222xf32>
    %846 = vector.broadcast %117 : f32 to vector<222xf32>
    %847 = arith.mulf %815, %846 : vector<222xf32>
    %848 = vector.broadcast %119 : f32 to vector<222xf32>
    %849 = arith.mulf %817, %848 : vector<222xf32>
    %850 = vector.broadcast %121 : f32 to vector<222xf32>
    %851 = arith.mulf %819, %850 : vector<222xf32>
    %852 = vector.broadcast %123 : f32 to vector<222xf32>
    %853 = arith.mulf %821, %852 : vector<222xf32>
    %854 = arith.addf %843, %845 : vector<222xf32>
    %855 = arith.addf %847, %849 : vector<222xf32>
    %856 = arith.addf %851, %853 : vector<222xf32>
    %857 = arith.addf %854, %855 : vector<222xf32>
    %858 = arith.addf %857, %856 : vector<222xf32>
    %c0_362 = arith.constant 0 : index
    %c3_363 = arith.constant 3 : index
    %c0_364 = arith.constant 0 : index
    %859 = vector.load %arg6[%c0_362, %c3_363, %c0_364] : memref<1x6x256xf32, #tpu.memory_space<vmem>>, vector<1x1x222xf32>
    %860 = vector.shape_cast %859 : vector<1x1x222xf32> to vector<222xf32>
    %861 = vector.shape_cast %858 : vector<222xf32> to vector<1x1x222xf32>
    tpu.vector_store %arg6[%c0_362, %c3_363, %c0_364], %861 {strides = array<i32>} : memref<1x6x256xf32, #tpu.memory_space<vmem>>, vector<1x1x222xf32>,
    %c2_365 = arith.constant 2 : index
    %c0_366 = arith.constant 0 : index
    %862 = vector.load %arg8[%c2_365, %c0_366] : memref<18x222xf32, #tpu.memory_space<vmem>>, vector<1x222xf32>
    %863 = vector.shape_cast %862 : vector<1x222xf32> to vector<222xf32>
    %c5_367 = arith.constant 5 : index
    %c0_368 = arith.constant 0 : index
    %864 = vector.load %arg8[%c5_367, %c0_368] : memref<18x222xf32, #tpu.memory_space<vmem>>, vector<1x222xf32>
    %865 = vector.shape_cast %864 : vector<1x222xf32> to vector<222xf32>
    %c8_369 = arith.constant 8 : index
    %c0_370 = arith.constant 0 : index
    %866 = vector.load %arg8[%c8_369, %c0_370] : memref<18x222xf32, #tpu.memory_space<vmem>>, vector<1x222xf32>
    %867 = vector.shape_cast %866 : vector<1x222xf32> to vector<222xf32>
    %c11_371 = arith.constant 11 : index
    %c0_372 = arith.constant 0 : index
    %868 = vector.load %arg8[%c11_371, %c0_372] : memref<18x222xf32, #tpu.memory_space<vmem>>, vector<1x222xf32>
    %869 = vector.shape_cast %868 : vector<1x222xf32> to vector<222xf32>
    %c14_373 = arith.constant 14 : index
    %c0_374 = arith.constant 0 : index
    %870 = vector.load %arg8[%c14_373, %c0_374] : memref<18x222xf32, #tpu.memory_space<vmem>>, vector<1x222xf32>
    %871 = vector.shape_cast %870 : vector<1x222xf32> to vector<222xf32>
    %c17_375 = arith.constant 17 : index
    %c0_376 = arith.constant 0 : index
    %872 = vector.load %arg8[%c17_375, %c0_376] : memref<18x222xf32, #tpu.memory_space<vmem>>, vector<1x222xf32>
    %873 = vector.shape_cast %872 : vector<1x222xf32> to vector<222xf32>
    %874 = vector.broadcast %112 : f32 to vector<222xf32>
    %875 = arith.mulf %863, %874 : vector<222xf32>
    %876 = vector.broadcast %114 : f32 to vector<222xf32>
    %877 = arith.mulf %865, %876 : vector<222xf32>
    %878 = vector.broadcast %116 : f32 to vector<222xf32>
    %879 = arith.mulf %867, %878 : vector<222xf32>
    %880 = vector.broadcast %118 : f32 to vector<222xf32>
    %881 = arith.mulf %869, %880 : vector<222xf32>
    %882 = vector.broadcast %120 : f32 to vector<222xf32>
    %883 = arith.mulf %871, %882 : vector<222xf32>
    %884 = vector.broadcast %122 : f32 to vector<222xf32>
    %885 = arith.mulf %873, %884 : vector<222xf32>
    %886 = arith.addf %875, %877 : vector<222xf32>
    %887 = arith.addf %879, %881 : vector<222xf32>
    %888 = arith.addf %883, %885 : vector<222xf32>
    %889 = arith.addf %886, %887 : vector<222xf32>
    %890 = arith.addf %889, %888 : vector<222xf32>
    %c0_377 = arith.constant 0 : index
    %c4_378 = arith.constant 4 : index
    %c0_379 = arith.constant 0 : index
    %891 = vector.load %arg6[%c0_377, %c4_378, %c0_379] : memref<1x6x256xf32, #tpu.memory_space<vmem>>, vector<1x1x222xf32>
    %892 = vector.shape_cast %891 : vector<1x1x222xf32> to vector<222xf32>
    %893 = vector.shape_cast %890 : vector<222xf32> to vector<1x1x222xf32>
    tpu.vector_store %arg6[%c0_377, %c4_378, %c0_379], %893 {strides = array<i32>} : memref<1x6x256xf32, #tpu.memory_space<vmem>>, vector<1x1x222xf32>,
    %894 = vector.broadcast %113 : f32 to vector<222xf32>
    %895 = arith.mulf %863, %894 : vector<222xf32>
    %896 = vector.broadcast %115 : f32 to vector<222xf32>
    %897 = arith.mulf %865, %896 : vector<222xf32>
    %898 = vector.broadcast %117 : f32 to vector<222xf32>
    %899 = arith.mulf %867, %898 : vector<222xf32>
    %900 = vector.broadcast %119 : f32 to vector<222xf32>
    %901 = arith.mulf %869, %900 : vector<222xf32>
    %902 = vector.broadcast %121 : f32 to vector<222xf32>
    %903 = arith.mulf %871, %902 : vector<222xf32>
    %904 = vector.broadcast %123 : f32 to vector<222xf32>
    %905 = arith.mulf %873, %904 : vector<222xf32>
    %906 = arith.addf %895, %897 : vector<222xf32>
    %907 = arith.addf %899, %901 : vector<222xf32>
    %908 = arith.addf %903, %905 : vector<222xf32>
    %909 = arith.addf %906, %907 : vector<222xf32>
    %910 = arith.addf %909, %908 : vector<222xf32>
    %c0_380 = arith.constant 0 : index
    %c5_381 = arith.constant 5 : index
    %c0_382 = arith.constant 0 : index
    %911 = vector.load %arg6[%c0_380, %c5_381, %c0_382] : memref<1x6x256xf32, #tpu.memory_space<vmem>>, vector<1x1x222xf32>
    %912 = vector.shape_cast %911 : vector<1x1x222xf32> to vector<222xf32>
    %913 = vector.shape_cast %910 : vector<222xf32> to vector<1x1x222xf32>
    tpu.vector_store %arg6[%c0_380, %c5_381, %c0_382], %913 {strides = array<i32>} : memref<1x6x256xf32, #tpu.memory_space<vmem>>, vector<1x1x222xf32>,
    return
  }
  func.func @transform_0(%arg0: i32) -> (i32, i32, i32) {
    %c0_i32 = arith.constant 0 : i32
    %c0_i32_0 = arith.constant 0 : i32
    %c0_i32_1 = arith.constant 0 : i32
    return %arg0, %c0_i32, %c0_i32_0 : i32, i32, i32
  }
  func.func @transform_1(%arg0: i32) -> (i32, i32) {
    %c0_i32 = arith.constant 0 : i32
    %c0_i32_0 = arith.constant 0 : i32
    %c0_i32_1 = arith.constant 0 : i32
    return %c0_i32, %c0_i32_0 : i32, i32
  }
  func.func @transform_2(%arg0: i32) -> (i32, i32) {
    %c0_i32 = arith.constant 0 : i32
    %c0_i32_0 = arith.constant 0 : i32
    %c0_i32_1 = arith.constant 0 : i32
    return %c0_i32, %c0_i32_0 : i32, i32
  }
  func.func @transform_3(%arg0: i32) -> (i32, i32) {
    %c0_i32 = arith.constant 0 : i32
    %c0_i32_0 = arith.constant 0 : i32
    %c0_i32_1 = arith.constant 0 : i32
    return %c0_i32, %c0_i32_0 : i32, i32
  }
  func.func @transform_4(%arg0: i32) -> (i32, i32) {
    %c0_i32 = arith.constant 0 : i32
    %c0_i32_0 = arith.constant 0 : i32
    %c0_i32_1 = arith.constant 0 : i32
    return %c0_i32, %c0_i32_0 : i32, i32
  }
  func.func @transform_5(%arg0: i32) -> (i32, i32, i32) {
    %c0_i32 = arith.constant 0 : i32
    %c0_i32_0 = arith.constant 0 : i32
    %c0_i32_1 = arith.constant 0 : i32
    return %arg0, %c0_i32, %c0_i32_0 : i32, i32, i32
  }
}

</mosaic_0001>

<bundles_post_ra>
// kernel: ttcl_forward.1
= control target key start
LH: loop header
LB: loop body
LE: loop exit
PB: predicated region body
PF: predicated region fallthrough
CT: control target
= control target key end

     0   :  { %s2811_s0 = inlined_call_operand.vmem [shape: f32[2,4,256], index: 0, kind: input, shape index: {}]   ;;  %s2812_s1 = inlined_call_operand.vmem [shape: f32[4,9], index: 1, kind: input, shape index: {}]   ;;  %s2813_s2 = inlined_call_operand.vmem [shape: f32[1,4], index: 2, kind: input, shape index: {}]   ;;  %s2814_s3 = inlined_call_operand.vmem [shape: f32[8,9], index: 3, kind: input, shape index: {}]   ;;  %s2815_s4 = inlined_call_operand.vmem [shape: f32[6,2], index: 4, kind: input, shape index: {}]   ;;  %s2816_s5 = inlined_call_operand.vmem [shape: f32[2,6,256], index: 5, kind: output, shape index: {}]  }
   0x1   :  { %3002 = sst [smem:[#allocation123_spill]] %s2811_s0 }
   0x2   :  { %3003 = sst [smem:[#allocation124_spill]] %s2812_s1 }
   0x3   :  { %3004 = sst [smem:[#allocation125_spill]] %s2813_s2 }
   0x4   :  { %3005 = sst [smem:[#allocation126_spill]] %s2814_s3 }
   0x5   :  { %3006 = sst [smem:[#allocation127_spill]] %s2815_s4 }
   0x6   :  { %3007 = sst [smem:[#allocation128_spill]] %s2816_s5 }
   0x7   :  { %10 = vsyncpa [#allocation5], 0 }
   0x8   :  { %11 = vsyncpa [#allocation7], 0 }
   0x9   :  { %12 = vsyncpa [#allocation10], 0  ;;  %s1694_s18 = smov 0  }
   0xa LB: > { %3008 = sst [smem:[#allocation14_spill]] %s1652_s18  ;;  %s3009_s2 = sld [smem:[#allocation125_spill]]  ;;  %s1652_s18 = sphi %s1694_s18, %s18_s18  }
   0xb   : > { %s1703_s22 = sadd.s32 4294967295, %s1652_s18   ;;  %p1375_p0 = scmp.ge.s32.totalorder %s1652_s18, 1 }
   0xc   : > { %p159_p1 = scmp.lt.s32.totalorder %s1652_s18, 3  ;;  %p1548_p2 = scmp.eq.s32.totalorder %s1703_s22, 0 }
   0xd   : > { %s3011_s1 = sld [smem:[#allocation124_spill]]  ;;  %s3012_s3 = sld [smem:[#allocation126_spill]] }
   0xe   : > { %p1708_p3 = pnand %p1375_p0, %p159_p1  ;;  %s3014_s4 = sld [smem:[#allocation127_spill]] }
  0x10   : > { %s183_s21 = sshll.u32 %s3009_s2, 4  ;;  %p1535_p4 = pneg %p1708_p3  ;;  %s184_s21 = int_to_ptr.vmem [resolvable:$true] %s183_s21 }
  0x11   : > { %s1574_s9 = scalar_lea.vmem %s184_s21, 16  ;;  %p1582_p10 = scmp.lt.s32.totalorder %s184_s21, %s184_s21 }
  0x12   : > { %p1726_p5 = pnand %p1548_p2, %p1535_p4  ;;  %p1575_p6 = scmp.ne.s32.totalorder %s184_s21, %s1574_s9 }
  0x13   : > { %s172_s26 = sshll.u32 %s3011_s1, 4  ;;  %s194_s29 = sshll.u32 %s3012_s3, 4  ;;  %s1715_s26 = int_to_ptr.vmem [resolvable:$true] %s172_s26  ;;  %s1722_s29 = int_to_ptr.vmem [resolvable:$true] %s194_s29 }
  0x14   : > { %s205_s8 = sshll.u32 %s3014_s4, 4  ;;  %p1576_p7 = pneg %p1726_p5  ;;  %s1733_s8 = int_to_ptr.vmem [resolvable:$true] %s205_s8 }
  0x15   : > { %p1583_p11 = scmp.lt.s32.totalorder %s1574_s9, %s1574_s9 }
  0x16   : > { %p1577_p8 = pnand %p1576_p7, %p1575_p6 }
  0x17   : > { %p1584_p12 = por %p1583_p11, %p1582_p10 }
  0x18   : > { %p1578_p9 = pneg %p1577_p8 }
  0x1a   : > { %p1585_p13 = pnand %p1584_p12, %p1578_p9 }
  0x1c   : > { %1588 = shalt.err (!%p1585_p13)
}
  0x1d   : > { %s1654_s10 = smov [#allocation6]   ;;  %s1589_s11 = scalar_lea.vmem %s1715_s26, 64 }
  0x1e   : > { %1541 = dma.vmem_to_smem (!%p1726_p5), %s184_s21, 16, %s1654_s10, [#allocation7]  }
  0x1f   : > { %p1590_p0 = scmp.ne.s32.totalorder %s1715_s26, %s1589_s11  ;;  %p1597_p6 = scmp.lt.s32.totalorder %s1715_s26, %s1715_s26 }
  0x20   : > { %p1598_p8 = scmp.lt.s32.totalorder %s1589_s11, %s1589_s11 }
  0x21   : > { %p1592_p1 = pnand %p1590_p0, %p1576_p7 }
  0x22   : > { %p1599_p10 = por %p1598_p8, %p1597_p6 }
  0x23   : > { %p1593_p4 = pneg %p1592_p1 }
  0x25   : > { %p1600_p9 = pnand %p1599_p10, %p1593_p4 }
  0x27   : > { %1603 = shalt.err (!%p1600_p9)
}
  0x28   : > { %s1655_s12 = smov [#allocation4]   ;;  %s1604_s13 = scalar_lea.vmem %s1722_s29, 128 }
  0x29   : > { %1538 = dma.vmem_to_smem (!%p1726_p5), %s1715_s26, 64, %s1655_s12, [#allocation5]  }
  0x2a   : > { %p1605_p11 = scmp.ne.s32.totalorder %s1722_s29, %s1604_s13  ;;  %p1612_p0 = scmp.lt.s32.totalorder %s1722_s29, %s1722_s29 }
  0x2b   : > { %p1613_p1 = scmp.lt.s32.totalorder %s1604_s13, %s1604_s13 }
  0x2c   : > { %p1607_p12 = pnand %p1605_p11, %p1576_p7 }
  0x2d   : > { %p1614_p4 = por %p1613_p1, %p1612_p0 }
  0x2e   : > { %p1608_p13 = pneg %p1607_p12 }
  0x30   : > { %p1615_p6 = pnand %p1614_p4, %p1608_p13 }
  0x32   : > { %1618 = shalt.err (!%p1615_p6)
}
  0x33   : > { %s1656_s14 = smov [#allocation8]   ;;  %s1619_s15 = scalar_lea.vmem %s1733_s8, 128 }
  0x34   : > { %1544 = dma.vmem_to_smem (!%p1726_p5), %s1722_s29, 128, %s1656_s14, [#allocation7]  }
  0x35   : > { %p1620_p8 = scmp.ne.s32.totalorder %s1733_s8, %s1619_s15  ;;  %p1627_p11 = scmp.lt.s32.totalorder %s1733_s8, %s1733_s8 }
  0x36   : > { %p1628_p12 = scmp.lt.s32.totalorder %s1619_s15, %s1619_s15 }
  0x37   : > { %p1622_p10 = pnand %p1620_p8, %p1576_p7 }
  0x38   : > { %p1629_p13 = por %p1628_p12, %p1627_p11 }
  0x39   : > { %p1623_p9 = pneg %p1622_p10 }
  0x3b   : > { %p1630_p0 = pnand %p1629_p13, %p1623_p9 }
  0x3d   : > { %1633 = shalt.err (!%p1630_p0)
}
  0x3e   : > { %s1657_s16 = smov [#allocation9]   ;;  %226 = sbr.rel (%p1708_p3) target bundleno = 577 (0x241), region = 40 }
  0x3f   : > { %1547 = dma.vmem_to_smem (!%p1726_p5), %s1733_s8, 128, %s1657_s16, [#allocation10]  }
  0x45   : > { %1639 = dma.done.wait (%p1548_p2), [#allocation5], 64  }
  0x46   : > { %1641 = vsyncadd (%p1548_p2), [#allocation5], 4294967232 }
  0x47   : > { %1643 = dma.done.wait (%p1548_p2), [#allocation7], 144  }
  0x48   : > { %1645 = vsyncadd (%p1548_p2), [#allocation7], 4294967152 }
  0x49   : > { %1647 = dma.done.wait (%p1548_p2), [#allocation10], 128  }
  0x4a   : > { %1649 = vsyncadd (%p1548_p2), [#allocation10], 4294967168 }
  0x4b   : > { %244 = sfence }
  0x4c   : > { %p267_p3 = scmp.lt.s32.totalorder %s1703_s22, 1  ;;  %s1396_s17 = sld [smem:[#allocation4 + $0x7]]  ;;  %vm424_vm0 = vcmask 1039360   ;;  %vm432_vm1 = vcmask 932864   ;;  %vm462_vm2 = vcmask 924672   ;;  %vm478_vm3 = vcmask 769024  }
  0x4d   : > { %s1414_s19 = sld [smem:[#allocation4 + $0x107]]  ;;  %s1392_s24 = sld [smem:[#allocation4 + $0x3]]  ;;  %vm454_vm4 = vcmask 1031168   ;;  %vm470_vm5 = vcmask 908288   ;;  %vm488_vm6 = vcmask 764928   ;;  %vm570_vm7 = vcmask 769028  }
  0x4e   : > { %s3355_s22 = smov (!%p267_p3, %s1703_s22), 1  ;;  %s1405_s20 = sld [smem:[#allocation4 + $0x87]] }
  0x4f   : > { %3015 = sst [smem:[#allocation15_spill]] %s3355_s22  ;;  %s1423_s21 = sld [smem:[#allocation4 + $0x187]] }
  0x50   : > { %s1517_s23 = sshll.u32 %s3355_s22, 3  ;;  %s3016_s0 = sld [smem:[#allocation123_spill]] }
  0x51   : > { %s1401_s28 = sld [smem:[#allocation4 + $0x83]]  ;;  %s1394_s29 = sld [smem:[#allocation4 + $0x5]] }
  0x52   : > { %v416_v1 = vstv %s1396_s17  ;;  %s1403_s30 = sld [smem:[#allocation4 + $0x85]]  ;;  %s1658_s6 = smov 127  }
  0x53   : > { %v586_v3 = vstv %s1414_s19  ;;  %v408_v9 = vstv %s1392_s24  ;;  %s1410_s7 = sld [smem:[#allocation4 + $0x103]]  ;;  %s1412_s8 = sld [smem:[#allocation4 + $0x105]] }
  0x54   : > { %v504_v5 = vstv %s1405_s20  ;;  %s1419_s9 = sld [smem:[#allocation4 + $0x183]]  ;;  %s1421_s10 = sld [smem:[#allocation4 + $0x185]] }
  0x55   : > { %v667_v6 = vstv %s1423_s21  ;;  %s1659_s11 = smov 114   ;;  %s1395_s12 = sld [smem:[#allocation4 + $0x6]] }
  0x56   : > { %s271_s27 = scalar_lea.vmem %s3016_s0, %s1517_s23  ;;  %s1413_s13 = sld [smem:[#allocation4 + $0x106]] }
  0x57   : > { %v1794_v0 = vld [vmem:[%s271_s27] sm:$0xff]  ;;  %v412_v11 = vstv %s1394_s29  ;;  %v496_v12 = vstv %s1401_s28  ;;  %s1404_s14 = sld [smem:[#allocation4 + $0x86]]  ;;  %s1818_s16 = sld [smem:[#allocation4 + $0x1]] }
  0x58   : > { %v417_v2 = vmul.f32 %v416_v1, %v1794_v0  ;;  %v587_v4 = vmul.f32 %v586_v3, %v1794_v0  ;;  %v505_v7 = vmul.f32 %v504_v5, %v1794_v0  ;;  %v668_v8 = vmul.f32 %v667_v6, %v1794_v0  ;;  %s1816_s15 = sld [smem:[#allocation4 + $0x186]]  ;;  %s1822_s17 = sld [smem:[#allocation4 + $0x81]] }
  0x59   : > { %v409_v10 = vmul.f32 %v408_v9, %v1794_v0  ;;  %v413_v13 = vmul.f32 %v412_v11, %v1794_v0  ;;  %v500_v14 = vstv %s1403_s30  ;;  %v497_v15 = vmul.f32 %v496_v12, %v1794_v0  ;;  %s1824_s19 = sld [smem:[#allocation4 + $0x101]]  ;;  %s1660_s20 = smov 113  }
  0x5a   : > { %444 = vrot.lane.b32.xlu0 %v417_v2, %s1658_s6  ;;  %612 = vrot.lane.b32.xlu1 %v587_v4, %s1658_s6  ;;  %v578_v16 = vstv %s1410_s7  ;;  %v501_v17 = vmul.f32 %v500_v14, %v1794_v0  ;;  %v582_v18 = vstv %s1412_s8  ;;  %s1830_s21 = sld [smem:[#allocation4 + $0x2]]  ;;  %s1834_s23 = sld [smem:[#allocation4 + $0x181]] }
  0x5b   : > { %v579_v19 = vmul.f32 %v578_v16, %v1794_v0  ;;  %v659_v20 = vstv %s1419_s9  ;;  %v583_v21 = vmul.f32 %v582_v18, %v1794_v0  ;;  %v663_v22 = vstv %s1421_s10  ;;  %s1836_s24 = sld [smem:[#allocation4 + $0x8]]  ;;  %s1400_s25 = sld [smem:[#allocation4 + $0x82]] }
  0x5c   : > { %v660_v23 = vmul.f32 %v659_v20, %v1794_v0  ;;  %v664_v24 = vmul.f32 %v663_v22, %v1794_v0  ;;  %v414_v25 = vstv %s1395_s12  ;;  %v584_v29 = vstv %s1413_s13  ;;  %s1841_s26 = sld [smem:[#allocation4 + $0x102]]  ;;  %s1406_s27 = sld [smem:[#allocation4 + $0x88]] }
  0x5d   : > { %v415_v27 = vmul.f32 %v414_v25, %v1794_v0  ;;  %v502_v31 = vstv %s1404_s14  ;;  %v585_v35 = vmul.f32 %v584_v29, %v1794_v0  ;;  %v404_v44 = vstv %s1818_s16  ;;  %s1418_s28 = sld [smem:[#allocation4 + $0x182]]  ;;  %s1661_s29 = smov 94  }
  0x5e   : > { %530 = vrot.lane.b32.xlu0 %v505_v7, %s1658_s6  ;;  %693 = vrot.lane.b32.xlu1 %v668_v8, %s1658_s6  ;;  %v503_v36 = vmul.f32 %v502_v31, %v1794_v0  ;;  %v665_v40 = vstv %s1816_s15  ;;  %v405_v50 = vmul.f32 %v404_v44, %v1794_v0  ;;  %v492_v51 = vstv %s1822_s17  ;;  %s1662_s30 = smov 126   ;;  %s1402_s7 = sld [smem:[#allocation4 + $0x84]] }
  0x5f   : > { %v666_v47 = vmul.f32 %v665_v40, %v1794_v0  ;;  %v574_v52 = vstv %s1824_s19  ;;  %v493_v56 = vmul.f32 %v492_v51, %v1794_v0  ;;  %s1411_s8 = sld [smem:[#allocation4 + $0x104]]  ;;  %s1870_s10 = sld [smem:[#allocation4 + $0x108]] }
  0x60   : > { %v406_v55 = vstv %s1830_s21  ;;  %v575_v57 = vmul.f32 %v574_v52, %v1794_v0  ;;  %v655_v59 = vstv %s1834_s23  ;;  %s1420_s9 = sld [smem:[#allocation4 + $0x184]]  ;;  %s1663_s12 = smov 111  }
  0x61   : > { %v418_v60 = vstv %s1836_s24  ;;  %v407_v62 = vmul.f32 %v406_v55, %v1794_v0  ;;  %v494_v63 = vstv %s1400_s25  ;;  %v656_v1 = vmul.f32 %v655_v59, %v1794_v0  ;;  %s1887_s13 = sld [smem:[#allocation4 + $0x80]]  ;;  %s1897_s19 = sld [smem:[#allocation6 + $0x1]] }
  0x62   : > { %429 = vrot.lane.b32.xlu0 %v409_v10, %s1659_s11  ;;  %437 = vrot.lane.b32.xlu1 %v413_v13, %s1658_s6  ;;  %v576_v2 = vstv %s1841_s26  ;;  %v419_v3 = vmul.f32 %v418_v60, %v1794_v0  ;;  %v506_v7 = vstv %s1406_s27  ;;  %v495_v9 = vmul.f32 %v494_v63, %v1794_v0  ;;  %s1889_s14 = sld [smem:[#allocation4]]  ;;  %s1903_s23 = sld [smem:[#allocation8 + $0x1]] }
  0x63   : > { %v577_v11 = vmul.f32 %v576_v2, %v1794_v0  ;;  %v507_v12 = vmul.f32 %v506_v7, %v1794_v0  ;;  %s1891_s15 = sld [smem:[#allocation4 + $0x180]]  ;;  %s1905_s24 = sld [smem:[#allocation8 + $0x2]] }
  0x64   : > { %s1893_s16 = sld [smem:[#allocation4 + $0x100]]  ;;  %s1907_s25 = sld [smem:[#allocation8 + $0x3]] }
  0x65   : > { %v580_v31 = vstv %s1411_s8  ;;  %v588_v55 = vstv %s1870_s10  ;;  %s1895_s17 = sld [smem:[#allocation6]]  ;;  %s1911_s26 = sld [smem:[#allocation8 + $0x4]] }
  0x66   : > { %516 = vrot.lane.b32.xlu0 %v497_v15, %s1659_s11  ;;  %523 = vrot.lane.b32.xlu1 %v501_v17, %s1658_s6  ;;  %v657_v15 = vstv %s1418_s28  ;;  %s1901_s21 = sld [smem:[#allocation8]]  ;;  %s1913_s27 = sld [smem:[#allocation8 + $0x5]] }
  0x67   : > { %3018 = sst [smem:[#allocation17_spill]] %s1897_s19  ;;  %s1915_s28 = sld [smem:[#allocation8 + $0x6]] }
  0x68   : > { %3021 = sst [smem:[#allocation20_spill]] %s1903_s23  ;;  %s1925_s8 = sld [smem:[#allocation8 + $0x82]] }
  0x69   : > { %3022 = sst [smem:[#allocation21_spill]] %s1905_s24  ;;  %s1931_s10 = sld [smem:[#allocation8 + $0x84]] }
  0x6a   : > { %598 = vrot.lane.b32.xlu0 %v579_v19, %s1659_s11  ;;  %605 = vrot.lane.b32.xlu1 %v583_v21, %s1658_s6  ;;  %v658_v19 = vmul.f32 %v657_v15, %v1794_v0  ;;  %3023 = sst [smem:[#allocation22_spill]] %s1907_s25  ;;  %s1940_s0 = sld [smem:[#allocation8 + $0x87]] }
  0x6b   : > { %3017 = sst [smem:[#allocation16_spill]] %s1895_s17  ;;  %s1942_s1 = sld [smem:[#allocation8 + $0x88]] }
  0x6c   : > { %3020 = sst [smem:[#allocation19_spill]] %s1901_s21  ;;  %s1947_s2 = sld [smem:[#allocation8 + $0x200]] }
  0x6d   : > { %3024 = sst [smem:[#allocation23_spill]] %s1911_s26  ;;  %s1954_s4 = sld [smem:[#allocation8 + $0x203]] }
  0x6e   : > { %679 = vrot.lane.b32.xlu0 %v660_v23, %s1659_s11  ;;  %686 = vrot.lane.b32.xlu1 %v664_v24, %s1658_s6  ;;  %s1424_s11 = sld [smem:[#allocation4 + $0x188]]  ;;  %3025 = sst [smem:[#allocation24_spill]] %s1913_s27 }
  0x6f   : > { %3026 = sst [smem:[#allocation25_spill]] %s1915_s28  ;;  %s1949_s3 = sld [smem:[#allocation8 + $0x201]] }
  0x70   : > { %3031 = sst [smem:[#allocation30_spill]] %s1925_s8  ;;  %s1966_s18 = sld [smem:[#allocation8 + $0x207]] }
  0x71   : > { %3033 = sst [smem:[#allocation32_spill]] %s1931_s10  ;;  %s1970_s5 = sld [smem:[#allocation8 + $0x208]] }
  0x72   : > { %3036 = sst [smem:[#allocation35_spill]] %s1940_s0  ;;  %s1972_s22 = sld [smem:[#allocation8 + $0x280]] }
  0x73   : > { %3037 = sst [smem:[#allocation36_spill]] %s1942_s1 }
  0x74   : > { %v669_v63 = vstv %s1424_s11  ;;  %s1934_s11 = sld [smem:[#allocation8 + $0x85]]  ;;  %3038 = sst [smem:[#allocation37_spill]] %s1947_s2 }
  0x75   : > { %v670_v2 = vmul.f32 %v669_v63, %v1794_v0  ;;  %3039 = sst [smem:[#allocation38_spill]] %s1949_s3  ;;  %v2972_v63 = vstv %s1954_s4 }
  0x76   : > { %3041 = sst [smem:[#allocation40_spill]] %s1954_s4 }
  0x77   : > { %3045 = sst [smem:[#allocation44_spill]] %s1966_s18  ;;  %s2068_s4 = sld [smem:[#allocation8 + $0x182]] }
  0x78   : > { %3046 = sst [smem:[#allocation45_spill]] %s1970_s5 }
  0x79   : > { %3047 = sst [smem:[#allocation46_spill]] %s1972_s22 }
  0x7a   : > { %3034 = sst [smem:[#allocation33_spill]] %s1934_s11 }
  0x7d   : > { %3069 = sst [smem:[#allocation66_spill]] %s2068_s4  ;;  %s3104_s4 = sld [smem:[#allocation21_spill]] }
  0xcc   : > { %v445_v26 = vpop.permute.xlu0 %444  ;;  %v613_v30 = vpop.permute.xlu1 %612 }
  0xcd   : > { %v446_v28 = vrot.slane %v445_v26, 4  ;;  %v614_v32 = vrot.slane %v613_v30, 4 }
  0xcf   : > { %v447_v33 = vsel %vm424_vm0, %v445_v26, %v446_v28  ;;  %v615_v38 = vsel %vm424_vm0, %v613_v30, %v614_v32  ;;  %v498_v28 = vstv %s1402_s7  ;;  %s1923_s7 = sld [smem:[#allocation8 + $0x81]] }
  0xd0   : > { %v449_v34 = vadd.f32 %v447_v33, %v415_v27  ;;  %v531_v37 = vpop.permute.xlu0 %530  ;;  %v694_v41 = vpop.permute.xlu1 %693  ;;  %v617_v45 = vadd.f32 %v615_v38, %v585_v35  ;;  %v581_v38 = vmul.f32 %v580_v31, %v1794_v0  ;;  %v2968_v31 = vstv %s1905_s24 }
  0xd1   : > { %v532_v39 = vrot.slane %v531_v37, 4  ;;  %v695_v42 = vrot.slane %v694_v41, 4 }
  0xd2   : > { %459 = vrot.lane.b32.xlu0 %v449_v34, %s1660_s20 }
  0xd3   : > { %v533_v43 = vsel %vm424_vm0, %v531_v37, %v532_v39  ;;  %v696_v49 = vsel %vm424_vm0, %v694_v41, %v695_v42  ;;  %v499_v37 = vmul.f32 %v498_v28, %v1794_v0  ;;  %v661_v39 = vstv %s1420_s9  ;;  %s1929_s9 = sld [smem:[#allocation8 + $0x83]] }
  0xd4   : > { %v535_v46 = vadd.f32 %v533_v43, %v503_v36  ;;  %v430_v48 = vpop.permute.xlu0 %429  ;;  %v698_v53 = vadd.f32 %v696_v49, %v666_v47  ;;  %v438_v22 = vpop.permute.xlu1 %437  ;;  %v662_v51 = vmul.f32 %v661_v39, %v1794_v0 }
  0xd5   : > { %v431_v58 = vrot.slane %v430_v48, 4  ;;  %v439_v26 = vrot.slane %v438_v22, 4  ;;  %3030 = sst [smem:[#allocation29_spill]] %s1923_s7 }
  0xd6   : > { %544 = vrot.lane.b32.xlu1 %v535_v46, %s1660_s20  ;;  %626 = vrot.lane.b32.xlu0 %v617_v45, %s1660_s20 }
  0xd7   : > { %v433_v4 = vsel %vm432_vm1, %v430_v48, %v431_v58  ;;  %v440_v29 = vsel %vm424_vm0, %v438_v22, %v439_v26  ;;  %v482_v22 = vstv %s1895_s17  ;;  %s1984_s17 = sld [smem:[#allocation8 + $0x282]] }
  0xd8   : > { %v517_v54 = vpop.permute.xlu0 %516  ;;  %v435_v10 = vadd.f32 %v433_v4, %v407_v62  ;;  %v524_v23 = vpop.permute.xlu1 %523 }
  0xd9   : > { %v518_v5 = vrot.slane %v517_v54, 4  ;;  %v525_v30 = vrot.slane %v524_v23, 4  ;;  %3032 = sst [smem:[#allocation31_spill]] %s1929_s9 }
  0xda   : > { %707 = vrot.lane.b32.xlu1 %v698_v53, %s1660_s20  ;;  %421 = vrot.lane.b32.xlu0 %v405_v50, %s1658_s6  ;;  %s1899_s20 = sld [smem:[#allocation6 + $0x2]] }
  0xdb   : > { %v519_v13 = vsel %vm432_vm1, %v517_v54, %v518_v5  ;;  %v526_v40 = vsel %vm424_vm0, %v524_v23, %v525_v30  ;;  %v564_v23 = vstv %s1897_s19  ;;  %s1982_s19 = sld [smem:[#allocation8 + $0x281]] }
  0xdc   : > { %v599_v61 = vpop.permute.xlu0 %598  ;;  %v521_v17 = vadd.f32 %v519_v13, %v495_v9  ;;  %v606_v24 = vpop.permute.xlu1 %605  ;;  %v528_v49 = vadd.f32 %v526_v40, %v499_v37  ;;  %v572_v13 = vstv %s1893_s16  ;;  %s1964_s16 = sld [smem:[#allocation8 + $0x206]] }
  0xdd   : > { %v600_v6 = vrot.slane %v599_v61, 4  ;;  %v607_v32 = vrot.slane %v606_v24, 4  ;;  %3049 = sst [smem:[#allocation48_spill]] %s1984_s17  ;;  %s1998_s17 = sld [smem:[#allocation8 + $0x286]] }
  0xde   : > { %509 = vrot.lane.b32.xlu1 %v493_v56, %s1658_s6  ;;  %591 = vrot.lane.b32.xlu0 %v575_v57, %s1658_s6 }
  0xdf   : > { %v601_v14 = vsel %vm432_vm1, %v599_v61, %v600_v6  ;;  %v608_v41 = vsel %vm424_vm0, %v606_v24, %v607_v32  ;;  %v589_v61 = vmul.f32 %v588_v55, %v1794_v0  ;;  %v2958_v32 = vstv %s1907_s25  ;;  %s2005_s25 = sld [smem:[#allocation8 + $0x287]] }
  0xe0   : > { %v680_v8 = vpop.permute.xlu0 %679  ;;  %v603_v18 = vadd.f32 %v601_v14, %v577_v11  ;;  %v687_v33 = vpop.permute.xlu1 %686  ;;  %v610_v50 = vadd.f32 %v608_v41, %v581_v38  ;;  %3019 = sst [smem:[#allocation18_spill]] %s1899_s20  ;;  %v490_v11 = vstv %s1887_s13  ;;  %v646_v24 = vstv %s1899_s20  ;;  %s1988_s20 = sld [smem:[#allocation8 + $0x283]] }
  0xe1   : > { %v681_v16 = vrot.slane %v680_v8, 4  ;;  %v688_v42 = vrot.slane %v687_v33, 4  ;;  %s1957_s13 = sld [smem:[#allocation8 + $0x204]]  ;;  %3048 = sst [smem:[#allocation47_spill]] %s1982_s19  ;;  %v2980_v55 = vstv %s1942_s1 }
  0xe2   : > { %672 = vrot.lane.b32.xlu1 %v656_v1, %s1658_s6  ;;  %475 = vrot.lane.b32.xlu0 %v419_v3, %s1661_s29  ;;  %s1393_s6 = sld [smem:[#allocation4 + $0x4]]  ;;  %3044 = sst [smem:[#allocation43_spill]] %s1964_s16 }
  0xe3   : > { %v682_v20 = vsel %vm432_vm1, %v680_v8, %v681_v16  ;;  %v689_v52 = vsel %vm424_vm0, %v687_v33, %v688_v42  ;;  %v402_v8 = vstv %s1889_s14  ;;  %s1952_s14 = sld [smem:[#allocation8 + $0x202]]  ;;  %v2954_v33 = vstv %s1911_s26  ;;  %s1996_s19 = sld [smem:[#allocation8 + $0x285]] }
  0xe4   : > { %v684_v21 = vadd.f32 %v682_v20, %v658_v19  ;;  %v691_v60 = vadd.f32 %v689_v52, %v662_v51  ;;  %v403_v15 = vmul.f32 %v402_v8, %v1794_v0  ;;  %v573_v20 = vmul.f32 %v572_v13, %v1794_v0  ;;  %3053 = sst [smem:[#allocation52_spill]] %s1998_s17  ;;  %s2007_s26 = sld [smem:[#allocation8 + $0x288]] }
  0xe5   : > { %3054 = sst [smem:[#allocation53_spill]] %s2005_s25  ;;  %s3066_s24 = sld [smem:[#allocation47_spill]]  ;;  %v2987_v8 = vstv %s1964_s16  ;;  %v2981_v13 = vstv %s1970_s5 }
  0xe6   : > { %558 = vrot.lane.b32.xlu1 %v507_v12, %s1661_s29  ;;  %451 = vrot.lane.b32.xlu0 %v435_v10, %s1662_s30  ;;  %v653_v12 = vstv %s1891_s15  ;;  %s1959_s15 = sld [smem:[#allocation8 + $0x205]]  ;;  %3050 = sst [smem:[#allocation49_spill]] %s1988_s20 }
  0xe7   : > { %3042 = sst [smem:[#allocation41_spill]] %s1957_s13  ;;  %v654_v19 = vmul.f32 %v653_v12, %v1794_v0  ;;  %s2050_s1 = sld [smem:[#allocation8 + $0x107]] }
  0xe8   : > { %v410_v25 = vstv %s1393_s6  ;;  %s1921_s6 = sld [smem:[#allocation8 + $0x80]]  ;;  %s2086_s16 = sld [smem:[#allocation8 + $0x187]] }
  0xe9   : > { %v411_v27 = vmul.f32 %v410_v25, %v1794_v0  ;;  %3040 = sst [smem:[#allocation39_spill]] %s1952_s14  ;;  %v749_v25 = vstv %s1901_s21  ;;  %s1990_s21 = sld [smem:[#allocation8 + $0x284]] }
  0xea   : > { %537 = vrot.lane.b32.xlu1 %v521_v17, %s1662_s30  ;;  %619 = vrot.lane.b32.xlu0 %v603_v18, %s1662_s30  ;;  %v491_v18 = vmul.f32 %v490_v11, %v1794_v0  ;;  %3052 = sst [smem:[#allocation51_spill]] %s1996_s19  ;;  %s2092_s5 = sld [smem:[#allocation8 + $0x188]] }
  0xeb   : > { %v442_v36 = vadd.f32 %v440_v29, %v411_v27  ;;  %v778_v29 = vstv %s1903_s23  ;;  %3055 = sst [smem:[#allocation54_spill]] %s2007_s26 }
  0xec   : > { %3043 = sst [smem:[#allocation42_spill]] %s1959_s15  ;;  %s2124_s23 = sld [smem:[#allocation8 + $0x380]] }
  0xed   : > { %3063 = sst [smem:[#allocation62_spill]] %s2050_s1 }
  0xee   : > { %700 = vrot.lane.b32.xlu1 %v684_v21, %s1662_s30  ;;  %s1919_s30 = sld [smem:[#allocation8 + $0x8]]  ;;  %3029 = sst [smem:[#allocation28_spill]] %s1921_s6  ;;  %v751_v40 = vstv %s1921_s6 }
  0xef   : > { %3051 = sst [smem:[#allocation50_spill]] %s1990_s21  ;;  %s2130_s6 = sld [smem:[#allocation8 + $0x382]] }
  0xf0   : > { %3074 = sst [smem:[#allocation71_spill]] %s2086_s16  ;;  %s2161_s1 = sld [smem:[#allocation9 + $0x80]] }
  0xf1   : > { %3075 = sst [smem:[#allocation72_spill]] %s2092_s5  ;;  %s2186_s16 = sld [smem:[#allocation9 + $0x200]] }
  0xf2   : > { %3086 = sst [smem:[#allocation81_spill]] %s2124_s23  ;;  %s2188_s5 = sld [smem:[#allocation9 + $0x201]] }
  0xf3   : > { %s3105_s23 = sld [smem:[#allocation30_spill]] }
  0xf4   : > { %3028 = sst [smem:[#allocation27_spill]] %s1919_s30  ;;  %v2983_v41 = vstv %s1919_s30  ;;  %s2025_s30 = sld [smem:[#allocation8 + $0x101]] }
  0xf5   : > { %3088 = sst [smem:[#allocation83_spill]] %s2130_s6  ;;  %s3141_s6 = sld [smem:[#allocation36_spill]] }
  0xfa   : > { %3057 = sst [smem:[#allocation56_spill]] %s2025_s30  ;;  %s2180_s30 = sld [smem:[#allocation9 + $0x180]] }
 0x144   : > { %v460_v34 = vpop.permute.xlu0 %459 }
 0x145   : > { %v461_v35 = vrot.slane %v460_v34, 4 }
 0x147   : > { %v463_v43 = vsel %vm462_vm2, %v460_v34, %v461_v35  ;;  %v2964_v35 = vstv %s1913_s27  ;;  %s2027_s27 = sld [smem:[#allocation8 + $0x102]] }
 0x148   : > { %v465_v44 = vadd.f32 %v463_v43, %v442_v36  ;;  %v545_v45 = vpop.permute.xlu1 %544  ;;  %v627_v46 = vpop.permute.xlu0 %626  ;;  %v2977_v36 = vstv %s1915_s28  ;;  %s2019_s28 = sld [smem:[#allocation8 + $0x100]] }
 0x149   : > { %v546_v47 = vrot.slane %v545_v45, 4  ;;  %v628_v48 = vrot.slane %v627_v46, 4 }
 0x14a   : > { %467 = vrot.lane.b32.xlu0 %v465_v44, %s1663_s12 }
 0x14b   : > { %v547_v53 = vsel %vm462_vm2, %v545_v45, %v546_v47  ;;  %v629_v54 = vsel %vm462_vm2, %v627_v46, %v628_v48  ;;  %v780_v45 = vstv %s1923_s7  ;;  %v2959_v46 = vstv %s1925_s8  ;;  %s2036_s8 = sld [smem:[#allocation8 + $0x103]]  ;;  %s2111_s7 = sld [smem:[#allocation8 + $0x306]] }
 0x14c   : > { %v549_v56 = vadd.f32 %v547_v53, %v528_v49  ;;  %v631_v57 = vadd.f32 %v629_v54, %v610_v50  ;;  %v708_v58 = vpop.permute.xlu1 %707  ;;  %v422_v3 = vpop.permute.xlu0 %421  ;;  %v2955_v48 = vstv %s1929_s9  ;;  %v2953_v49 = vstv %s1931_s10  ;;  %s2042_s10 = sld [smem:[#allocation8 + $0x105]]  ;;  %s2044_s9 = sld [smem:[#allocation8 + $0x106]] }
 0x14d   : > { %v709_v59 = vrot.slane %v708_v58, 4  ;;  %v423_v9 = vrot.slane %v422_v3, 4  ;;  %v2965_v50 = vstv %s1934_s11  ;;  %3058 = sst [smem:[#allocation57_spill]] %s2027_s27  ;;  %v2978_v54 = vstv %s1940_s0  ;;  %s2038_s11 = sld [smem:[#allocation8 + $0x104]] }
 0x14e   : > { %551 = vrot.lane.b32.xlu1 %v549_v56, %s1663_s12  ;;  %633 = vrot.lane.b32.xlu0 %v631_v57, %s1663_s12  ;;  %3056 = sst [smem:[#allocation55_spill]] %s2019_s28  ;;  %s2052_s0 = sld [smem:[#allocation8 + $0x108]] }
 0x14f   : > { %v710_v62 = vsel %vm462_vm2, %v708_v58, %v709_v59  ;;  %v425_v16 = vsel %vm424_vm0, %v422_v3, %v423_v9  ;;  %v2973_v3 = vstv %s1957_s13  ;;  %v2985_v9 = vstv %s1966_s18  ;;  %s2078_s13 = sld [smem:[#allocation8 + $0x185]]  ;;  %s2084_s18 = sld [smem:[#allocation8 + $0x186]] }
 0x150   : > { %v712_v1 = vadd.f32 %v710_v62, %v691_v60  ;;  %v510_v4 = vpop.permute.xlu1 %509  ;;  %v592_v5 = vpop.permute.xlu0 %591  ;;  %v1977_v26 = vadd.f32 %v425_v16, %v403_v15  ;;  %v757_v60 = vstv %s1947_s2  ;;  %v2971_v62 = vstv %s1952_s14  ;;  %s2062_s2 = sld [smem:[#allocation8 + $0x181]]  ;;  %s3068_s14 = sld [smem:[#allocation48_spill]] }
 0x151   : > { %v511_v14 = vrot.slane %v510_v4, 4  ;;  %v593_v17 = vrot.slane %v592_v5, 4  ;;  %3059 = sst [smem:[#allocation58_spill]] %s2036_s8  ;;  %v2989_v16 = vstv %s1988_s20  ;;  %s2100_s20 = sld [smem:[#allocation8 + $0x302]] }
 0x152   : > { %714 = vrot.lane.b32.xlu1 %v712_v1, %s1663_s12  ;;  %640 = vrot.lane.b32.xlu0 %v589_v61, %s1661_s29  ;;  %s1936_s12 = sld [smem:[#allocation8 + $0x86]]  ;;  %3062 = sst [smem:[#allocation61_spill]] %s2044_s9  ;;  %v786_v61 = vstv %s1949_s3 }
 0x153   : > { %v512_v0 = vsel %vm424_vm0, %v510_v4, %v511_v14  ;;  %v594_v30 = vsel %vm424_vm0, %v592_v5, %v593_v17  ;;  %3060 = sst [smem:[#allocation59_spill]] %s2038_s11  ;;  %v2975_v4 = vstv %s1959_s15  ;;  %s2070_s3 = sld [smem:[#allocation8 + $0x183]]  ;;  %v2969_v14 = vstv %s3066_s24 }
 0x154   : > { %v1909_v6 = vpop.permute.xlu1 %672  ;;  %v1927_v7 = vpop.permute.xlu0 %475  ;;  %v2003_v38 = vadd.f32 %v512_v0, %v491_v18  ;;  %v2013_v43 = vadd.f32 %v594_v30, %v573_v20  ;;  %3061 = sst [smem:[#allocation60_spill]] %s2042_s10  ;;  %s2076_s15 = sld [smem:[#allocation8 + $0x184]]  ;;  %v2974_v17 = vstv %s1990_s21  ;;  %v2976_v20 = vstv %s1996_s19 }
 0x155   : > { %v674_v27 = vrot.slane %v1909_v6, 4  ;;  %v477_v34 = vrot.slane %v1927_v7, 4  ;;  %3064 = sst [smem:[#allocation63_spill]] %s2052_s0  ;;  %s2104_s19 = sld [smem:[#allocation8 + $0x303]] }
 0x156   : > { %721 = vrot.lane.b32.xlu1 %v670_v2, %s1661_s29  ;;  %s1917_s29 = sld [smem:[#allocation8 + $0x7]]  ;;  %3067 = sst [smem:[#allocation65_spill]] %s2062_s2  ;;  %v2970_v15 = vstv %s3068_s14 }
 0x157   : > { %v675_v42 = vsel %vm424_vm0, %v1909_v6, %v674_v27  ;;  %v2031_v51 = vsel %vm478_vm3, %v1927_v7, %v477_v34  ;;  %v759_v7 = vstv %s1972_s22  ;;  %3072 = sst [smem:[#allocation69_spill]] %s2078_s13  ;;  %s2094_s22 = sld [smem:[#allocation8 + $0x300]] }
 0x158   : > { %3035 = sst [smem:[#allocation34_spill]] %s1936_s12  ;;  %v1938_v10 = vpop.permute.xlu1 %558  ;;  %v452_v21 = vpop.permute.xlu0 %451  ;;  %v2988_v53 = vstv %s1936_s12  ;;  %v677_v56 = vadd.f32 %v675_v42, %v654_v19  ;;  %s2060_s12 = sld [smem:[#allocation8 + $0x180]]  ;;  %v2984_v42 = vstv %s2005_s25 }
 0x159   : > { %v453_v39 = vrot.slane %v452_v21, 4  ;;  %v560_v47 = vrot.slane %v1938_v10, 4  ;;  %3070 = sst [smem:[#allocation67_spill]] %s2070_s3  ;;  %s2098_s21 = sld [smem:[#allocation8 + $0x301]] }
 0x15a   : > { %3071 = sst [smem:[#allocation68_spill]] %s2076_s15  ;;  %s2106_s14 = sld [smem:[#allocation8 + $0x304]] }
 0x15b   : > { %v455_v58 = vsel %vm454_vm4, %v452_v21, %v453_v39  ;;  %v2056_v1 = vsel %vm478_vm3, %v1938_v10, %v560_v47  ;;  %3073 = sst [smem:[#allocation70_spill]] %s2084_s18  ;;  %v2986_v21 = vstv %s1998_s17  ;;  %s2109_s24 = sld [smem:[#allocation8 + $0x305]] }
 0x15c   : > { %3027 = sst [smem:[#allocation26_spill]] %s1917_s29  ;;  %v1980_v28 = vpop.permute.xlu1 %537  ;;  %v2979_v37 = vstv %s1917_s29  ;;  %v620_v44 = vpop.permute.xlu0 %619  ;;  %s2017_s29 = sld [smem:[#allocation6 + $0x3]]  ;;  %v457_v5 = vadd.f32 %v455_v58, %v1977_v26 }
 0x15d   : > { %v539_v57 = vrot.slane %v1980_v28, 4  ;;  %v621_v59 = vrot.slane %v620_v44, 4  ;;  %3076 = sst [smem:[#allocation73_spill]] %s2094_s22  ;;  %s2119_s25 = sld [smem:[#allocation8 + $0x308]] }
 0x15e   : > { %3065 = sst [smem:[#allocation64_spill]] %s2060_s12  ;;  %s2126_s28 = sld [smem:[#allocation8 + $0x381]] }
 0x15f   : > { %v540_v10 = vsel %vm454_vm4, %v1980_v28, %v539_v57  ;;  %v622_v11 = vsel %vm454_vm4, %v620_v44, %v621_v59  ;;  %3077 = sst [smem:[#allocation74_spill]] %s2098_s21  ;;  %v2982_v44 = vstv %s2007_s26  ;;  %s2117_s26 = sld [smem:[#allocation8 + $0x307]] }
 0x160   : > { %v701_v52 = vpop.permute.xlu1 %700  ;;  %v542_v0 = vadd.f32 %v540_v10, %v2003_v38  ;;  %v624_v26 = vadd.f32 %v622_v11, %v2013_v43  ;;  %3078 = sst [smem:[#allocation75_spill]] %s2100_s20  ;;  %s2137_s27 = sld [smem:[#allocation8 + $0x384]]  ;;  %v2263_v11 = vstv %s2186_s16 }
 0x161   : > { %v702_v2 = vrot.slane %v701_v52, 4  ;;  %3080 = sst [smem:[#allocation16_spill]] %s2104_s19  ;;  %s2139_s8 = sld [smem:[#allocation8 + $0x385]]  ;;  %3121 = vst [vmem:[#allocation94_spill] sm:$0xff] %v2263_v11 }
 0x162   : > { %3081 = sst [smem:[#allocation76_spill]] %s2106_s14  ;;  %v727_v47 = vstv %s2017_s29  ;;  %s2146_s10 = sld [smem:[#allocation8 + $0x387]] }
 0x163   : > { %v703_v18 = vsel %vm454_vm4, %v701_v52, %v702_v2  ;;  %3082 = sst [smem:[#allocation77_spill]] %s2109_s24  ;;  %s2144_s11 = sld [smem:[#allocation8 + $0x386]] }
 0x164   : > { %v705_v38 = vadd.f32 %v703_v18, %v677_v56  ;;  %3083 = sst [smem:[#allocation78_spill]] %s2111_s7  ;;  %s2168_s17 = sld [smem:[#allocation9 + $0x81]] }
 0x165   : > { %3084 = sst [smem:[#allocation79_spill]] %s2117_s26  ;;  %s2153_s9 = sld [smem:[#allocation8 + $0x388]] }
 0x166   : > { %3085 = sst [smem:[#allocation80_spill]] %s2119_s25  ;;  %s2132_s25 = sld [smem:[#allocation8 + $0x383]] }
 0x167   : > { %3087 = sst [smem:[#allocation82_spill]] %s2126_s28  ;;  %s2172_s0 = sld [smem:[#allocation9 + $0x100]] }
 0x168   : > { %3091 = sst [smem:[#allocation17_spill]] %s2137_s27  ;;  %s2174_s2 = sld [smem:[#allocation9 + $0x101]] }
 0x169   : > { %3092 = sst [smem:[#allocation85_spill]] %s2139_s8  ;;  %s2155_s8 = sld [smem:[#allocation9]] }
 0x16a   : > { %3093 = sst [smem:[#allocation86_spill]] %s2144_s11  ;;  %s2159_s11 = sld [smem:[#allocation9 + $0x1]] }
 0x16b   : > { %3094 = sst [smem:[#allocation87_spill]] %s2146_s10  ;;  %s2195_s21 = sld [smem:[#allocation9 + $0x280]] }
 0x16c   : > { %3089 = sst [smem:[#allocation84_spill]] %s2132_s25  ;;  %s2182_s13 = sld [smem:[#allocation9 + $0x181]] }
 0x16d   : > { %3096 = sst [smem:[#allocation18_spill]] %s2153_s9  ;;  %s2197_s22 = sld [smem:[#allocation9 + $0x281]] }
 0x16e   : > { %s3106_s7 = sld [smem:[#allocation22_spill]]  ;;  %s3107_s26 = sld [smem:[#allocation31_spill]] }
 0x16f   : > { %s3108_s29 = sld [smem:[#allocation23_spill]]  ;;  %s3109_s12 = sld [smem:[#allocation32_spill]] }
 0x170   : > { %s3122_s10 = sld [smem:[#allocation47_spill]]  ;;  %s3129_s15 = sld [smem:[#allocation49_spill]] }
 0x171   : > { %s3124_s3 = sld [smem:[#allocation39_spill]]  ;;  %s3133_s16 = sld [smem:[#allocation50_spill]] }
 0x172   : > { %v2269_v10 = vstv %s2182_s13  ;;  %s3140_s25 = sld [smem:[#allocation27_spill]]  ;;  %s3143_s9 = sld [smem:[#allocation52_spill]] }
 0x173   : > { %3125 = vst [vmem:[#allocation96_spill] sm:$0xff] %v2269_v10  ;;  %v2280_v52 = vstv %s2197_s22  ;;  %s3139_s22 = sld [smem:[#allocation35_spill]]  ;;  %s3147_s13 = sld [smem:[#allocation45_spill]] }
 0x174   : > { %3132 = vst [vmem:[#allocation99_spill] sm:$0xff] %v2280_v52  ;;  %s3142_s28 = sld [smem:[#allocation43_spill]]  ;;  %s3149_s27 = sld [smem:[#allocation54_spill]] }
 0x175   : > { %s3169_s18 = sld [smem:[#allocation42_spill]]  ;;  %s3170_s19 = sld [smem:[#allocation51_spill]] }
 0x176   : > { %s3172_s20 = sld [smem:[#allocation25_spill]]  ;;  %s3186_s24 = sld [smem:[#allocation64_spill]] }
 0x177   : > { %s3198_s14 = sld [smem:[#allocation58_spill]] }
 0x1bc   : > { %v468_v6 = vpop.permute.xlu0 %467 }
 0x1bd   : > { %v469_v12 = vrot.slane %v468_v6, 4 }
 0x1bf   : > { %v471_v19 = vsel %vm470_vm5, %v468_v6, %v469_v12 }
 0x1c0   : > { %v473_v27 = vadd.f32 %v471_v19, %v457_v5  ;;  %v552_v28 = vpop.permute.xlu1 %551  ;;  %v634_v30 = vpop.permute.xlu0 %633  ;;  %v2257_v19 = vstv %s2168_s17  ;;  %s3127_s17 = sld [smem:[#allocation40_spill]] }
 0x1c1   : > { %v553_v34 = vrot.slane %v552_v28, 4  ;;  %v635_v39 = vrot.slane %v634_v30, 4  ;;  %3116 = vst [vmem:[#allocation92_spill] sm:$0xff] %v2257_v19  ;;  %v3201_v19 = vstv %s3141_s6  ;;  %s3216_s6 = sld [smem:[#allocation69_spill]] }
 0x1c2   : > { %v481_v43 = vadd.f32 %v2031_v51, %v473_v27  ;;  %v2274_v51 = vstv %s2195_s21  ;;  %s3137_s21 = sld [smem:[#allocation34_spill]] }
 0x1c3   : > { %v554_v57 = vsel %vm470_vm5, %v552_v28, %v553_v34  ;;  %v636_v58 = vsel %vm470_vm5, %v634_v30, %v635_v39  ;;  %3128 = vst [vmem:[#allocation97_spill] sm:$0xff] %v2274_v51  ;;  %v3168_v51 = vstv %s3109_s12  ;;  %s3194_s12 = sld [smem:[#allocation66_spill]] }
 0x1c4   : > { %v483_v59 = vadd.f32 %v482_v22, %v481_v43  ;;  %v556_v2 = vadd.f32 %v554_v57, %v542_v0  ;;  %v715_v5 = vpop.permute.xlu1 %714  ;;  %v641_v6 = vpop.permute.xlu0 %640  ;;  %v638_v28 = vadd.f32 %v636_v58, %v624_v26 }
 0x1c5   : > { %v716_v12 = vrot.slane %v715_v5, 4  ;;  %v642_v18 = vrot.slane %v641_v6, 4 }
 0x1c6   : > { %v485_v0 = vcombine.high %v483_v59, %v483_v59  ;;  %487 = vst [vmem:[#allocation2] sm:$0xf] %v483_v59  ;;  %v563_v27 = vadd.f32 %v2056_v1, %v556_v2  ;;  %v2277_v1 = vstv %s2188_s5  ;;  %s3138_s5 = sld [smem:[#allocation26_spill]]  ;;  %v3162_v52 = vstv %s3127_s17  ;;  %s3260_s17 = sld [smem:[#allocation73_spill]] }
 0x1c7   : > { %v717_v34 = vsel %vm470_vm5, %v715_v5, %v716_v12  ;;  %v643_v39 = vsel %vm478_vm3, %v641_v6, %v642_v18  ;;  %v2260_v5 = vstv %s2180_s30  ;;  %3130 = vst [vmem:[#allocation98_spill] sm:$0xff] %v2277_v1  ;;  %s3131_s30 = sld [smem:[#allocation41_spill]]  ;;  %v3203_v1 = vstv %s3149_s27  ;;  %s3214_s27 = sld [smem:[#allocation60_spill]] }
 0x1c8   : > { %v565_v26 = vadd.f32 %v564_v23, %v563_v27  ;;  %489 = vst.msk [vmem:[#allocation2 + $0x8] sm:$0xf] %vm488_vm6, %v485_v0  ;;  %v645_v57 = vadd.f32 %v643_v39, %v638_v28  ;;  %v722_v2 = vpop.permute.xlu1 %721  ;;  %v719_v0 = vadd.f32 %v717_v34, %v705_v38  ;;  %v2220_v38 = vstv %s2155_s8  ;;  %3119 = vst [vmem:[#allocation93_spill] sm:$0xff] %v2260_v5  ;;  %s3226_s8 = sld [smem:[#allocation71_spill]] }
 0x1c9   : > { %v723_v12 = vrot.slane %v722_v2, 4  ;;  %3110 = vst [vmem:[#allocation88_spill] sm:$0xff] %v2220_v38  ;;  %v2254_v28 = vstv %s2172_s0  ;;  %v2266_v23 = vstv %s2174_s2  ;;  %s3126_s0 = sld [smem:[#allocation48_spill]]  ;;  %s3145_s2 = sld [smem:[#allocation53_spill]]  ;;  %v3199_v5 = vstv %s3140_s25 }
 0x1ca   : > { %v567_v18 = vcombine.low %v565_v26, %v565_v26  ;;  %v647_v27 = vadd.f32 %v646_v24, %v645_v57  ;;  %571 = vst.msk [vmem:[#allocation2 + $0x8] sm:$0xf0] %vm570_vm7, %v565_v26  ;;  %v2223_v57 = vstv %s2161_s1  ;;  %3114 = vst [vmem:[#allocation91_spill] sm:$0xff] %v2254_v28  ;;  %s3144_s1 = sld [smem:[#allocation44_spill]]  ;;  %v3205_v28 = vstv %s3186_s24 }
 0x1cb   : > { %v724_v34 = vsel %vm478_vm3, %v722_v2, %v723_v12  ;;  %3111 = vst [vmem:[#allocation89_spill] sm:$0xff] %v2223_v57  ;;  %3123 = vst [vmem:[#allocation95_spill] sm:$0xff] %v2266_v23  ;;  %v3202_v57 = vstv %s3147_s13  ;;  %s3213_s25 = sld [smem:[#allocation68_spill]]  ;;  %s3266_s13 = sld [smem:[#allocation75_spill]] }
 0x1cc   : > { %569 = vst [vmem:[#allocation2] sm:$0xf0] %v567_v18  ;;  %v649_v24 = vcombine.high %v647_v27, %v647_v27  ;;  %651 = vst [vmem:[#allocation2 + $0x10] sm:$0xf] %v647_v27  ;;  %v726_v59 = vadd.f32 %v724_v34, %v719_v0  ;;  %v2226_v0 = vstv %s2159_s11  ;;  %s3228_s11 = sld [smem:[#allocation63_spill]] }
 0x1cd   : > { %3112 = vst [vmem:[#allocation90_spill] sm:$0xff] %v2226_v0 }
 0x1ce   : > { %652 = vst.msk [vmem:[#allocation2 + $0x18] sm:$0xf] %vm488_vm6, %v649_v24  ;;  %v2204_v12 = vadd.f32 %v727_v47, %v726_v59 }
 0x1cf   : > { %v734_v27 = vld [vmem:[#allocation2] ss:$8 sm:$0x3]  ;;  %v2206_v18 = vld [vmem:[#allocation2 + $0x2] ss:$8 sm:$0x3]  ;;  %v3197_v10 = vstv %s3145_s2 }
 0x1d0   : > { %733 = vst.msk [vmem:[#allocation2 + $0x18] sm:$0xf0] %vm570_vm7, %v2204_v12  ;;  %v750_v2 = vmul.f32 %v749_v25, %v734_v27  ;;  %v752_v59 = vmul.f32 %v751_v40, %v2206_v18  ;;  %v779_v47 = vmul.f32 %v778_v29, %v734_v27  ;;  %v781_v24 = vmul.f32 %v780_v45, %v2206_v18  ;;  %s3265_s2 = sld [smem:[#allocation82_spill]] }
 0x1d1   : > { %v805_v34 = vmul.f32 %v2968_v31, %v734_v27  ;;  %v807_v26 = vmul.f32 %v2959_v46, %v2206_v18  ;;  %v831_v56 = vmul.f32 %v2958_v32, %v734_v27  ;;  %v833_v43 = vmul.f32 %v2955_v48, %v2206_v18 }
 0x1d2   : > { %v857_v39 = vmul.f32 %v2954_v33, %v734_v27  ;;  %v859_v30 = vmul.f32 %v2953_v49, %v2206_v18  ;;  %v2271_v58 = vadd.f32 %v752_v59, %v750_v2  ;;  %v2282_v49 = vadd.f32 %v781_v24, %v779_v47 }
 0x1d3   : > { %v2284_v33 = vadd.f32 %v807_v26, %v805_v34  ;;  %v2286_v48 = vadd.f32 %v833_v43, %v831_v56  ;;  %v883_v2 = vmul.f32 %v2964_v35, %v734_v27  ;;  %v885_v24 = vmul.f32 %v2965_v50, %v2206_v18 }
 0x1d4   : > { %v2294_v46 = vadd.f32 %v859_v30, %v857_v39 }
 0x1d5   : > { %v742_v6 = vld [vmem:[#allocation2 + $0x10] ss:$8 sm:$0x3]  ;;  %v744_v22 = vld [vmem:[#allocation2 + $0x12] ss:$8 sm:$0x3] }
 0x1d6   : > { %v758_v59 = vmul.f32 %v757_v60, %v742_v6  ;;  %v760_v32 = vmul.f32 %v759_v7, %v744_v22  ;;  %v787_v26 = vmul.f32 %v786_v61, %v742_v6  ;;  %v789_v56 = vmul.f32 %v2969_v14, %v744_v22 }
 0x1d7   : > { %v813_v43 = vmul.f32 %v2971_v62, %v742_v6  ;;  %v815_v34 = vmul.f32 %v2970_v15, %v744_v22  ;;  %v839_v47 = vmul.f32 %v2972_v63, %v742_v6  ;;  %v841_v35 = vmul.f32 %v2989_v16, %v744_v22 }
 0x1d8   : > { %v865_v30 = vmul.f32 %v2973_v3, %v742_v6  ;;  %v867_v39 = vmul.f32 %v2974_v17, %v744_v22  ;;  %v891_v50 = vmul.f32 %v2975_v4, %v742_v6  ;;  %v893_v31 = vmul.f32 %v2976_v20, %v744_v22 }
 0x1d9   : > { %v909_v14 = vmul.f32 %v2977_v36, %v734_v27  ;;  %v911_v15 = vmul.f32 %v2988_v53, %v2206_v18  ;;  %v2324_v62 = vadd.f32 %v885_v24, %v883_v2  ;;  %v935_v63 = vmul.f32 %v2979_v37, %v734_v27  ;;  %v987_v24 = vld [vmem:[#allocation2 + $0x1] ss:$8 sm:$0x3] }
 0x1da   : > { %v937_v3 = vmul.f32 %v2978_v54, %v2206_v18  ;;  %v961_v17 = vmul.f32 %v2983_v41, %v734_v27  ;;  %v2333_v4 = vadd.f32 %v760_v32, %v758_v59  ;;  %v2335_v20 = vadd.f32 %v789_v56, %v787_v26  ;;  %v989_v54 = vld [vmem:[#allocation2 + $0x3] ss:$8 sm:$0x3]  ;;  %v995_v26 = vld [vmem:[#allocation2 + $0x11] ss:$8 sm:$0x3] }
 0x1db   : > { %v2337_v36 = vadd.f32 %v815_v34, %v813_v43  ;;  %v963_v2 = vmul.f32 %v2980_v55, %v2206_v18  ;;  %v2342_v37 = vadd.f32 %v841_v35, %v839_v47  ;;  %v2344_v32 = vadd.f32 %v867_v39, %v865_v30  ;;  %v997_v18 = vld [vmem:[#allocation2 + $0x13] ss:$8 sm:$0x3] }
 0x1dc   : > { %3146 = vst [vmem:[#allocation100_spill] sm:$0xff] %v2333_v4  ;;  %3148 = vst [vmem:[#allocation101_spill] sm:$0xff] %v2335_v20  ;;  %v917_v27 = vmul.f32 %v2987_v8, %v742_v6  ;;  %v919_v59 = vmul.f32 %v2986_v21, %v744_v22  ;;  %v2350_v56 = vadd.f32 %v893_v31, %v891_v50  ;;  %v3156_v41 = vstv %s3105_s23  ;;  %s3184_s23 = sld [smem:[#allocation55_spill]] }
 0x1dd   : > { %3150 = vst [vmem:[#allocation102_spill] sm:$0xff] %v2337_v36  ;;  %3151 = vst [vmem:[#allocation103_spill] sm:$0xff] %v2342_v37  ;;  %v2352_v43 = vadd.f32 %v911_v15, %v909_v14  ;;  %v943_v35 = vmul.f32 %v2985_v9, %v742_v6  ;;  %v945_v34 = vmul.f32 %v2984_v42, %v744_v22  ;;  %v3158_v21 = vstv %s3126_s0  ;;  %s3230_s0 = sld [smem:[#allocation72_spill]] }
 0x1de   : > { %3152 = vst [vmem:[#allocation104_spill] sm:$0xff] %v2344_v32  ;;  %3153 = vst [vmem:[#allocation105_spill] sm:$0xff] %v2350_v56  ;;  %v969_v47 = vmul.f32 %v2981_v13, %v742_v6  ;;  %v971_v30 = vmul.f32 %v2982_v44, %v744_v22  ;;  %v1002_v39 = vmul.f32 %v987_v24, %v749_v25  ;;  %v3154_v13 = vstv %s3122_s10  ;;  %s3192_s10 = sld [smem:[#allocation57_spill]] }
 0x1df   : > { %v1003_v31 = vmul.f32 %v989_v54, %v751_v40  ;;  %v1006_v50 = vmul.f32 %v995_v26, %v757_v60  ;;  %v1007_v14 = vmul.f32 %v997_v18, %v759_v7  ;;  %v1020_v15 = vmul.f32 %v987_v24, %v778_v29 }
 0x1e0   : > { %v1021_v55 = vmul.f32 %v989_v54, %v780_v45  ;;  %v1024_v6 = vmul.f32 %v995_v26, %v786_v61  ;;  %v1025_v22 = vmul.f32 %v997_v18, %v3154_v13  ;;  %v3155_v44 = vstv %s3104_s4  ;;  %s3164_s4 = sld [smem:[#allocation24_spill]] }
 0x1e1   : > { %v1038_v25 = vmul.f32 %v987_v24, %v3155_v44  ;;  %v1039_v42 = vmul.f32 %v989_v54, %v3156_v41  ;;  %v3157_v40 = vstv %s3124_s3  ;;  %v1043_v60 = vmul.f32 %v997_v18, %v3158_v21  ;;  %s3167_s3 = sld [smem:[#allocation33_spill]] }
 0x1e2   : > { %v1042_v9 = vmul.f32 %v995_v26, %v3157_v40  ;;  %v3159_v8 = vstv %s3106_s7  ;;  %v3160_v53 = vstv %s3107_s26  ;;  %v2390_v16 = vadd.f32 %v919_v59, %v917_v27  ;;  %s3188_s26 = sld [smem:[#allocation56_spill]]  ;;  %s3190_s7 = sld [smem:[#allocation65_spill]] }
 0x1e3   : > { %v1056_v7 = vmul.f32 %v987_v24, %v3159_v8  ;;  %v1057_v29 = vmul.f32 %v989_v54, %v3160_v53  ;;  %v2392_v45 = vadd.f32 %v937_v3, %v935_v63  ;;  %v1060_v61 = vmul.f32 %v995_v26, %v3162_v52 }
 0x1e4   : > { %3161 = vst [vmem:[#allocation106_spill] sm:$0xff] %v2390_v16  ;;  %v3163_v13 = vstv %s3129_s15  ;;  %v2398_v41 = vadd.f32 %v945_v34, %v943_v35  ;;  %v2400_v40 = vadd.f32 %v963_v2, %v961_v17  ;;  %v3166_v21 = vstv %s3108_s29  ;;  %s3200_s15 = sld [smem:[#allocation67_spill]]  ;;  %s3222_s29 = sld [smem:[#allocation70_spill]] }
 0x1e5   : > { %v1061_v44 = vmul.f32 %v997_v18, %v3163_v13  ;;  %v1074_v8 = vmul.f32 %v987_v24, %v3166_v21  ;;  %v1075_v53 = vmul.f32 %v989_v54, %v3168_v51  ;;  %v2406_v63 = vadd.f32 %v971_v30, %v969_v47 }
 0x1e6   : > { %3165 = vst [vmem:[#allocation107_spill] sm:$0xff] %v2398_v41  ;;  %v2408_v3 = vadd.f32 %v1003_v31, %v1002_v39  ;;  %v2410_v52 = vadd.f32 %v1007_v14, %v1006_v50  ;;  %v2412_v27 = vadd.f32 %v1021_v55, %v1020_v15  ;;  %v2414_v17 = vadd.f32 %v1025_v22, %v1024_v6 }
 0x1e7   : > { %3171 = vst [vmem:[#allocation108_spill] sm:$0xff] %v2406_v63  ;;  %v2416_v2 = vadd.f32 %v1039_v42, %v1038_v25  ;;  %v2418_v59 = vadd.f32 %v1043_v60, %v1042_v9  ;;  %v2420_v51 = vadd.f32 %v1057_v29, %v1056_v7  ;;  %v2422_v35 = vadd.f32 %v1061_v44, %v1060_v61 }
 0x1e8   : > { %3173 = vst [vmem:[#allocation109_spill] sm:$0xff] %v2410_v52  ;;  %3174 = vst [vmem:[#allocation110_spill] sm:$0xff] %v2414_v17  ;;  %v3177_v34 = vstv %s3131_s30  ;;  %v3178_v30 = vstv %s3133_s16  ;;  %v3179_v39 = vstv %s3164_s4  ;;  %v2430_v42 = vadd.f32 %v1075_v53, %v1074_v8  ;;  %v738_v8 = vld [vmem:[#allocation2 + $0x4] ss:$8 sm:$0x3]  ;;  %s3263_s30 = sld [smem:[#allocation81_spill]] }
 0x1e9   : > { %3175 = vst [vmem:[#allocation111_spill] sm:$0xff] %v2418_v59  ;;  %3176 = vst [vmem:[#allocation112_spill] sm:$0xff] %v2422_v35  ;;  %v1078_v47 = vmul.f32 %v995_v26, %v3177_v34  ;;  %v1079_v55 = vmul.f32 %v997_v18, %v3178_v30  ;;  %v1092_v31 = vmul.f32 %v987_v24, %v3179_v39  ;;  %v3181_v9 = vstv %s3167_s3  ;;  %v740_v53 = vld [vmem:[#allocation2 + $0x6] ss:$8 sm:$0x3]  ;;  %s3264_s16 = sld [smem:[#allocation74_spill]] }
 0x1ea   : > { %3180 = vst [vmem:[#allocation113_spill] sm:$0xff] %v2430_v42  ;;  %v1093_v50 = vmul.f32 %v989_v54, %v3181_v9  ;;  %v3182_v14 = vstv %s3169_s18  ;;  %v3183_v6 = vstv %s3170_s19  ;;  %v3185_v25 = vstv %s3172_s20  ;;  %s3270_s4 = sld [smem:[#allocation76_spill]]  ;;  %s3271_s3 = sld [smem:[#allocation17_spill]] }
 0x1eb   : > { %v1096_v15 = vmul.f32 %v995_v26, %v3182_v14  ;;  %v1097_v22 = vmul.f32 %v997_v18, %v3183_v6  ;;  %v1110_v60 = vmul.f32 %v987_v24, %v3185_v25  ;;  %v3187_v7 = vstv %s3137_s21  ;;  %s3267_s21 = sld [smem:[#allocation83_spill]]  ;;  %s3275_s18 = sld [smem:[#allocation77_spill]] }
 0x1ec   : > { %v1111_v29 = vmul.f32 %v989_v54, %v3187_v7  ;;  %v3189_v61 = vstv %s3142_s28  ;;  %v3191_v44 = vstv %s3143_s9  ;;  %v3193_v34 = vstv %s3138_s5  ;;  %s3208_s28 = sld [smem:[#allocation59_spill]]  ;;  %s3220_s9 = sld [smem:[#allocation61_spill]] }
 0x1ed   : > { %v1114_v13 = vmul.f32 %v995_v26, %v3189_v61  ;;  %v1115_v21 = vmul.f32 %v997_v18, %v3191_v44  ;;  %v1128_v30 = vmul.f32 %v987_v24, %v3193_v34  ;;  %v3195_v39 = vstv %s3139_s22  ;;  %s3268_s5 = sld [smem:[#allocation16_spill]]  ;;  %s3269_s22 = sld [smem:[#allocation84_spill]] }
 0x1ee   : > { %v1129_v9 = vmul.f32 %v989_v54, %v3195_v39  ;;  %v3196_v14 = vstv %s3144_s1  ;;  %v1133_v25 = vmul.f32 %v997_v18, %v3197_v10  ;;  %v1146_v7 = vmul.f32 %v987_v24, %v3199_v5  ;;  %s3224_s1 = sld [smem:[#allocation62_spill]]  ;;  %s3277_s19 = sld [smem:[#allocation85_spill]] }
 0x1ef   : > { %v1132_v6 = vmul.f32 %v995_v26, %v3196_v14  ;;  %v1147_v61 = vmul.f32 %v989_v54, %v3201_v19  ;;  %v1150_v44 = vmul.f32 %v995_v26, %v3202_v57  ;;  %v1151_v23 = vmul.f32 %v997_v18, %v3203_v1  ;;  %s3282_s20 = sld [smem:[#allocation78_spill]] }
 0x1f0   : > { %v3204_v0 = vstv %s3184_s23  ;;  %v756_v34 = vmul.f32 %v3205_v28, %v740_v53  ;;  %v3206_v38 = vstv %s3188_s26  ;;  %v3207_v35 = vstv %s3190_s7 }
 0x1f1   : > { %v754_v11 = vmul.f32 %v3204_v0, %v738_v8  ;;  %v783_v39 = vmul.f32 %v3206_v38, %v738_v8  ;;  %v785_v14 = vmul.f32 %v3207_v35, %v740_v53  ;;  %v2470_v59 = vadd.f32 %v1079_v55, %v1078_v47 }
 0x1f2   : > { %v2472_v10 = vadd.f32 %v1093_v50, %v1092_v31  ;;  %v3211_v5 = vstv %s3192_s10  ;;  %v3212_v54 = vstv %s3194_s12  ;;  %v2478_v1 = vadd.f32 %v1097_v22, %v1096_v15 }
 0x1f3   : > { %3209 = vst [vmem:[#allocation114_spill] sm:$0xff] %v2470_v59  ;;  %v809_v24 = vmul.f32 %v3211_v5, %v738_v8  ;;  %v811_v19 = vmul.f32 %v3212_v54, %v740_v53  ;;  %v2480_v57 = vadd.f32 %v1111_v29, %v1110_v60  ;;  %v3218_v28 = vstv %s3198_s14  ;;  %v991_v29 = vld [vmem:[#allocation2 + $0x5] ss:$8 sm:$0x3] }
 0x1f4   : > { %3210 = vst [vmem:[#allocation115_spill] sm:$0xff] %v2472_v10  ;;  %3215 = vst [vmem:[#allocation116_spill] sm:$0xff] %v2478_v1  ;;  %v835_v38 = vmul.f32 %v3218_v28, %v738_v8  ;;  %v3219_v0 = vstv %s3200_s15  ;;  %v2486_v18 = vadd.f32 %v1115_v21, %v1114_v13  ;;  %v2488_v35 = vadd.f32 %v1129_v9, %v1128_v30 }
 0x1f5   : > { %3217 = vst [vmem:[#allocation117_spill] sm:$0xff] %v2480_v57  ;;  %v837_v26 = vmul.f32 %v3219_v0, %v740_v53  ;;  %v2490_v47 = vadd.f32 %v1133_v25, %v1132_v6  ;;  %v2492_v55 = vadd.f32 %v1147_v61, %v1146_v7  ;;  %v2494_v31 = vadd.f32 %v1151_v23, %v1150_v44 }
 0x1f6   : > { %3221 = vst [vmem:[#allocation118_spill] sm:$0xff] %v2486_v18  ;;  %3223 = vst [vmem:[#allocation119_spill] sm:$0xff] %v2488_v35  ;;  %v766_v50 = vadd.f32 %v756_v34, %v754_v11  ;;  %v795_v15 = vadd.f32 %v785_v14, %v783_v39  ;;  %v3231_v22 = vstv %s3208_s28  ;;  %v821_v13 = vadd.f32 %v811_v19, %v809_v24  ;;  %v993_v11 = vld [vmem:[#allocation2 + $0x7] ss:$8 sm:$0x3] }
 0x1f7   : > { %3225 = vst [vmem:[#allocation120_spill] sm:$0xff] %v2490_v47  ;;  %3227 = vst [vmem:[#allocation121_spill] sm:$0xff] %v2492_v55  ;;  %v861_v60 = vmul.f32 %v3231_v22, %v738_v8  ;;  %v3232_v21 = vstv %s3213_s25  ;;  %v3233_v9 = vstv %s3214_s27  ;;  %v3234_v25 = vstv %s3216_s6 }
 0x1f8   : > { %3229 = vst [vmem:[#allocation122_spill] sm:$0xff] %v2494_v31  ;;  %v863_v30 = vmul.f32 %v3232_v21, %v740_v53  ;;  %v887_v6 = vmul.f32 %v3233_v9, %v738_v8  ;;  %v889_v23 = vmul.f32 %v3234_v25, %v740_v53  ;;  %v847_v7 = vadd.f32 %v837_v26, %v835_v38 }
 0x1f9   : > { %v3235_v61 = vstv %s3220_s9  ;;  %v3236_v34 = vstv %s3222_s29  ;;  %v3237_v14 = vstv %s3224_s1  ;;  %v3238_v24 = vstv %s3226_s8 }
 0x1fa   : > { %v913_v44 = vmul.f32 %v3235_v61, %v738_v8  ;;  %v915_v39 = vmul.f32 %v3236_v34, %v740_v53  ;;  %v939_v5 = vmul.f32 %v3237_v14, %v738_v8  ;;  %v941_v54 = vmul.f32 %v3238_v24, %v740_v53 }
 0x1fb   : > { %v3239_v19 = vstv %s3228_s11  ;;  %v3240_v0 = vstv %s3230_s0  ;;  %v3241_v21 = vstv %s3184_s23  ;;  %v3242_v26 = vstv %s3186_s24  ;;  %s3286_s23 = sld [smem:[#allocation86_spill]]  ;;  %s3289_s24 = sld [smem:[#allocation79_spill]] }
 0x1fc   : > { %v965_v28 = vmul.f32 %v3239_v19, %v738_v8  ;;  %v967_v22 = vmul.f32 %v3240_v0, %v740_v53  ;;  %v1004_v38 = vmul.f32 %v991_v29, %v3241_v21  ;;  %v1005_v9 = vmul.f32 %v993_v11, %v3242_v26 }
 0x1fd   : > { %v3243_v25 = vstv %s3188_s26  ;;  %v3244_v34 = vstv %s3190_s7  ;;  %v3245_v47 = vstv %s3192_s10  ;;  %v3246_v24 = vstv %s3194_s12  ;;  %s3297_s26 = sld [smem:[#allocation87_spill]]  ;;  %s3299_s7 = sld [smem:[#allocation80_spill]] }
 0x1fe   : > { %v1022_v61 = vmul.f32 %v991_v29, %v3243_v25  ;;  %v1023_v31 = vmul.f32 %v993_v11, %v3244_v34  ;;  %v1040_v14 = vmul.f32 %v991_v29, %v3245_v47  ;;  %v1041_v18 = vmul.f32 %v993_v11, %v3246_v24  ;;  %s3300_s10 = sld [smem:[#allocation18_spill]]  ;;  %s3349_s12 = sld [smem:[#allocation15_spill]] }
 0x1ff   : > { %v3247_v8 = vstv %s3198_s14  ;;  %v3248_v55 = vstv %s3200_s15  ;;  %v3249_v0 = vstv %s3208_s28  ;;  %v3250_v21 = vstv %s3213_s25  ;;  %s3352_s25 = sld [smem:[#allocation128_spill]] }
 0x200   : > { %v1058_v19 = vmul.f32 %v991_v29, %v3247_v8  ;;  %v1059_v53 = vmul.f32 %v993_v11, %v3248_v55  ;;  %v1076_v1 = vmul.f32 %v991_v29, %v3249_v0  ;;  %v1077_v35 = vmul.f32 %v993_v11, %v3250_v21 }
 0x201   : > { %v3251_v59 = vstv %s3214_s27  ;;  %v3252_v17 = vstv %s3216_s6  ;;  %v730_v34 = vcombine.low %v2204_v12, %v2204_v12  ;;  %v3253_v52 = vstv %s3220_s9 }
 0x202   : > { %v1094_v26 = vmul.f32 %v991_v29, %v3251_v59  ;;  %v1095_v25 = vmul.f32 %v993_v11, %v3252_v17  ;;  %v1112_v47 = vmul.f32 %v991_v29, %v3253_v52  ;;  %v3254_v63 = vstv %s3222_s29 }
 0x203   : > { %v1113_v41 = vmul.f32 %v993_v11, %v3254_v63  ;;  %v3255_v24 = vstv %s3224_s1  ;;  %v3256_v8 = vstv %s3226_s8  ;;  %v873_v55 = vadd.f32 %v863_v30, %v861_v60  ;;  %732 = vst [vmem:[#allocation2 + $0x10] sm:$0xf0] %v730_v34  ;;  %v3292_v34 = vld [vmem:[#allocation100_spill] sm:$0xff] }
 0x204   : > { %v1130_v16 = vmul.f32 %v991_v29, %v3255_v24  ;;  %v1131_v56 = vmul.f32 %v993_v11, %v3256_v8  ;;  %v899_v32 = vadd.f32 %v889_v23, %v887_v6  ;;  %v3257_v0 = vstv %s3228_s11  ;;  %v3293_v8 = vld [vmem:[#allocation101_spill] sm:$0xff]  ;;  %s1518_s14 = sshll.u32 %s3349_s12, 4 }
 0x205   : > { %v1148_v37 = vmul.f32 %v991_v29, %v3257_v0  ;;  %v3258_v21 = vstv %s3230_s0  ;;  %v925_v59 = vadd.f32 %v915_v39, %v913_v44  ;;  %v951_v17 = vadd.f32 %v941_v54, %v939_v5  ;;  %s276_s27 = scalar_lea.vmem %s3352_s25, %s1518_s14 }
 0x206   : > { %v1149_v36 = vmul.f32 %v993_v11, %v3258_v21  ;;  %v977_v20 = vadd.f32 %v967_v22, %v965_v28  ;;  %v1011_v4 = vadd.f32 %v1005_v9, %v1004_v38  ;;  %v1029_v12 = vadd.f32 %v1023_v31, %v1022_v61 }
 0x207   : > { %v1047_v57 = vadd.f32 %v1041_v18, %v1040_v14  ;;  %v1065_v52 = vadd.f32 %v1059_v53, %v1058_v19  ;;  %v1083_v10 = vadd.f32 %v1077_v35, %v1076_v1  ;;  %v1101_v63 = vadd.f32 %v1095_v25, %v1094_v26 }
 0x208   : > { %v1119_v42 = vadd.f32 %v1113_v41, %v1112_v47  ;;  %v2554_v24 = vadd.f32 %v1131_v56, %v1130_v16  ;;  %v769_v60 = vadd.f32 %v766_v50, %v2271_v58  ;;  %v2557_v30 = vadd.f32 %v1149_v36, %v1148_v37  ;;  %v3274_v41 = vld [vmem:[#allocation117_spill] sm:$0xff] }
 0x209   : > { %v798_v29 = vadd.f32 %v795_v15, %v2282_v49  ;;  %v824_v6 = vadd.f32 %v821_v13, %v2284_v33  ;;  %v850_v23 = vadd.f32 %v847_v7, %v2286_v48  ;;  %v3259_v11 = vlaneseq }
 0x20a   : > { %v876_v16 = vadd.f32 %v873_v55, %v2294_v46  ;;  %v902_v58 = vadd.f32 %v899_v32, %v2324_v62  ;;  %v2570_v36 = vadd.f32 %v925_v59, %v2352_v43  ;;  %v2573_v33 = vadd.f32 %v951_v17, %v2392_v45  ;;  %v746_v62 = vld [vmem:[#allocation2 + $0x14] ss:$8 sm:$0x3]  ;;  %v748_v32 = vld [vmem:[#allocation2 + $0x16] ss:$8 sm:$0x3] }
 0x20b   : > { %vm2563_vm8 = vcmp.lt.s32.totalorder %v3259_v11, 222  ;;  %v2576_v37 = vadd.f32 %v977_v20, %v2400_v40  ;;  %v2579_v48 = vadd.f32 %v1011_v4, %v2408_v3  ;;  %v2582_v46 = vadd.f32 %v1029_v12, %v2412_v27  ;;  %v3272_v20 = vld [vmem:[#allocation113_spill] sm:$0xff]  ;;  %v3273_v45 = vld [vmem:[#allocation115_spill] sm:$0xff]  ;;  %v3295_v17 = vld [vmem:[#allocation102_spill] sm:$0xff] }
 0x20c   : > { %v2585_v49 = vadd.f32 %v1047_v57, %v2416_v2  ;;  %v2588_v56 = vadd.f32 %v1065_v52, %v2420_v51  ;;  %v2591_v43 = vadd.f32 %v1083_v10, %v3272_v20  ;;  %v2594_v4 = vadd.f32 %v1101_v63, %v3273_v45  ;;  %v3296_v52 = vld [vmem:[#allocation103_spill] sm:$0xff] }
 0x20d   : > { %v2597_v40 = vadd.f32 %v1119_v42, %v3274_v41  ;;  %v3276_v3 = vstv %s3260_s17  ;;  %v3278_v2 = vstv %s3263_s30  ;;  %v3279_v57 = vstv %s3264_s16 }
 0x20e   : > { %v762_v27 = vmul.f32 %v3276_v3, %v746_v62  ;;  %v764_v1 = vmul.f32 %v3278_v2, %v748_v32  ;;  %v791_v35 = vmul.f32 %v3279_v57, %v746_v62  ;;  %v3280_v31 = vstv %s3265_s2 }
 0x20f   : > { %v793_v51 = vmul.f32 %v3280_v31, %v748_v32  ;;  %v3281_v50 = vstv %s3266_s13  ;;  %v3283_v15 = vstv %s3267_s21  ;;  %v3284_v7 = vstv %s3268_s5  ;;  %v2634_v31 = vld [vmem:[#allocation2 + $0x17] ss:$8 sm:$0x3] }
 0x210   : > { %v817_v10 = vmul.f32 %v3281_v50, %v746_v62  ;;  %v819_v13 = vmul.f32 %v3283_v15, %v748_v32  ;;  %v843_v44 = vmul.f32 %v3284_v7, %v746_v62  ;;  %v3285_v39 = vstv %s3269_s22 }
 0x211   : > { %v845_v5 = vmul.f32 %v3285_v39, %v748_v32  ;;  %v768_v42 = vadd.f32 %v764_v1, %v762_v27  ;;  %v797_v54 = vadd.f32 %v793_v51, %v791_v35  ;;  %v3287_v28 = vstv %s3270_s4  ;;  %v3301_v27 = vld [vmem:[#allocation104_spill] sm:$0xff] }
 0x212   : > { %v869_v22 = vmul.f32 %v3287_v28, %v746_v62  ;;  %v3288_v38 = vstv %s3271_s3  ;;  %v823_v61 = vadd.f32 %v819_v13, %v817_v10  ;;  %v3290_v19 = vstv %s3275_s18  ;;  %v999_v35 = vld [vmem:[#allocation2 + $0x15] ss:$8 sm:$0x3] }
 0x213   : > { %v871_v9 = vmul.f32 %v3288_v38, %v748_v32  ;;  %v849_v14 = vadd.f32 %v845_v5, %v843_v44  ;;  %v895_v53 = vmul.f32 %v3290_v19, %v746_v62  ;;  %v3291_v26 = vstv %s3277_s19  ;;  %v3303_v10 = vld [vmem:[#allocation105_spill] sm:$0xff] }
 0x214   : > { %v897_v25 = vmul.f32 %v3291_v26, %v748_v32  ;;  %v770_v47 = vadd.f32 %v768_v42, %v3292_v34  ;;  %v799_v55 = vadd.f32 %v797_v54, %v3293_v8  ;;  %v3294_v21 = vstv %s3282_s20  ;;  %v3307_v42 = vld [vmem:[#allocation106_spill] sm:$0xff]  ;;  %v3314_v8 = vld [vmem:[#allocation107_spill] sm:$0xff] }
 0x215   : > { %v875_v0 = vadd.f32 %v871_v9, %v869_v22  ;;  %v921_v59 = vmul.f32 %v3294_v21, %v746_v62  ;;  %v825_v12 = vadd.f32 %v823_v61, %v3295_v17  ;;  %v851_v63 = vadd.f32 %v849_v14, %v3296_v52  ;;  %v3317_v52 = vld [vmem:[#allocation109_spill] sm:$0xff] }
 0x216   : > { %v901_v11 = vadd.f32 %v897_v25, %v895_v53  ;;  %v3298_v20 = vstv %s3286_s23  ;;  %v771_v41 = vadd.f32 %v770_v47, %v769_v60  ;;  %v800_v3 = vadd.f32 %v799_v55, %v798_v29 }
 0x217   : > { %v923_v45 = vmul.f32 %v3298_v20, %v748_v32  ;;  %v877_v2 = vadd.f32 %v875_v0, %v3301_v27  ;;  %v3302_v1 = vstv %s3289_s24  ;;  %v826_v51 = vadd.f32 %v825_v12, %v824_v6  ;;  %v3315_v0 = vld [vmem:[#allocation108_spill] sm:$0xff] }
 0x218   : > { %v947_v57 = vmul.f32 %v3302_v1, %v746_v62  ;;  %v852_v50 = vadd.f32 %v851_v63, %v850_v23  ;;  %v903_v15 = vadd.f32 %v901_v11, %v3303_v10  ;;  %776 = vst.msk [vmem:[#allocation3] ss:$8 sm:$0x3] %vm2563_vm8, %v771_v41  ;;  %802 = vst.msk [vmem:[#allocation3 + $0x1] ss:$8 sm:$0x3] %vm2563_vm8, %v800_v3  ;;  %v3304_v29 = vstv %s3297_s26 }
 0x219   : > { %v927_v13 = vadd.f32 %v923_v45, %v921_v59  ;;  %v878_v60 = vadd.f32 %v877_v2, %v876_v16  ;;  %v949_v7 = vmul.f32 %v3304_v29, %v748_v32  ;;  %v3305_v44 = vstv %s3299_s7  ;;  %828 = vst.msk [vmem:[#allocation3 + $0x2] ss:$8 sm:$0x3] %vm2563_vm8, %v826_v51  ;;  %v3320_v2 = vld [vmem:[#allocation110_spill] sm:$0xff]  ;;  %v3322_v10 = vld [vmem:[#allocation111_spill] sm:$0xff] }
 0x21a   : > { %v973_v39 = vmul.f32 %v3305_v44, %v746_v62  ;;  %v3306_v5 = vstv %s3300_s10  ;;  %854 = vst.msk [vmem:[#allocation3 + $0x6] ss:$8 sm:$0x3] %vm2563_vm8, %v852_v50  ;;  %v904_v23 = vadd.f32 %v903_v15, %v902_v58  ;;  %v3308_v28 = vstv %s3260_s17 }
 0x21b   : > { %v975_v6 = vmul.f32 %v3306_v5, %v748_v32  ;;  %v929_v54 = vadd.f32 %v927_v13, %v3307_v42  ;;  %v1008_v16 = vmul.f32 %v999_v35, %v3308_v28  ;;  %v3309_v22 = vstv %s3263_s30  ;;  %880 = vst.msk [vmem:[#allocation3 + $0x7] ss:$8 sm:$0x3] %vm2563_vm8, %v878_v60 }
 0x21c   : > { %v1009_v38 = vmul.f32 %v2634_v31, %v3309_v22  ;;  %v953_v62 = vadd.f32 %v949_v7, %v947_v57  ;;  %v3310_v9 = vstv %s3264_s16  ;;  %v3311_v14 = vstv %s3265_s2  ;;  %906 = vst.msk [vmem:[#allocation3 + $0x10] ss:$8 sm:$0x3] %vm2563_vm8, %v904_v23 }
 0x21d   : > { %v979_v32 = vadd.f32 %v975_v6, %v973_v39  ;;  %v1026_v61 = vmul.f32 %v999_v35, %v3310_v9  ;;  %v1027_v58 = vmul.f32 %v2634_v31, %v3311_v14  ;;  %v930_v19 = vadd.f32 %v929_v54, %v2570_v36  ;;  %v3326_v6 = vld [vmem:[#allocation112_spill] sm:$0xff] }
 0x21e   : > { %v1013_v53 = vadd.f32 %v1009_v38, %v1008_v16  ;;  %v3312_v26 = vstv %s3266_s13  ;;  %v3313_v34 = vstv %s3267_s21  ;;  %v955_v55 = vadd.f32 %v953_v62, %v3314_v8  ;;  %v3334_v8 = vld [vmem:[#allocation116_spill] sm:$0xff] }
 0x21f   : > { %v1044_v25 = vmul.f32 %v999_v35, %v3312_v26  ;;  %v1045_v47 = vmul.f32 %v2634_v31, %v3313_v34  ;;  %v981_v21 = vadd.f32 %v979_v32, %v3315_v0  ;;  %v1031_v59 = vadd.f32 %v1027_v58, %v1026_v61  ;;  %932 = vst.msk [vmem:[#allocation3 + $0x14] ss:$8 sm:$0x3] %vm2563_vm8, %v930_v19  ;;  %v1164_v14 = vld [vmem:[#allocation3] ss:$8 sm:$0x3] }
 0x220   : > { %v3316_v17 = vstv %s3268_s5  ;;  %v1015_v36 = vadd.f32 %v1013_v53, %v3317_v52  ;;  %v3318_v11 = vstv %s3269_s22  ;;  %v3319_v45 = vstv %s3270_s4  ;;  %v3332_v53 = vld [vmem:[#allocation119_spill] sm:$0xff]  ;;  %v3337_v52 = vld [vmem:[#allocation88_spill] sm:$0xff] }
 0x221   : > { %v1062_v12 = vmul.f32 %v999_v35, %v3316_v17  ;;  %v1049_v63 = vadd.f32 %v1045_v47, %v1044_v25  ;;  %v1063_v20 = vmul.f32 %v2634_v31, %v3318_v11  ;;  %v1080_v41 = vmul.f32 %v999_v35, %v3319_v45  ;;  %v3340_v45 = vld [vmem:[#allocation94_spill] sm:$0xff] }
 0x222   : > { %v956_v3 = vadd.f32 %v955_v55, %v2573_v33  ;;  %v982_v27 = vadd.f32 %v981_v21, %v2576_v37  ;;  %v1033_v1 = vadd.f32 %v1031_v59, %v3320_v2  ;;  %v3321_v57 = vstv %s3271_s3  ;;  %v1211_v11 = vld [vmem:[#allocation3 + $0x7] ss:$8 sm:$0x3] }
 0x223   : > { %v1081_v51 = vmul.f32 %v2634_v31, %v3321_v57  ;;  %v1016_v50 = vadd.f32 %v1015_v36, %v2579_v48  ;;  %v1051_v15 = vadd.f32 %v1049_v63, %v3322_v10  ;;  %v1067_v13 = vadd.f32 %v1063_v20, %v1062_v12  ;;  %v3338_v36 = vld [vmem:[#allocation91_spill] sm:$0xff]  ;;  %v3339_v20 = vld [vmem:[#allocation120_spill] sm:$0xff]  ;;  %v3344_v10 = vld [vmem:[#allocation98_spill] sm:$0xff] }
 0x224   : > { %v3323_v60 = vstv %s3275_s18  ;;  %958 = vst.msk [vmem:[#allocation3 + $0x15] ss:$8 sm:$0x3] %vm2563_vm8, %v956_v3  ;;  %984 = vst.msk [vmem:[#allocation3 + $0x16] ss:$8 sm:$0x3] %vm2563_vm8, %v982_v27  ;;  %v1034_v33 = vadd.f32 %v1033_v1, %v2582_v46  ;;  %v3324_v7 = vstv %s3277_s19  ;;  %v3325_v48 = vstv %s3282_s20 }
 0x225   : > { %v1098_v29 = vmul.f32 %v999_v35, %v3323_v60  ;;  %v1085_v37 = vadd.f32 %v1081_v51, %v1080_v41  ;;  %v1099_v44 = vmul.f32 %v2634_v31, %v3324_v7  ;;  %v1116_v39 = vmul.f32 %v999_v35, %v3325_v48  ;;  %1018 = vst.msk [vmem:[#allocation3 + $0x3] ss:$8 sm:$0x3] %vm2563_vm8, %v1016_v50  ;;  %v3329_v46 = vld [vmem:[#allocation114_spill] sm:$0xff]  ;;  %v3343_v51 = vld [vmem:[#allocation95_spill] sm:$0xff]  ;;  %v3345_v48 = vld [vmem:[#allocation89_spill] sm:$0xff] }
 0x226   : > { %v1052_v5 = vadd.f32 %v1051_v15, %v2585_v49  ;;  %v1069_v23 = vadd.f32 %v1067_v13, %v3326_v6  ;;  %v3327_v42 = vstv %s3286_s23  ;;  %v3328_v28 = vstv %s3289_s24  ;;  %1036 = vst.msk [vmem:[#allocation3 + $0x4] ss:$8 sm:$0x3] %vm2563_vm8, %v1034_v33  ;;  %v1166_v49 = vld [vmem:[#allocation3 + $0x6] ss:$8 sm:$0x3] }
 0x227   : > { %v1117_v54 = vmul.f32 %v2634_v31, %v3327_v42  ;;  %v1134_v16 = vmul.f32 %v999_v35, %v3328_v28  ;;  %v1087_v22 = vadd.f32 %v1085_v37, %v3329_v46  ;;  %v1103_v38 = vadd.f32 %v1099_v44, %v1098_v29  ;;  %v1168_v59 = vld [vmem:[#allocation3 + $0x14] ss:$8 sm:$0x3]  ;;  %v3341_v3 = vld [vmem:[#allocation90_spill] sm:$0xff] }
 0x228   : > { %v3330_v62 = vstv %s3297_s26  ;;  %v3331_v9 = vstv %s3299_s7  ;;  %1054 = vst.msk [vmem:[#allocation3 + $0x5] ss:$8 sm:$0x3] %vm2563_vm8, %v1052_v5  ;;  %v1070_v58 = vadd.f32 %v1069_v23, %v2588_v56  ;;  %v1140_v26 = vadd.f32 %v2554_v24, %v3332_v53  ;;  %v3336_v56 = vld [vmem:[#allocation118_spill] sm:$0xff]  ;;  %v3346_v5 = vld [vmem:[#allocation92_spill] sm:$0xff] }
 0x229   : > { %v1135_v32 = vmul.f32 %v2634_v31, %v3330_v62  ;;  %v1152_v61 = vmul.f32 %v999_v35, %v3331_v9  ;;  %v1121_v19 = vadd.f32 %v1117_v54, %v1116_v39  ;;  %v3333_v25 = vstv %s3300_s10  ;;  %v3335_v35 = vld [vmem:[#allocation121_spill] sm:$0xff]  ;;  %v3342_v1 = vld [vmem:[#allocation122_spill] sm:$0xff] }
 0x22a   : > { %v1153_v34 = vmul.f32 %v2634_v31, %v3333_v25  ;;  %v1088_v47 = vadd.f32 %v1087_v22, %v2591_v43  ;;  %v1105_v55 = vadd.f32 %v1103_v38, %v3334_v8  ;;  %v1158_v21 = vadd.f32 %v2557_v30, %v3335_v35  ;;  %1072 = vst.msk [vmem:[#allocation3 + $0x11] ss:$8 sm:$0x3] %vm2563_vm8, %v1070_v58  ;;  %v1209_v31 = vld [vmem:[#allocation3 + $0x1] ss:$8 sm:$0x3] }
 0x22b   : > { %v1139_v0 = vadd.f32 %v1135_v32, %v1134_v16  ;;  %v1123_v17 = vadd.f32 %v1121_v19, %v3336_v56  ;;  %v1171_v24 = vmul.f32 %v3337_v52, %v1164_v14  ;;  %v1175_v63 = vmul.f32 %v3338_v36, %v1166_v49  ;;  %v1213_v13 = vld [vmem:[#allocation3 + $0x15] ss:$8 sm:$0x3]  ;;  %v1243_v60 = vld [vmem:[#allocation3 + $0x2] ss:$8 sm:$0x3] }
 0x22c   : > { %v1157_v12 = vadd.f32 %v1153_v34, %v1152_v61  ;;  %1090 = vst.msk [vmem:[#allocation3 + $0x12] ss:$8 sm:$0x3] %vm2563_vm8, %v1088_v47  ;;  %v1106_v43 = vadd.f32 %v1105_v55, %v2594_v4  ;;  %v2743_v41 = vmul.f32 %v3340_v45, %v1168_v59  ;;  %v1190_v27 = vmul.f32 %v3341_v3, %v1164_v14  ;;  %v1165_v29 = vld [vmem:[#allocation3 + $0x3] ss:$8 sm:$0x3] }
 0x22d   : > { %v1141_v30 = vadd.f32 %v1139_v0, %v3339_v20  ;;  %v1124_v2 = vadd.f32 %v1123_v17, %v2597_v40  ;;  %v1194_v50 = vmul.f32 %v3343_v51, %v1166_v49  ;;  %v2750_v15 = vmul.f32 %v3344_v10, %v1168_v59  ;;  %v1245_v7 = vld [vmem:[#allocation3 + $0x10] ss:$8 sm:$0x3]  ;;  %v1210_v23 = vld [vmem:[#allocation3 + $0x4] ss:$8 sm:$0x3] }
 0x22e   : > { %v1159_v57 = vadd.f32 %v1157_v12, %v3342_v1  ;;  %1108 = vst.msk [vmem:[#allocation3 + $0x13] ss:$8 sm:$0x3] %vm2563_vm8, %v1106_v43  ;;  %v1215_v33 = vmul.f32 %v1209_v31, %v3337_v52  ;;  %v1217_v37 = vmul.f32 %v1211_v11, %v3338_v36  ;;  %v1219_v40 = vmul.f32 %v1213_v13, %v3340_v45  ;;  %v1247_v54 = vld [vmem:[#allocation3 + $0x16] ss:$8 sm:$0x3] }
 0x22f   : > { %v1142_v4 = vadd.f32 %v1141_v30, %v1140_v26  ;;  %1126 = vst.msk [vmem:[#allocation3 + $0x17] ss:$8 sm:$0x3] %vm2563_vm8, %v1124_v2  ;;  %v1173_v39 = vmul.f32 %v3345_v48, %v1165_v29  ;;  %v1192_v6 = vmul.f32 %v3346_v5, %v1165_v29  ;;  %v1229_v42 = vmul.f32 %v1209_v31, %v3341_v3  ;;  %v1244_v22 = vld [vmem:[#allocation3 + $0x5] ss:$8 sm:$0x3] }
 0x230   : > { %v1160_v44 = vadd.f32 %v1159_v57, %v1158_v21  ;;  %v1216_v28 = vmul.f32 %v1210_v23, %v3345_v48  ;;  %v1230_v16 = vmul.f32 %v1210_v23, %v3346_v5  ;;  %v1231_v46 = vmul.f32 %v1211_v11, %v3343_v51  ;;  %v3347_v26 = vld [vmem:[#allocation93_spill] sm:$0xff]  ;;  %v3348_v34 = vld [vmem:[#allocation96_spill] sm:$0xff]  ;;  %v3351_v2 = vld [vmem:[#allocation99_spill] sm:$0xff] }
 0x231   : > { %1144 = vst.msk [vmem:[#allocation3 + $0x20] ss:$8 sm:$0x3] %vm2563_vm8, %v1142_v4  ;;  %v1249_v38 = vmul.f32 %v1243_v60, %v3337_v52  ;;  %v1182_v62 = vadd.f32 %v1173_v39, %v1171_v24  ;;  %v1233_v32 = vmul.f32 %v1213_v13, %v3344_v10  ;;  %v1250_v9 = vmul.f32 %v1244_v22, %v3345_v48  ;;  %v1167_v14 = vld [vmem:[#allocation3 + $0x11] ss:$8 sm:$0x3] }
 0x232   : > { %1162 = vst.msk [vmem:[#allocation3 + $0x21] ss:$8 sm:$0x3] %vm2563_vm8, %v1160_v44  ;;  %v1251_v61 = vmul.f32 %v1245_v7, %v3338_v36  ;;  %v1201_v49 = vadd.f32 %v1192_v6, %v1190_v27  ;;  %v1253_v58 = vmul.f32 %v1247_v54, %v3340_v45  ;;  %v1263_v19 = vmul.f32 %v1243_v60, %v3341_v3  ;;  %v3350_v45 = vld [vmem:[#allocation97_spill] sm:$0xff] }
 0x233   : > { %v1264_v53 = vmul.f32 %v1244_v22, %v3346_v5  ;;  %v1177_v25 = vmul.f32 %v3347_v26, %v1167_v14  ;;  %v1196_v47 = vmul.f32 %v3348_v34, %v1167_v14  ;;  %v1212_v8 = vld [vmem:[#allocation3 + $0x12] ss:$8 sm:$0x3]  ;;  %v1221_v55 = vadd.f32 %v1216_v28, %v1215_v33 }
 0x234   : > { %v1235_v0 = vadd.f32 %v1230_v16, %v1229_v42  ;;  %v1218_v35 = vmul.f32 %v1212_v8, %v3347_v26  ;;  %v1232_v21 = vmul.f32 %v1212_v8, %v3348_v34  ;;  %v1255_v59 = vadd.f32 %v1250_v9, %v1249_v38 }
 0x235   : > { %v1265_v56 = vmul.f32 %v1245_v7, %v3343_v51  ;;  %v1183_v17 = vadd.f32 %v1177_v25, %v1175_v63  ;;  %v1202_v12 = vadd.f32 %v1196_v47, %v1194_v50  ;;  %v1246_v52 = vld [vmem:[#allocation3 + $0x13] ss:$8 sm:$0x3]  ;;  %v1267_v24 = vmul.f32 %v1247_v54, %v3344_v10 }
 0x236   : > { %v1269_v36 = vadd.f32 %v1264_v53, %v1263_v19  ;;  %v1169_v31 = vld [vmem:[#allocation3 + $0x17] ss:$8 sm:$0x3]  ;;  %v1222_v11 = vadd.f32 %v1218_v35, %v1217_v37  ;;  %v1236_v43 = vadd.f32 %v1232_v21, %v1231_v46  ;;  %v1252_v20 = vmul.f32 %v1246_v52, %v3347_v26 }
 0x237   : > { %v1266_v30 = vmul.f32 %v1246_v52, %v3348_v34  ;;  %v1181_v3 = vmul.f32 %v3350_v45, %v1169_v31  ;;  %v1185_v27 = vadd.f32 %v1183_v17, %v1182_v62  ;;  %v1200_v1 = vmul.f32 %v3351_v2, %v1169_v31 }
 0x238   : > { %v1204_v57 = vadd.f32 %v1202_v12, %v1201_v49  ;;  %v1214_v63 = vld [vmem:[#allocation3 + $0x20] ss:$8 sm:$0x3]  ;;  %v1224_v50 = vadd.f32 %v1222_v11, %v1221_v55  ;;  %v1238_v13 = vadd.f32 %v1236_v43, %v1235_v0  ;;  %v1256_v37 = vadd.f32 %v1252_v20, %v1251_v61 }
 0x239   : > { %v1220_v51 = vmul.f32 %v1214_v63, %v3350_v45  ;;  %v1234_v10 = vmul.f32 %v1214_v63, %v3351_v2  ;;  %v1248_v60 = vld [vmem:[#allocation3 + $0x21] ss:$8 sm:$0x3]  ;;  %v1184_v4 = vadd.f32 %v1181_v3, %v2743_v41  ;;  %v1203_v29 = vadd.f32 %v1200_v1, %v2750_v15 }
 0x23a   : > { %v1254_v33 = vmul.f32 %v1248_v60, %v3350_v45  ;;  %v1268_v48 = vmul.f32 %v1248_v60, %v3351_v2  ;;  %v1270_v39 = vadd.f32 %v1266_v30, %v1265_v56  ;;  %v1258_v42 = vadd.f32 %v1256_v37, %v1255_v59 }
 0x23b   : > { %v1223_v7 = vadd.f32 %v1220_v51, %v1219_v40  ;;  %v1237_v44 = vadd.f32 %v1234_v10, %v1233_v32  ;;  %v1186_v5 = vadd.f32 %v1185_v27, %v1184_v4  ;;  %v1205_v6 = vadd.f32 %v1204_v57, %v1203_v29 }
 0x23c   : > { %v1257_v23 = vadd.f32 %v1254_v33, %v1253_v58  ;;  %v1271_v28 = vadd.f32 %v1268_v48, %v1267_v24  ;;  %v1272_v15 = vadd.f32 %v1270_v39, %v1269_v36 }
 0x23d   : > { %v1225_v54 = vadd.f32 %v1224_v50, %v1223_v7  ;;  %v1239_v41 = vadd.f32 %v1238_v13, %v1237_v44  ;;  %1187 = vst.msk [vmem:[%s276_s27] ss:$8 sm:$0x3] %vm2563_vm8, %v1186_v5  ;;  %1510 = vst.msk [vmem:[%s276_s27 + $0x1] ss:$8 sm:$0x3] %vm2563_vm8, %v1205_v6 }
 0x23e   : > { %v1259_v16 = vadd.f32 %v1258_v42, %v1257_v23  ;;  %v1273_v40 = vadd.f32 %v1272_v15, %v1271_v28 }
 0x23f   : > { %1511 = vst.msk [vmem:[%s276_s27 + $0x2] ss:$8 sm:$0x3] %vm2563_vm8, %v1225_v54  ;;  %1512 = vst.msk [vmem:[%s276_s27 + $0x3] ss:$8 sm:$0x3] %vm2563_vm8, %v1239_v41 }
 0x240   : > { %1513 = vst.msk [vmem:[%s276_s27 + $0x4] ss:$8 sm:$0x3] %vm2563_vm8, %v1259_v16  ;;  %1514 = vst.msk [vmem:[%s276_s27 + $0x5] ss:$8 sm:$0x3] %vm2563_vm8, %v1273_v40 }
 0x241 PF: > { %s3353_s6 = sld [smem:[#allocation14_spill]] }
 0x247   : > { %s18_s18 = sadd.s32 1, %s3353_s6  }
 0x248   : > { %p15_p2 = scmp.ge.s32.totalorder %s18_s18, 4  }
 0x24a   :  { %17 = sbr.rel (!%p15_p2) target bundleno = 10 (0xa), region = 124 }
 0x251   :  { %1298 = vsyncpa [#allocation5], 1 }
 0x252   :  { %1300 = vsyncpa [#allocation5 + $0x1], 1 }
 0x253   :  { %1301 = vsyncpa [#allocation7], 1 }
 0x254   :  { %1302 = vsyncpa [#allocation10], 1 }

</bundles_post_ra>
